<compile_context>
chip_gen: v7x
topology: tpu7x:2x2x1
jax: 0.10.0
libtpu: 0.0.40
codegen_flags: <defaults>
</compile_context>

<pallas_src>
import functools

import jax
import jax.numpy as jnp
import numpy as np
from jax.experimental import pallas as pl
from jax.experimental.pallas import tpu as pltpu


# ----------------------------------------------------------------------------
# Static layout of the two packed parameter buffers (shared by packer & kernel)
# ----------------------------------------------------------------------------
def _r8(x):
    return ((x + 7) // 8) * 8


def _layouts(n, d, ts, hsum):
    """Row/column offsets inside the packed weight buffers (all 8-aligned)."""
    nd, H, no3, wyh = n * d, n * hsum, n * (d + ts), 2 * ts
    o2 = _r8(nd)
    o3 = _r8(o2 + H)
    ob = _r8(o3 + H)
    blk = dict(nd=nd, H=H, no3=no3, o2=o2, o3=o3,
               b1=ob, b2=ob + 8, b3=ob + 16, rows=ob + 24, width=max(H, no3))
    oy2 = _r8(d)
    oy3 = _r8(oy2 + wyh)
    oyb = _r8(oy3 + wyh)
    jy = dict(wyh=wyh, o2=oy2, o3=oy3, b1=oyb, b2=oyb + 8, b3=oyb + 16,
              rows=oyb + 24, width=wyh)
    return blk, jy


# ----------------------------------------------------------------------------
# Kernel (single invocation, everything resident in VMEM)
# ----------------------------------------------------------------------------
def bsde_kernel(xcat_ref, lin_ref, js_ref, u0s_ref, wblk_ref, wyp_ref, u_ref,
                *, n, d, ts, hsum):
    f32 = jnp.float32
    blk, jyl = _layouts(n, d, ts, hsum)
    nd, H, no3, wyh = blk["nd"], blk["H"], blk["no3"], jyl["wyh"]
    B = xcat_ref.shape[0]
    cdt = xcat_ref.dtype  # compute dtype (f32 or bf16); accumulation is f32

    def _w(ref, r0, nr, nc):  # static window load from a packed weight buffer
        return ref[pl.ds(r0, nr), pl.ds(0, nc)]

    # (1) per-step grad/jumpx FNNs: three block-diagonal matmuls over ALL steps
    h = jnp.dot(xcat_ref[...], _w(wblk_ref, 0, nd, H),
                preferred_element_type=f32)
    h = jnp.tanh(h + _w(wblk_ref, blk["b1"], 1, H).astype(f32))
    h = jnp.dot(h.astype(cdt), _w(wblk_ref, blk["o2"], H, H),
                preferred_element_type=f32)
    h = jnp.tanh(h + _w(wblk_ref, blk["b2"], 1, H).astype(f32))
    out = jnp.dot(h.astype(cdt), _w(wblk_ref, blk["o3"], H, no3),
                  preferred_element_type=f32)
    out = out + _w(wblk_ref, blk["b3"], 1, no3).astype(f32)   # (B, N*(d+ts))
    # decay a^(N-1-i) is already folded into the layer-3 blocks & biases.

    # (2) Brownian term and Monte-Carlo jump compensator: one lane reduction.
    #     lin_ref packs [dBt_i | -mc_mean*cc*dt] in the matching column layout.
    u = u0s_ref[...] + jnp.sum(out * lin_ref[...], axis=-1, keepdims=True)

    # (3) shared jumpy FNN over flat (N*B, d) rows (weights NOT replicated).
    js = js_ref[...]
    hy = jnp.dot(js, _w(wyp_ref, 0, d, wyh), preferred_element_type=f32)
    hy = jnp.tanh(hy + _w(wyp_ref, jyl["b1"], 1, wyh).astype(f32))
    hy = jnp.dot(hy.astype(cdt), _w(wyp_ref, jyl["o2"], wyh, wyh),
                 preferred_element_type=f32)
    hy = jnp.tanh(hy + _w(wyp_ref, jyl["b2"], 1, wyh).astype(f32))
    jy = jnp.dot(hy.astype(cdt), _w(wyp_ref, jyl["o3"], wyh, ts),
                 preferred_element_type=f32)
    jy = jy + _w(wyp_ref, jyl["b3"], 1, ts).astype(f32)        # (N*B, ts)

    js32 = js.astype(f32)
    jnorm = jnp.tanh(jnp.sqrt(jnp.sum(js32 * js32, axis=-1, keepdims=True)))
    q = jy * jnorm                                             # (N*B, ts)

    # (4) combine jumpx (step axis in lanes) with jumpy (step axis in rows).
    jxd = out[:, nd:]                                          # (B, N*ts)
    for i in range(n):
        u = u + jnp.sum(jxd[:, i * ts:(i + 1) * ts] * q[i * B:(i + 1) * B, :],
                        axis=-1, keepdims=True)
    u_ref[...] = u.astype(u_ref.dtype)


# ----------------------------------------------------------------------------
# One-time host-side parameter packing (block-diagonal, decay folded in)
# ----------------------------------------------------------------------------
def pack_params(grads, jumpxs, jumpy, *, n, d, hg, ts, decay, dtype):
    hx = 2 * ts
    hsum = hg + hx
    blk, jyl = _layouts(n, d, ts, hsum)
    nd = blk["nd"]
    wblk = np.zeros((blk["rows"], blk["width"]), np.float32)
    for i in range(n):
        wg1, bg1, wg2, bg2, wg3, bg3 = [np.asarray(p, np.float32) for p in grads[i]]
        wx1, bx1, wx2, bx2, wx3, bx3 = [np.asarray(p, np.float32) for p in jumpxs[i]]
        c0 = i * hsum
        dec = np.float32(decay[i])
        # layer 1
        wblk[i * d:(i + 1) * d, c0:c0 + hg] = wg1
        wblk[i * d:(i + 1) * d, c0 + hg:c0 + hsum] = wx1
        wblk[blk["b1"], c0:c0 + hg] = bg1.reshape(-1)
        wblk[blk["b1"], c0 + hg:c0 + hsum] = bx1.reshape(-1)
        # layer 2
        r0 = blk["o2"] + c0
        wblk[r0:r0 + hg, c0:c0 + hg] = wg2
        wblk[r0 + hg:r0 + hsum, c0 + hg:c0 + hsum] = wx2
        wblk[blk["b2"], c0:c0 + hg] = bg2.reshape(-1)
        wblk[blk["b2"], c0 + hg:c0 + hsum] = bx2.reshape(-1)
        # layer 3 (decay a^{N-1-i} folded in; grad cols first, then jumpx cols)
        r0 = blk["o3"] + c0
        wblk[r0:r0 + hg, i * d:(i + 1) * d] = wg3 * dec
        wblk[r0 + hg:r0 + hsum, nd + i * ts:nd + (i + 1) * ts] = wx3 * dec
        wblk[blk["b3"], i * d:(i + 1) * d] = bg3.reshape(-1) * dec
        wblk[blk["b3"], nd + i * ts:nd + (i + 1) * ts] = bx3.reshape(-1) * dec

    wy1, by1, wy2, by2, wy3, by3 = [np.asarray(p, np.float32) for p in jumpy]
    wyh = jyl["wyh"]
    wyp = np.zeros((jyl["rows"], jyl["width"]), np.float32)
    wyp[0:d, 0:wyh] = wy1
    wyp[jyl["o2"]:jyl["o2"] + wyh, 0:wyh] = wy2
    wyp[jyl["o3"]:jyl["o3"] + wyh, 0:ts] = wy3
    wyp[jyl["b1"], 0:wyh] = by1.reshape(-1)
    wyp[jyl["b2"], 0:wyh] = by2.reshape(-1)
    wyp[jyl["b3"], 0:ts] = by3.reshape(-1)
    return jnp.asarray(wblk, dtype), jnp.asarray(wyp, dtype)


# ----------------------------------------------------------------------------
# Deterministic parameter init + pure-JAX MLP helper
# ----------------------------------------------------------------------------
def init_fnn(key, d_in, d_out, hidden):
    k = jax.random.split(key, 6)
    w1 = jax.random.normal(k[0], (d_in, hidden), jnp.float32) / np.sqrt(d_in)
    b1 = 0.01 * jax.random.normal(k[1], (1, hidden), jnp.float32)
    w2 = jax.random.normal(k[2], (hidden, hidden), jnp.float32) / np.sqrt(hidden)
    b2 = 0.01 * jax.random.normal(k[3], (1, hidden), jnp.float32)
    w3 = jax.random.normal(k[4], (hidden, d_out), jnp.float32) / np.sqrt(hidden)
    b3 = 0.01 * jax.random.normal(k[5], (1, d_out), jnp.float32)
    return (w1, b1, w2, b2, w3, b3)


def mlp_ref(x, p):
    w1, b1, w2, b2, w3, b3 = p
    h = jnp.tanh(x @ w1 + b1)
    h = jnp.tanh(h @ w2 + b2)
    return h @ w3 + b3


# ----------------------------------------------------------------------------
# Wrapper (per-call data packing only; weight packing is done once outside)
# ----------------------------------------------------------------------------
def bsdet_forward(wblk, wyp, jumpy_params, u_param, mc_js, Xt, dBt, jump_size,
                  *, n, d, ts, hg, dt, r, cc):
    f32 = jnp.float32
    B = Xt.shape[1]
    hsum = hg + 2 * ts
    nd, no3, H, wyh = n * d, n * (d + ts), n * hsum, 2 * ts
    cdt = wblk.dtype
    a = 1.0 - r * dt

    # One-shot Monte-Carlo jump compensator (hoisted off the kernel path).
    jy_mc = mlp_ref(mc_js, jumpy_params)
    mc_mean = jnp.mean(
        jy_mc * jnp.tanh(jnp.linalg.norm(mc_js, axis=1, keepdims=True)),
        axis=0, keepdims=True) * cc                              # (1, ts)

    # Per-call data packing: step axis into lanes, matching the packed weights.
    xcat = jnp.transpose(Xt[:n], (1, 0, 2)).reshape(B, nd).astype(cdt)
    dbt_pk = jnp.transpose(dBt, (1, 0, 2)).reshape(B, nd).astype(f32)
    mc_cols = jnp.broadcast_to(-jnp.tile(mc_mean * dt, (1, n)), (B, n * ts))
    lin_pk = jnp.concatenate([dbt_pk, mc_cols.astype(f32)], axis=-1)  # (B, no3)
    js_flat = jump_size.reshape(n * B, d).astype(cdt)                 # (N*B, d)
    u0s = jnp.full((B, 1), a ** n, f32) * u_param                     # a^N * u0

    args = (xcat, lin_pk, js_flat, u0s, wblk, wyp)
    flops = int(2 * B * (nd * H + H * H + H * no3)
                + 2 * n * B * (d * wyh + wyh * wyh + wyh * ts)
                + 6 * B * no3)
    transc = int(2 * B * H + 2 * n * B * wyh + 2 * n * B)
    bytes_accessed = int(sum(x.size * x.dtype.itemsize for x in args) + B * 4)

    vmem = pl.BlockSpec(memory_space=pltpu.MemorySpace.VMEM)
    kernel = functools.partial(bsde_kernel, n=n, d=d, ts=ts, hsum=hsum)
    # Total VMEM residency here is ~1.3 MiB, well under v7x's 32 MiB scoped /
    # 64 MiB physical budget. For large batch, wrap in a ("parallel",) batch
    # grid so v7x's 2nd TensorCore is used; at B=8 the batch axis cannot be
    # split below the 8-sublane granule, so a single invocation is used.
    u = pl.pallas_call(
        kernel,
        out_shape=jax.ShapeDtypeStruct((B, 1), jnp.float32),
        in_specs=[vmem] * len(args),
        out_specs=vmem,
        compiler_params=pltpu.CompilerParams(vmem_limit_bytes=32 * 1024 * 1024),
        cost_estimate=pl.CostEstimate(flops=flops, transcendentals=transc,
                                      bytes_accessed=bytes_accessed),
    )(*args)

    # Terminal condition g(Xt[-1]) is one-shot; computed in XLA.
    g = jnp.sum(Xt[n] * Xt[n], axis=1, keepdims=True)
    return u, g


# ----------------------------------------------------------------------------
# Pure-JAX reference (per-step loop, mirrors the PyTorch forward)
# ----------------------------------------------------------------------------
def forward_ref(grads, jumpxs, jumpy, mc_js, Xt, dBt, jump_size, u0,
                *, N, dt, r, cc):
    jy_mc = mlp_ref(mc_js, jumpy)
    mc_mean = jnp.mean(
        jy_mc * jnp.tanh(jnp.linalg.norm(mc_js, axis=1, keepdims=True)),
        axis=0, keepdims=True) * cc
    u = u0
    for i in range(N):
        grad_u = mlp_ref(Xt[i], grads[i])
        jx = mlp_ref(Xt[i], jumpxs[i])
        jy = mlp_ref(jump_size[i], jumpy)
        jnorm = jnp.tanh(jnp.linalg.norm(jump_size[i], axis=1, keepdims=True))
        tj = jnp.sum(jx * (jy * jnorm - mc_mean * dt), axis=1, keepdims=True)
        bm = jnp.sum(grad_u * dBt[i], axis=1, keepdims=True)
        u = u - (r * u) * dt + bm + tj
    g = jnp.sum(Xt[N] ** 2, axis=1, keepdims=True)
    return u, g


# ----------------------------------------------------------------------------
if __name__ == "__main__":
    # Accurate f32 reference matmuls so the f32 kernel gate can be tight.
    jax.config.update("jax_default_matmul_precision", "highest")
    key = jax.random.PRNGKey(0)

    # Small, forward-consistent shapes.
    N, d, T = 4, 4, 1.0
    beta, r, mu = 1.5, 0.05, 0.1
    tensor_size, hidden_dim = 16, 32
    r_max = 50.0
    batch, sample_size = 8, 16
    dt = T / N
    # TODO(synk): eq.FPDE.cc (power-law normalization) unspecified; stand-in.
    cc = beta / (beta - 1.0)

    keys = jax.random.split(key, 8)
    grads = [init_fnn(k, d, d, hidden_dim) for k in jax.random.split(keys[0], N)]
    jumpxs = [init_fnn(k, d, tensor_size, 2 * tensor_size)
              for k in jax.random.split(keys[1], N)]
    jumpy = init_fnn(keys[2], d, tensor_size, 2 * tensor_size)
    u_param = jnp.float32(0.3)   # self.u parameter (torch.rand(1)) stand-in

    # TODO(synk): eq.FPDE.SDE / power_law internals unspecified; synthesized
    # here in plain JAX with matching output shapes.
    x0 = jax.random.normal(keys[3], (batch, d), jnp.float32)
    dBt = np.sqrt(dt) * jax.random.normal(keys[4], (N, batch, d), jnp.float32)
    jump_size = 0.1 * jax.random.normal(keys[5], (N, batch, d), jnp.float32)
    Xt_list = [x0]
    for i in range(N):
        Xt_list.append(Xt_list[-1] + mu * dt + dBt[i] + jump_size[i])
    Xt = jnp.stack(Xt_list)                      # [N+1, batch, d]

    uu = jax.random.uniform(keys[6], (sample_size, 1), jnp.float32)
    radius = (1.0 - uu * (1.0 - r_max ** (1.0 - beta))) ** (1.0 / (1.0 - beta))
    direction = jax.random.normal(keys[7], (sample_size, d), jnp.float32)
    direction = direction / jnp.linalg.norm(direction, axis=1, keepdims=True)
    mc_js = (radius * direction).astype(jnp.float32)

    # Ground-truth f32 reference.
    u0_ref = jnp.full((batch, 1), 1.0, jnp.float32) * u_param
    u_exp, g_exp = forward_ref(grads, jumpxs, jumpy, mc_js, Xt, dBt, jump_size,
                               u0_ref, N=N, dt=dt, r=r, cc=cc)

    # Closed-form decay (valid because f(u) = r*u is linear).
    decay = np.array([(1.0 - r * dt) ** (N - 1 - i) for i in range(N)],
                     np.float64)

    fwd = jax.jit(functools.partial(
        bsdet_forward, n=N, d=d, ts=tensor_size, hg=hidden_dim,
        dt=dt, r=r, cc=cc))

    # f32 packing: tight regression gate.  bf16 packing: MXU-friendly operands
    # (f32 accumulation) with a looser, bf16-appropriate sanity tolerance.
    for tag, dtype, rtol, atol in (("f32", jnp.float32, 1e-4, 1e-4),
                                   ("bf16", jnp.bfloat16, 5e-2, 1e-1)):
        wblk, wyp = pack_params(grads, jumpxs, jumpy, n=N, d=d, hg=hidden_dim,
                                ts=tensor_size, decay=decay, dtype=dtype)
        u_out, g_out = fwd(wblk, wyp, jumpy, u_param, mc_js, Xt, dBt, jump_size)
        jax.block_until_ready((u_out, g_out))
        np.testing.assert_allclose(np.asarray(u_out), np.asarray(u_exp),
                                   rtol=rtol, atol=atol)
        np.testing.assert_allclose(np.asarray(g_out), np.asarray(g_exp),
                                   rtol=1e-5, atol=1e-5)

    print("KERNEL_OK")
</pallas_src>

<mosaic_0001>
module attributes {stable_mosaic.version = 11 : i64} {
  func.func @bsde_kernel(%arg0: memref<8x16xf32, #tpu.memory_space<vmem>>, %arg1: memref<8x80xf32, #tpu.memory_space<vmem>>, %arg2: memref<32x4xf32, #tpu.memory_space<vmem>>, %arg3: memref<8x1xf32, #tpu.memory_space<vmem>>, %arg4: memref<552x256xf32, #tpu.memory_space<vmem>>, %arg5: memref<96x32xf32, #tpu.memory_space<vmem>>, %arg6: memref<8x1xf32, #tpu.memory_space<vmem>>) attributes {dimension_semantics = [], scalar_prefetch = 0 : i64, scratch_operands = 0 : i64, tpu.core_type = #tpu.core_type<tc>} {
    %c0 = arith.constant 0 : index
    %c0_0 = arith.constant 0 : index
    %0 = vector.load %arg0[%c0, %c0_0] : memref<8x16xf32, #tpu.memory_space<vmem>>, vector<8x16xf32>
    %c0_1 = arith.constant 0 : index
    %c0_2 = arith.constant 0 : index
    %1 = vector.load %arg4[%c0_1, %c0_2] : memref<552x256xf32, #tpu.memory_space<vmem>>, vector<16x256xf32>
    %cst = arith.constant dense<0.000000e+00> : vector<8x256xf32>
    %2 = tpu.matmul %0, %1, %cst {dimension_numbers = #tpu.dot_dimension_numbers<[1], [0], [0], [1], [0, 0, 1, 1], [], []>, precision = #tpu.contract_precision<fp32>} : vector<8x16xf32>, vector<16x256xf32>, vector<8x256xf32> -> vector<8x256xf32>
    %c528 = arith.constant 528 : index
    %c0_3 = arith.constant 0 : index
    %3 = vector.load %arg4[%c528, %c0_3] : memref<552x256xf32, #tpu.memory_space<vmem>>, vector<1x256xf32>
    %4 = vector.broadcast %3 : vector<1x256xf32> to vector<8x256xf32>
    %5 = arith.addf %2, %4 : vector<8x256xf32>
    %6 = math.tanh %5 : vector<8x256xf32>
    %c16 = arith.constant 16 : index
    %c0_4 = arith.constant 0 : index
    %7 = vector.load %arg4[%c16, %c0_4] : memref<552x256xf32, #tpu.memory_space<vmem>>, vector<256x256xf32>
    %cst_5 = arith.constant dense<0.000000e+00> : vector<8x256xf32>
    %8 = tpu.matmul %6, %7, %cst_5 {dimension_numbers = #tpu.dot_dimension_numbers<[1], [0], [0], [1], [0, 0, 1, 1], [], []>, precision = #tpu.contract_precision<fp32>} : vector<8x256xf32>, vector<256x256xf32>, vector<8x256xf32> -> vector<8x256xf32>
    %c536 = arith.constant 536 : index
    %c0_6 = arith.constant 0 : index
    %9 = vector.load %arg4[%c536, %c0_6] : memref<552x256xf32, #tpu.memory_space<vmem>>, vector<1x256xf32>
    %10 = vector.broadcast %9 : vector<1x256xf32> to vector<8x256xf32>
    %11 = arith.addf %8, %10 : vector<8x256xf32>
    %12 = math.tanh %11 : vector<8x256xf32>
    %c272 = arith.constant 272 : index
    %c0_7 = arith.constant 0 : index
    %13 = vector.load %arg4[%c272, %c0_7] : memref<552x256xf32, #tpu.memory_space<vmem>>, vector<256x80xf32>
    %cst_8 = arith.constant dense<0.000000e+00> : vector<8x80xf32>
    %14 = tpu.matmul %12, %13, %cst_8 {dimension_numbers = #tpu.dot_dimension_numbers<[1], [0], [0], [1], [0, 0, 1, 1], [], []>, precision = #tpu.contract_precision<fp32>} : vector<8x256xf32>, vector<256x80xf32>, vector<8x80xf32> -> vector<8x80xf32>
    %c544 = arith.constant 544 : index
    %c0_9 = arith.constant 0 : index
    %15 = vector.load %arg4[%c544, %c0_9] : memref<552x256xf32, #tpu.memory_space<vmem>>, vector<1x80xf32>
    %16 = vector.broadcast %15 : vector<1x80xf32> to vector<8x80xf32>
    %17 = arith.addf %14, %16 : vector<8x80xf32>
    %c0_10 = arith.constant 0 : index
    %c0_11 = arith.constant 0 : index
    %18 = vector.load %arg3[%c0_10, %c0_11] : memref<8x1xf32, #tpu.memory_space<vmem>>, vector<8x1xf32>
    %c0_12 = arith.constant 0 : index
    %c0_13 = arith.constant 0 : index
    %19 = vector.load %arg1[%c0_12, %c0_13] : memref<8x80xf32, #tpu.memory_space<vmem>>, vector<8x80xf32>
    %20 = arith.mulf %17, %19 : vector<8x80xf32>
    %cst_14 = arith.constant dense<0.000000e+00> : vector<8xf32>
    %21 = vector.multi_reduction <add>, %20, %cst_14 [1] : vector<8x80xf32> to vector<8xf32>
    %22 = vector.shape_cast %21 : vector<8xf32> to vector<8x1xf32>
    %23 = arith.addf %18, %22 : vector<8x1xf32>
    %c0_15 = arith.constant 0 : index
    %c0_16 = arith.constant 0 : index
    %24 = vector.load %arg2[%c0_15, %c0_16] : memref<32x4xf32, #tpu.memory_space<vmem>>, vector<32x4xf32>
    %c0_17 = arith.constant 0 : index
    %c0_18 = arith.constant 0 : index
    %25 = vector.load %arg5[%c0_17, %c0_18] : memref<96x32xf32, #tpu.memory_space<vmem>>, vector<4x32xf32>
    %cst_19 = arith.constant dense<0.000000e+00> : vector<32x32xf32>
    %26 = tpu.matmul %24, %25, %cst_19 {dimension_numbers = #tpu.dot_dimension_numbers<[1], [0], [0], [1], [0, 0, 1, 1], [], []>, precision = #tpu.contract_precision<fp32>} : vector<32x4xf32>, vector<4x32xf32>, vector<32x32xf32> -> vector<32x32xf32>
    %c72 = arith.constant 72 : index
    %c0_20 = arith.constant 0 : index
    %27 = vector.load %arg5[%c72, %c0_20] : memref<96x32xf32, #tpu.memory_space<vmem>>, vector<1x32xf32>
    %28 = vector.broadcast %27 : vector<1x32xf32> to vector<32x32xf32>
    %29 = arith.addf %26, %28 : vector<32x32xf32>
    %30 = math.tanh %29 : vector<32x32xf32>
    %c8 = arith.constant 8 : index
    %c0_21 = arith.constant 0 : index
    %31 = vector.load %arg5[%c8, %c0_21] : memref<96x32xf32, #tpu.memory_space<vmem>>, vector<32x32xf32>
    %cst_22 = arith.constant dense<0.000000e+00> : vector<32x32xf32>
    %32 = tpu.matmul %30, %31, %cst_22 {dimension_numbers = #tpu.dot_dimension_numbers<[1], [0], [0], [1], [0, 0, 1, 1], [], []>, precision = #tpu.contract_precision<fp32>} : vector<32x32xf32>, vector<32x32xf32>, vector<32x32xf32> -> vector<32x32xf32>
    %c80 = arith.constant 80 : index
    %c0_23 = arith.constant 0 : index
    %33 = vector.load %arg5[%c80, %c0_23] : memref<96x32xf32, #tpu.memory_space<vmem>>, vector<1x32xf32>
    %34 = vector.broadcast %33 : vector<1x32xf32> to vector<32x32xf32>
    %35 = arith.addf %32, %34 : vector<32x32xf32>
    %36 = math.tanh %35 : vector<32x32xf32>
    %c40 = arith.constant 40 : index
    %c0_24 = arith.constant 0 : index
    %37 = vector.load %arg5[%c40, %c0_24] : memref<96x32xf32, #tpu.memory_space<vmem>>, vector<32x16xf32>
    %cst_25 = arith.constant dense<0.000000e+00> : vector<32x16xf32>
    %38 = tpu.matmul %36, %37, %cst_25 {dimension_numbers = #tpu.dot_dimension_numbers<[1], [0], [0], [1], [0, 0, 1, 1], [], []>, precision = #tpu.contract_precision<fp32>} : vector<32x32xf32>, vector<32x16xf32>, vector<32x16xf32> -> vector<32x16xf32>
    %c88 = arith.constant 88 : index
    %c0_26 = arith.constant 0 : index
    %39 = vector.load %arg5[%c88, %c0_26] : memref<96x32xf32, #tpu.memory_space<vmem>>, vector<1x16xf32>
    %40 = vector.broadcast %39 : vector<1x16xf32> to vector<32x16xf32>
    %41 = arith.addf %38, %40 : vector<32x16xf32>
    %42 = arith.mulf %24, %24 : vector<32x4xf32>
    %cst_27 = arith.constant dense<0.000000e+00> : vector<32xf32>
    %43 = vector.multi_reduction <add>, %42, %cst_27 [1] : vector<32x4xf32> to vector<32xf32>
    %44 = vector.shape_cast %43 : vector<32xf32> to vector<32x1xf32>
    %45 = math.sqrt %44 : vector<32x1xf32>
    %46 = math.tanh %45 : vector<32x1xf32>
    %47 = vector.broadcast %46 : vector<32x1xf32> to vector<32x16xf32>
    %48 = arith.mulf %41, %47 : vector<32x16xf32>
    %49 = vector.extract_strided_slice %17 {offsets = [0, 16], sizes = [8, 64], strides = [1, 1]} : vector<8x80xf32> to vector<8x64xf32>
    %50 = vector.extract_strided_slice %49 {offsets = [0, 0], sizes = [8, 16], strides = [1, 1]} : vector<8x64xf32> to vector<8x16xf32>
    %51 = vector.extract_strided_slice %48 {offsets = [0, 0], sizes = [8, 16], strides = [1, 1]} : vector<32x16xf32> to vector<8x16xf32>
    %52 = arith.mulf %50, %51 : vector<8x16xf32>
    %cst_28 = arith.constant dense<0.000000e+00> : vector<8xf32>
    %53 = vector.multi_reduction <add>, %52, %cst_28 [1] : vector<8x16xf32> to vector<8xf32>
    %54 = vector.shape_cast %53 : vector<8xf32> to vector<8x1xf32>
    %55 = arith.addf %23, %54 : vector<8x1xf32>
    %56 = vector.extract_strided_slice %49 {offsets = [0, 16], sizes = [8, 16], strides = [1, 1]} : vector<8x64xf32> to vector<8x16xf32>
    %57 = vector.extract_strided_slice %48 {offsets = [8, 0], sizes = [8, 16], strides = [1, 1]} : vector<32x16xf32> to vector<8x16xf32>
    %58 = arith.mulf %56, %57 : vector<8x16xf32>
    %cst_29 = arith.constant dense<0.000000e+00> : vector<8xf32>
    %59 = vector.multi_reduction <add>, %58, %cst_29 [1] : vector<8x16xf32> to vector<8xf32>
    %60 = vector.shape_cast %59 : vector<8xf32> to vector<8x1xf32>
    %61 = arith.addf %55, %60 : vector<8x1xf32>
    %62 = vector.extract_strided_slice %49 {offsets = [0, 32], sizes = [8, 16], strides = [1, 1]} : vector<8x64xf32> to vector<8x16xf32>
    %63 = vector.extract_strided_slice %48 {offsets = [16, 0], sizes = [8, 16], strides = [1, 1]} : vector<32x16xf32> to vector<8x16xf32>
    %64 = arith.mulf %62, %63 : vector<8x16xf32>
    %cst_30 = arith.constant dense<0.000000e+00> : vector<8xf32>
    %65 = vector.multi_reduction <add>, %64, %cst_30 [1] : vector<8x16xf32> to vector<8xf32>
    %66 = vector.shape_cast %65 : vector<8xf32> to vector<8x1xf32>
    %67 = arith.addf %61, %66 : vector<8x1xf32>
    %68 = vector.extract_strided_slice %49 {offsets = [0, 48], sizes = [8, 16], strides = [1, 1]} : vector<8x64xf32> to vector<8x16xf32>
    %69 = vector.extract_strided_slice %48 {offsets = [24, 0], sizes = [8, 16], strides = [1, 1]} : vector<32x16xf32> to vector<8x16xf32>
    %70 = arith.mulf %68, %69 : vector<8x16xf32>
    %cst_31 = arith.constant dense<0.000000e+00> : vector<8xf32>
    %71 = vector.multi_reduction <add>, %70, %cst_31 [1] : vector<8x16xf32> to vector<8xf32>
    %72 = vector.shape_cast %71 : vector<8xf32> to vector<8x1xf32>
    %73 = arith.addf %67, %72 : vector<8x1xf32>
    %c0_32 = arith.constant 0 : index
    %c0_33 = arith.constant 0 : index
    %74 = vector.load %arg6[%c0_32, %c0_33] : memref<8x1xf32, #tpu.memory_space<vmem>>, vector<8x1xf32>
    tpu.vector_store %arg6[%c0_32, %c0_33], %73 {strides = array<i32>} : memref<8x1xf32, #tpu.memory_space<vmem>>, vector<8x1xf32>,
    return
  }
}

</mosaic_0001>

<bundles_post_ra>
// kernel: bsdet_forward.1
= control target key start
LH: loop header
LB: loop body
LE: loop exit
PB: predicated region body
PF: predicated region fallthrough
CT: control target
= control target key end

     0   :  { %11 = vsyncpa [#allocation3], 0  ;;  %s6231_s21 = smov [#allocation2]   ;;  %s7790_s0 = inlined_call_operand.vmem [shape: f32[8,16], index: 0, kind: input, shape index: {}]   ;;  %s7791_s1 = inlined_call_operand.vmem [shape: f32[8,80], index: 1, kind: input, shape index: {}]   ;;  %s7792_s2 = inlined_call_operand.vmem [shape: f32[32,4], index: 2, kind: input, shape index: {}]   ;;  %s7793_s3 = inlined_call_operand.vmem [shape: f32[8,1], index: 3, kind: input, shape index: {}]   ;;  %s7794_s4 = inlined_call_operand.hbm [shape: f32[552,256], index: 4, kind: input, shape index: {}]   ;;  %s7795_s5 = inlined_call_operand.vmem [shape: f32[96,32], index: 5, kind: input, shape index: {}]   ;;  %s7796_s6 = inlined_call_operand.vmem [shape: f32[8,1], index: 6, kind: output, shape index: {}]  }
   0x1   :  { %s25_s22 = sshll.u32 %s6231_s21, 4  ;;  %s6207_s25 = scalar_lea.hbm %s7794_s4, 17664  ;;  %s26_s22 = int_to_ptr.vmem [resolvable:$true] %s25_s22 }
   0x2   :  { %p6208_p0 = scmp.ne.s32.totalorder %s7794_s4, %s6207_s25  ;;  %p6211_p1 = scmp.lt.u32.totalorder %s6207_s25, %s7794_s4 }
   0x4   :  { %p6213_p2 = pnand %p6211_p1, %p6208_p0 }
   0x6   :  { %6216 = shalt.err (!%p6213_p2)
}
   0x7   :  { %s6217_s30 = scalar_lea.vmem %s26_s22, 17664  ;;  %p6222_p4 = scmp.lt.s32.totalorder %s26_s22, %s26_s22 }
   0x8   :  { %p6218_p3 = scmp.ne.s32.totalorder %s26_s22, %s6217_s30  ;;  %p6223_p5 = scmp.lt.s32.totalorder %s6217_s30, %s6217_s30 }
   0xa   :  { %p6224_p6 = por %p6223_p5, %p6222_p4 }
   0xc   :  { %p6225_p7 = pnand %p6224_p6, %p6218_p3 }
   0xe   :  { %6228 = shalt.err (!%p6225_p7)
}
   0xf   :  { %s6232_s7 = smov 256   ;;  %s6233_s8 = smov 16  }
  0x10   :  { %31 = dma.hbm_to_vmem [thread:$0]  %s7794_s4, 17664, %s26_s22, [#allocation3], %s6232_s7, %s6232_s7, %s6233_s8  }
  0x11   :  { %6229 = dma.done.wait [#allocation3], 17664  }
  0x12   :  { %6230 = vsyncadd [#allocation3], 4294949632  ;;  %v7800_v0 = vmov 0.0   ;;  %vm55_vm0 = vcmask 130048   ;;  %v39_v1 = vld [vmem:[#allocation2 + $0x8] sm:$0xff]  ;;  %v41_v2 = vld [vmem:[#allocation2 + $0x18] sm:$0xff] }
  0x13   :  { %127 = vmatprep.mubr.f32.mxu0 %v7800_v0  ;;  %v38_v3 = vld [vmem:[#allocation2] sm:$0xff]  ;;  %v59_v4 = vand.u32 4294901760, %v39_v1  ;;  %v63_v5 = vand.u32 4294901760, %v41_v2  ;;  %v40_v6 = vld [vmem:[#allocation2 + $0x10] sm:$0xff]  ;;  %v553_v9 = vld [vmem:[#allocation2 + $0x28] sm:$0xff]  ;;  %vm2828_vm1 = vcmask 31744  }
  0x14   :  { %v61_v7 = vand.u32 4294901760, %v38_v3  ;;  %v37_v8 = vld [vmem:[%s7790_s0] sm:$0xff]  ;;  %v65_v10 = vand.u32 4294901760, %v40_v6  ;;  %v555_v12 = vld [vmem:[#allocation2 + $0x38] sm:$0xff]  ;;  %v629_v13 = vand.u32 4294901760, %v553_v9  ;;  %v554_v32 = vld [vmem:[#allocation2 + $0x30] sm:$0xff] }
  0x15   :  { %v57_v11 = vsel %vm55_vm0, %v37_v8, 0  ;;  %v6294_v14 = vpack.c.bf16 %v63_v5, %v59_v4  ;;  %v6296_v15 = vsub.f32 %v39_v1, %v59_v4  ;;  %v6298_v16 = vsub.f32 %v41_v2, %v63_v5  ;;  %v552_v31 = vld [vmem:[#allocation2 + $0x20] sm:$0xff]  ;;  %v557_v37 = vld [vmem:[#allocation2 + $0x48] sm:$0xff]  ;;  %v559_v38 = vld [vmem:[#allocation2 + $0x58] sm:$0xff]  ;;  %s6235_s17 = smov 32   ;;  %s6237_s18 = smov 64  }
  0x16   :  { %v6300_v17 = vsub.f32 %v38_v3, %v61_v7  ;;  %v6302_v18 = vpack.c.bf16 %v65_v10, %v61_v7  ;;  %v6304_v19 = vsub.f32 %v40_v6, %v65_v10  ;;  %v6306_v20 = vand.u32 4294901760, %v57_v11  ;;  %v556_v39 = vld [vmem:[#allocation2 + $0x40] sm:$0xff]  ;;  %v558_v51 = vld [vmem:[#allocation2 + $0x50] sm:$0xff]  ;;  %v561_v53 = vld [vmem:[#allocation2 + $0x68] sm:$0xff]  ;;  %s6238_s19 = smov 96   ;;  %s6239_s20 = smov 112  }
  0x17   :  { %v633_v21 = vand.u32 4294901760, %v555_v12  ;;  %5366 = vmatprep.subr.bf16.mxu0 %v6294_v14  ;;  %v7803_v22 = vand.u32 4294901760, %v6296_v15  ;;  %v7802_v23 = vand.u32 4294901760, %v6298_v16  ;;  %v5373_v35 = vpack.c.bf16 %v6298_v16, %v6296_v15  ;;  %v563_v54 = vld [vmem:[#allocation2 + $0x78] sm:$0xff]  ;;  %v560_v59 = vld [vmem:[#allocation2 + $0x60] sm:$0xff]  ;;  %v562_v60 = vld [vmem:[#allocation2 + $0x70] sm:$0xff] }
  0x18   :  { %v7799_v24 = vand.u32 4294901760, %v6300_v17  ;;  %5368 = vmatpush1.bf16.msra.mxu0 %v6302_v18  ;;  %v6314_v25 = vsub.f32 %v57_v11, %v6306_v20  ;;  %v7798_v26 = vand.u32 4294901760, %v6304_v19  ;;  %v6335_v36 = vsub.f32 %v553_v9, %v629_v13  ;;  %v565_v61 = vld [vmem:[#allocation2 + $0x88] sm:$0xff]  ;;  %v567_v3 = vld [vmem:[#allocation2 + $0x98] sm:$0xff]  ;;  %v564_v8 = vld [vmem:[#allocation2 + $0x80] sm:$0xff] }
  0x19   :  { %v6317_v27 = vpack.c.bf16 %v633_v21, %v629_v13  ;;  %v142_v28 = vsub.f32 %v6296_v15, %v7803_v22  ;;  %v154_v29 = vsub.f32 %v6298_v16, %v7802_v23  ;;  %v6337_v43 = vsub.f32 %v555_v12, %v633_v21 }
  0x1a   :  { %v148_v30 = vsub.f32 %v6300_v17, %v7799_v24  ;;  %v7797_v33 = vand.u32 4294901760, %v6314_v25  ;;  %v160_v34 = vsub.f32 %v6304_v19, %v7798_v26  ;;  %v631_v46 = vand.u32 4294901760, %v552_v31  ;;  %v580_v24 = vld [vmem:[#allocation2 + $0x100] sm:$0xff] }
  0x1b   :  { %8078 = vst [vmem:[#allocation5_spill] sm:$0xff] %v6317_v27  ;;  %5390 = vmatprep.subr.bf16.mxu1 %v6317_v27  ;;  %v143_v40 = vand.u32 4294901760, %v142_v28  ;;  %v155_v41 = vand.u32 4294901760, %v154_v29  ;;  %v635_v47 = vand.u32 4294901760, %v554_v32  ;;  %v637_v49 = vand.u32 4294901760, %v557_v37 }
  0x1c   :  { %v149_v42 = vand.u32 4294901760, %v148_v30  ;;  %v131_v44 = vsub.f32 %v6314_v25, %v7797_v33  ;;  %v161_v45 = vand.u32 4294901760, %v160_v34  ;;  %v641_v50 = vand.u32 4294901760, %v559_v38  ;;  %v566_v30 = vld [vmem:[#allocation2 + $0x90] sm:$0xff] }
  0x1d   :  { %v5369_v48 = vpack.c.bf16 %v155_v41, %v143_v40  ;;  %v639_v52 = vand.u32 4294901760, %v556_v39  ;;  %v6342_v57 = vpack.c.bf16 %v635_v47, %v631_v46  ;;  %v6344_v58 = vsub.f32 %v552_v31, %v631_v46  ;;  %v569_v31 = vld [vmem:[#allocation2 + $0xa8] sm:$0xff]  ;;  %v570_v40 = vld [vmem:[#allocation2 + $0xb0] sm:$0xff] }
  0x1e   :  { %v132_v55 = vand.u32 4294901760, %v131_v44  ;;  %v5371_v56 = vpack.c.bf16 %v161_v45, %v149_v42  ;;  %v6346_v62 = vsub.f32 %v554_v32, %v635_v47  ;;  %v6348_v63 = vpack.c.bf16 %v641_v50, %v637_v49  ;;  %v571_v32 = vld [vmem:[#allocation2 + $0xb8] sm:$0xff]  ;;  %v573_v46 = vld [vmem:[#allocation2 + $0xc8] sm:$0xff] }
  0x1f   :  { %8079 = vst [vmem:[#allocation6_spill] sm:$0xff] %v6342_v57  ;;  %5370 = vmatprep.subr.bf16.mxu0 %v5369_v48  ;;  %v6350_v1 = vsub.f32 %v557_v37, %v637_v49  ;;  %v6352_v2 = vsub.f32 %v559_v38, %v641_v50  ;;  %5392 = vmatpush1.bf16.msra.mxu1 %v6342_v57  ;;  %v643_v4 = vand.u32 4294901760, %v558_v51  ;;  %v645_v6 = vand.u32 4294901760, %v561_v53  ;;  %v575_v47 = vld [vmem:[#allocation2 + $0xd8] sm:$0xff] }
  0x20   :  { %8080 = vst [vmem:[#allocation7_spill] sm:$0xff] %v6348_v63  ;;  %133 = vmatmul.mubr.f32.vlgmr.msra.gmra.mrb[0].mxu0 %v132_v55  ;;  %v6355_v5 = vsub.f32 %v556_v39, %v639_v52  ;;  %v649_v7 = vand.u32 4294901760, %v563_v54  ;;  %v5375_v9 = vpack.c.bf16 %v6304_v19, %v6300_v17  ;;  %v647_v10 = vand.u32 4294901760, %v560_v59  ;;  %5394 = vmatprep.subr.bf16.mxu1 %v6348_v63 }
  0x21   :  { %5372 = vmatpush1.bf16.msra.mxu0 %v5371_v56  ;;  %223 = vmatprep.mubr.f32.mxu0 %v7800_v0  ;;  %v651_v11 = vand.u32 4294901760, %v562_v60  ;;  %v653_v12 = vand.u32 4294901760, %v565_v61  ;;  %v6361_v13 = vpack.c.bf16 %v643_v4, %v639_v52  ;;  %v6363_v21 = vsub.f32 %v558_v51, %v643_v4  ;;  %v572_v52 = vld [vmem:[#allocation2 + $0xc0] sm:$0xff]  ;;  %v574_v56 = vld [vmem:[#allocation2 + $0xd0] sm:$0xff]  ;;  %v6391_v4 = vld [vmem:[#allocation2 + $0xe8] sm:$0xff] }
  0x22   :  { %8081 = vst [vmem:[#allocation8_spill] sm:$0xff] %v6355_v5  ;;  %5374 = vmatprep.subr.bf16.mxu0 %v5373_v35  ;;  %v6365_v28 = vpack.c.bf16 %v649_v7, %v645_v6  ;;  %v657_v29 = vand.u32 4294901760, %v567_v3  ;;  %v6367_v34 = vsub.f32 %v561_v53, %v645_v6  ;;  %v6369_v37 = vsub.f32 %v563_v54, %v649_v7  ;;  %v568_v35 = vld [vmem:[#allocation2 + $0xa0] sm:$0xff]  ;;  %v6393_v6 = vld [vmem:[#allocation2 + $0xf8] sm:$0xff] }
  0x23   :  { %8082 = vst [vmem:[#allocation9_spill] sm:$0xff] %v6361_v13  ;;  %8083 = vst [vmem:[#allocation10_spill] sm:$0xff] %v6363_v21  ;;  %v6371_v38 = vsub.f32 %v560_v59, %v647_v10  ;;  %v655_v39 = vand.u32 4294901760, %v564_v8  ;;  %5396 = vmatpush1.bf16.msra.mxu1 %v6361_v13  ;;  %v6374_v41 = vpack.c.bf16 %v651_v11, %v647_v10  ;;  %v659_v48 = vand.u32 4294901760, %v566_v30 }
  0x24   :  { %8084 = vst [vmem:[#allocation11_spill] sm:$0xff] %v6365_v28  ;;  %8085 = vst [vmem:[#allocation12_spill] sm:$0xff] %v6367_v34  ;;  %v6376_v42 = vsub.f32 %v562_v60, %v651_v11  ;;  %v6378_v44 = vsub.f32 %v565_v61, %v653_v12  ;;  %v6380_v45 = vsub.f32 %v567_v3, %v657_v29  ;;  %5398 = vmatprep.subr.bf16.mxu1 %v6365_v28  ;;  %vm2841_vm2 = vcmask 1043456  }
  0x25   :  { %8086 = vst [vmem:[#allocation13_spill] sm:$0xff] %v6369_v37  ;;  %8087 = vst [vmem:[#allocation14_spill] sm:$0xff] %v6371_v38  ;;  %v6383_v49 = vsub.f32 %v564_v8, %v655_v39  ;;  %v661_v50 = vand.u32 4294901760, %v569_v31  ;;  %v665_v51 = vand.u32 4294901760, %v571_v32  ;;  %v6385_v53 = vpack.c.bf16 %v657_v29, %v653_v12  ;;  %v6403_v12 = vld [vmem:[#allocation2 + $0xe0] sm:$0xff]  ;;  %v6405_v29 = vld [vmem:[#allocation2 + $0xf0] sm:$0xff] }
  0x26   :  { %8088 = vst [vmem:[#allocation15_spill] sm:$0xff] %v6374_v41  ;;  %8089 = vst [vmem:[#allocation16_spill] sm:$0xff] %v6376_v42  ;;  %v663_v54 = vand.u32 4294901760, %v568_v35  ;;  %v667_v55 = vand.u32 4294901760, %v570_v40  ;;  %v6387_v59 = vsub.f32 %v566_v30, %v659_v48  ;;  %v669_v61 = vand.u32 4294901760, %v573_v46 }
  0x27   :  { %8090 = vst [vmem:[#allocation17_spill] sm:$0xff] %v6378_v44  ;;  %8091 = vst [vmem:[#allocation18_spill] sm:$0xff] %v6380_v45  ;;  %v6389_v60 = vsub.f32 %v569_v31, %v661_v50  ;;  %v673_v3 = vand.u32 4294901760, %v575_v47  ;;  %5400 = vmatpush1.bf16.msra.mxu1 %v6374_v41  ;;  %v6397_v7 = vpack.c.bf16 %v659_v48, %v655_v39  ;;  %v671_v11 = vand.u32 4294901760, %v572_v52  ;;  %v6414_v48 = vld [vmem:[#allocation2 + $0x108] sm:$0xff] }
  0x28   :  { %8092 = vst [vmem:[#allocation19_spill] sm:$0xff] %v6383_v49  ;;  %8093 = vst [vmem:[#allocation20_spill] sm:$0xff] %v6385_v53  ;;  %225 = vmatmul.mubr.f32.vlgmr.msra.gmra.mrb[0].mxu0 %v6306_v20  ;;  %v6399_v8 = vsub.f32 %v571_v32, %v665_v51  ;;  %v6401_v10 = vsub.f32 %v568_v35, %v663_v54  ;;  %v6408_v30 = vpack.c.bf16 %v665_v51, %v661_v50  ;;  %v583_v51 = vld [vmem:[#allocation2 + $0x118] sm:$0xff]  ;;  %vm3433_vm3 = vcmask 261120  }
  0x29   :  { %8094 = vst [vmem:[#allocation21_spill] sm:$0xff] %v6387_v59  ;;  %8095 = vst [vmem:[#allocation22_spill] sm:$0xff] %v6389_v60  ;;  %5376 = vmatpush1.bf16.msra.mxu0 %v5375_v9  ;;  %303 = vmatprep.mubr.f32.mxu0 %v7800_v0  ;;  %v6410_v31 = vsub.f32 %v570_v40, %v667_v55  ;;  %v6412_v33 = vsub.f32 %v573_v46, %v669_v61  ;;  %v675_v39 = vand.u32 4294901760, %v574_v56  ;;  %v582_v0 = vld [vmem:[#allocation2 + $0x110] sm:$0xff]  ;;  %vm2813_vm12 = vcmask 654336  }
  0x2a   :  { %8096 = vst [vmem:[#allocation23_spill] sm:$0xff] %v6397_v7  ;;  %8097 = vst [vmem:[#allocation24_spill] sm:$0xff] %v6399_v8  ;;  %5378 = vmatprep.subr.bf16.mxu0 %v6294_v14  ;;  %5402 = vmatprep.subr.bf16.mxu1 %v6385_v53  ;;  %v6418_v32 = vsub.f32 %v575_v47, %v673_v3  ;;  %v6420_v35 = vsub.f32 %v572_v52, %v671_v11  ;;  %v677_v9 = vand.u32 4294901760, %v6391_v4  ;;  %v587_v53 = vld [vmem:[#allocation2 + $0x138] sm:$0xff]  ;;  %vm4803_vm13 = vcmask 7168  }
  0x2b   :  { %8098 = vst [vmem:[#allocation25_spill] sm:$0xff] %v6401_v10  ;;  %8099 = vst [vmem:[#allocation26_spill] sm:$0xff] %v6408_v30  ;;  %v681_v50 = vand.u32 4294901760, %v6393_v6  ;;  %v6424_v40 = vsub.f32 %v574_v56, %v675_v39  ;;  %v679_v46 = vand.u32 4294901760, %v6403_v12  ;;  %v683_v26 = vand.u32 4294901760, %v6405_v29  ;;  %5404 = vmatpush1.bf16.msra.mxu1 %v6397_v7  ;;  %v585_v56 = vld [vmem:[#allocation2 + $0x128] sm:$0xff] }
  0x2c   :  { %8100 = vst [vmem:[#allocation27_spill] sm:$0xff] %v6410_v31  ;;  %8101 = vst [vmem:[#allocation28_spill] sm:$0xff] %v6412_v33  ;;  %v6429_v23 = vpack.c.bf16 %v667_v55, %v663_v54  ;;  %v6432_v47 = vsub.f32 %v6391_v4, %v677_v9  ;;  %v685_v22 = vand.u32 4294901760, %v6414_v48  ;;  %v8108_v41 = vand.u32 4294901760, %v6296_v15  ;;  %5406 = vmatprep.subr.bf16.mxu1 %v6408_v30  ;;  %v586_v7 = vld [vmem:[#allocation2 + $0x130] sm:$0xff] }
  0x2d   :  { %8102 = vst [vmem:[#allocation29_spill] sm:$0xff] %v6418_v32  ;;  %8103 = vst [vmem:[#allocation30_spill] sm:$0xff] %v6420_v35  ;;  %v6435_v52 = vsub.f32 %v6393_v6, %v681_v50  ;;  %v8109_v28 = vand.u32 4294901760, %v6298_v16  ;;  %v6444_v54 = vsub.f32 %v6403_v12, %v679_v46  ;;  %v6447_v55 = vsub.f32 %v6405_v29, %v683_v26  ;;  %v584_v6 = vld [vmem:[#allocation2 + $0x120] sm:$0xff]  ;;  %v589_v16 = vld [vmem:[#allocation2 + $0x148] sm:$0xff] }
  0x2e   :  { %8104 = vst [vmem:[#allocation31_spill] sm:$0xff] %v6424_v40  ;;  %8105 = vst [vmem:[#allocation32_spill] sm:$0xff] %v6429_v23  ;;  %v689_v4 = vand.u32 4294901760, %v583_v51  ;;  %v6449_v63 = vpack.c.bf16 %v673_v3, %v669_v61  ;;  %v6452_v57 = vsub.f32 %v6414_v48, %v685_v22  ;;  %v687_v15 = vand.u32 4294901760, %v580_v24 }
  0x2f   :  { %8106 = vst [vmem:[#allocation33_spill] sm:$0xff] %v6432_v47  ;;  %8107 = vst [vmem:[#allocation34_spill] sm:$0xff] %v6435_v52  ;;  %v5381_v13 = vpack.c.bf16 %v8109_v28, %v8108_v41  ;;  %v691_v27 = vand.u32 4294901760, %v582_v0  ;;  %v6454_v28 = vpack.c.bf16 %v675_v39, %v671_v11  ;;  %v693_v12 = vand.u32 4294901760, %v585_v56  ;;  %5408 = vmatpush1.bf16.msra.mxu1 %v6429_v23 }
  0x30   :  { %8110 = vst [vmem:[#allocation35_spill] sm:$0xff] %v6444_v54  ;;  %8111 = vst [vmem:[#allocation36_spill] sm:$0xff] %v6447_v55  ;;  %v6456_v41 = vsub.f32 %v583_v51, %v689_v4  ;;  %v697_v30 = vand.u32 4294901760, %v587_v53  ;;  %v591_v54 = vld [vmem:[#allocation2 + $0x158] sm:$0xff]  ;;  %306 = vmatmul.mubr.f32.vlgmr.msra.gmra.mrb[0].mxu0 %v6314_v25  ;;  %v6460_v29 = vsub.f32 %v580_v24, %v687_v15  ;;  %v695_v3 = vand.u32 4294901760, %v584_v6  ;;  %v590_v55 = vld [vmem:[#allocation2 + $0x150] sm:$0xff] }
  0x31   :  { %8112 = vst [vmem:[#allocation37_spill] sm:$0xff] %v6449_v63  ;;  %8113 = vst [vmem:[#allocation38_spill] sm:$0xff] %v6452_v57  ;;  %v6462_v61 = vsub.f32 %v582_v0, %v691_v27  ;;  %v699_v48 = vand.u32 4294901760, %v586_v7  ;;  %v588_v57 = vld [vmem:[#allocation2 + $0x140] sm:$0xff]  ;;  %5380 = vmatpush1.bf16.msra.mxu0 %v6302_v18  ;;  %v8118_v11 = vmov 0.0   ;;  %v6466_v39 = vpack.c.bf16 %v681_v50, %v677_v9  ;;  %5410 = vmatprep.subr.bf16.mxu1 %v6449_v63 }
  0x32   :  { %8114 = vst [vmem:[#allocation39_spill] sm:$0xff] %v6454_v28  ;;  %8115 = vst [vmem:[#allocation40_spill] sm:$0xff] %v6456_v41  ;;  %380 = vmatprep.mubr.f32.mxu0 %v8118_v11  ;;  %v6468_v51 = vsub.f32 %v585_v56, %v693_v12  ;;  %v6470_v41 = vsub.f32 %v587_v53, %v697_v30  ;;  %v701_v52 = vand.u32 4294901760, %v589_v16  ;;  %5382 = vmatprep.subr.bf16.mxu0 %v5381_v13 }
  0x33   :  { %8116 = vst [vmem:[#allocation41_spill] sm:$0xff] %v6460_v29  ;;  %8117 = vst [vmem:[#allocation42_spill] sm:$0xff] %v6462_v61  ;;  %v6473_v0 = vsub.f32 %v584_v6, %v695_v3  ;;  %v6475_v24 = vsub.f32 %v586_v7, %v699_v48  ;;  %v705_v23 = vand.u32 4294901760, %v591_v54  ;;  %v703_v29 = vand.u32 4294901760, %v588_v57  ;;  %5412 = vmatpush1.bf16.msra.mxu1 %v6454_v28 }
  0x34   :  { %8119 = vst [vmem:[#allocation43_spill] sm:$0xff] %v6466_v39  ;;  %8120 = vst [vmem:[#allocation44_spill] sm:$0xff] %v6468_v51  ;;  %v6477_v61 = vsub.f32 %v589_v16, %v701_v52  ;;  %v707_v47 = vand.u32 4294901760, %v590_v55  ;;  %v6480_v9 = vpack.c.bf16 %v683_v26, %v679_v46  ;;  %v8127_v53 = vand.u32 4294901760, %v6300_v17  ;;  %5414 = vmatprep.subr.bf16.mxu1 %v6466_v39  ;;  %v610_v51 = vld [vmem:[#allocation2 + $0x1f0] sm:$0xff] }
  0x35   :  { %8121 = vst [vmem:[#allocation45_spill] sm:$0xff] %v6470_v41  ;;  %8122 = vst [vmem:[#allocation46_spill] sm:$0xff] %v6473_v0  ;;  %v6482_v50 = vsub.f32 %v591_v54, %v705_v23  ;;  %v8128_v13 = vand.u32 4294901760, %v6304_v19  ;;  %v6489_v7 = vsub.f32 %v588_v57, %v703_v29  ;;  %v6493_v16 = vpack.c.bf16 %v689_v4, %v685_v22  ;;  %v611_v0 = vld [vmem:[#allocation2 + $0x1f8] sm:$0xff]  ;;  %v608_v41 = vld [vmem:[#allocation2 + $0x1e0] sm:$0xff] }
  0x36   :  { %8123 = vst [vmem:[#allocation47_spill] sm:$0xff] %v6475_v24  ;;  %8124 = vst [vmem:[#allocation48_spill] sm:$0xff] %v6477_v61  ;;  %v6491_v6 = vsub.f32 %v590_v55, %v707_v47  ;;  %v8132_v63 = vand.u32 4294901760, %v6314_v25  ;;  %v6498_v26 = vpack.c.bf16 %v691_v27, %v687_v15  ;;  %v6501_v17 = vpack.c.bf16 %v697_v30, %v693_v12  ;;  %v595_v27 = vld [vmem:[#allocation2 + $0x178] sm:$0xff]  ;;  %v594_v30 = vld [vmem:[#allocation2 + $0x170] sm:$0xff] }
  0x37   :  { %8125 = vst [vmem:[#allocation49_spill] sm:$0xff] %v6480_v9  ;;  %8126 = vst [vmem:[#allocation50_spill] sm:$0xff] %v6482_v50  ;;  %v5383_v56 = vpack.c.bf16 %v8128_v13, %v8127_v53  ;;  %5416 = vmatpush1.bf16.msra.mxu1 %v6480_v9  ;;  %v6506_v19 = vpack.c.bf16 %v699_v48, %v695_v3  ;;  %v6509_v22 = vpack.c.bf16 %v705_v23, %v701_v52  ;;  %v599_v55 = vld [vmem:[#allocation2 + $0x198] sm:$0xff]  ;;  %v596_v12 = vld [vmem:[#allocation2 + $0x180] sm:$0xff] }
  0x38   :  { %8129 = vst [vmem:[#allocation51_spill] sm:$0xff] %v6489_v7  ;;  %8130 = vst [vmem:[#allocation52_spill] sm:$0xff] %v6491_v6  ;;  %384 = vmatmul.mubr.f32.vlgmr.msra.gmra.mrb[0].mxu0 %v8132_v63  ;;  %5418 = vmatprep.subr.bf16.mxu1 %v6493_v16  ;;  %v6513_v25 = vpack.c.bf16 %v707_v47, %v703_v29  ;;  %v713_v57 = vand.u32 4294901760, %v595_v27  ;;  %v592_v63 = vld [vmem:[#allocation2 + $0x160] sm:$0xff]  ;;  %v715_v52 = vand.u32 4294901760, %v594_v30  ;;  %v721_v15 = vand.u32 4294901760, %v599_v55 }
  0x39   :  { %8131 = vst [vmem:[#allocation53_spill] sm:$0xff] %v6493_v16  ;;  %8133 = vst [vmem:[#allocation54_spill] sm:$0xff] %v6498_v26  ;;  %5384 = vmatpush1.bf16.msra.mxu0 %v5383_v56  ;;  %466 = vmatprep.mubr.f32.mxu0 %v8118_v11  ;;  %v711_v46 = vand.u32 4294901760, %v592_v63  ;;  %v719_v29 = vand.u32 4294901760, %v596_v12  ;;  %v601_v53 = vld [vmem:[#allocation2 + $0x1a8] sm:$0xff]  ;;  %v603_v13 = vld [vmem:[#allocation2 + $0x1b8] sm:$0xff] }
  0x3a   :  { %8134 = vst [vmem:[#allocation55_spill] sm:$0xff] %v6501_v17  ;;  %5386 = vmatprep.subr.bf16.mxu0 %v6294_v14  ;;  %8135 = vst [vmem:[#allocation56_spill] sm:$0xff] %v6506_v19  ;;  %v593_v14 = vld [vmem:[#allocation2 + $0x168] sm:$0xff]  ;;  %v725_v56 = vand.u32 4294901760, %v601_v53  ;;  %v607_v9 = vld [vmem:[#allocation2 + $0x1d8] sm:$0xff]  ;;  %v745_v40 = vand.u32 4294901760, %v611_v0  ;;  %v6550_v10 = vsub.f32 %v594_v30, %v715_v52  ;;  %v6554_v60 = vsub.f32 %v599_v55, %v721_v15 }
  0x3b   :  { %5420 = vmatpush1.bf16.msra.mxu1 %v6498_v26  ;;  %8136 = vst [vmem:[#allocation57_spill] sm:$0xff] %v6509_v22  ;;  %8137 = vst [vmem:[#allocation58_spill] sm:$0xff] %v6513_v25  ;;  %v709_v23 = vand.u32 4294901760, %v593_v14  ;;  %v6522_v54 = vpack.c.bf16 %v715_v52, %v711_v46  ;;  %v605_v16 = vld [vmem:[#allocation2 + $0x1c8] sm:$0xff]  ;;  %v737_v28 = vand.u32 4294901760, %v607_v9  ;;  %v604_v6 = vld [vmem:[#allocation2 + $0x1c0] sm:$0xff]  ;;  %v6548_v31 = vsub.f32 %v592_v63, %v711_v46 }
  0x3c   :  { %5422 = vmatprep.subr.bf16.mxu1 %v6501_v17  ;;  %v733_v39 = vand.u32 4294901760, %v605_v16  ;;  %v735_v7 = vand.u32 4294901760, %v604_v6  ;;  %v609_v24 = vld [vmem:[#allocation2 + $0x1e8] sm:$0xff]  ;;  %v743_v35 = vand.u32 4294901760, %v608_v41  ;;  %v747_v32 = vand.u32 4294901760, %v610_v51  ;;  %v614_v55 = vld [vmem:[#allocation2 + $0x210] sm:$0xff] }
  0x3d   :  { %v6520_v47 = vpack.c.bf16 %v713_v57, %v709_v23  ;;  %8139 = vst [vmem:[#allocation60_spill] sm:$0xff] %v6522_v54  ;;  %v6544_v33 = vsub.f32 %v593_v14, %v709_v23  ;;  %v613_v23 = vld [vmem:[#allocation2 + $0x208] sm:$0xff]  ;;  %v6570_v30 = vsub.f32 %v607_v9, %v737_v28 }
  0x3e   :  { %v6538_v61 = vpack.c.bf16 %v737_v28, %v733_v39  ;;  %v6568_v63 = vsub.f32 %v605_v16, %v733_v39  ;;  %v6572_v46 = vsub.f32 %v604_v6, %v735_v7  ;;  %v6586_v39 = vsub.f32 %v610_v51, %v747_v32 }
  0x3f   :  { %5424 = vmatpush1.bf16.msra.mxu1 %v6506_v19  ;;  %8138 = vst [vmem:[#allocation59_spill] sm:$0xff] %v6520_v47  ;;  %v749_v28 = vand.u32 4294901760, %v613_v23  ;;  %v7894_v6 = vand.u32 4294901760, %v6335_v36  ;;  %v7892_v16 = vand.u32 4294901760, %v6337_v43 }
  0x40   :  { %468 = vmatmul.mubr.f32.vlgmr.msra.gmra.mrb[0].mxu0 %v6306_v20  ;;  %5426 = vmatprep.subr.bf16.mxu1 %v6509_v22  ;;  %v600_v22 = vld [vmem:[#allocation2 + $0x1a0] sm:$0xff]  ;;  %8144 = vst [vmem:[#allocation65_spill] sm:$0xff] %v6538_v61  ;;  %8152 = vst [vmem:[#allocation73_spill] sm:$0xff] %v6586_v39 }
  0x41   :  { %5388 = vmatpush1.bf16.msra.mxu0 %v6302_v18  ;;  %542 = vmatprep.mubr.f32.mxu0 %v8118_v11  ;;  %v597_v18 = vld [vmem:[#allocation2 + $0x188] sm:$0xff]  ;;  %v727_v19 = vand.u32 4294901760, %v600_v22 }
  0x42   :  { %v717_v4 = vand.u32 4294901760, %v597_v18 }
  0x43   :  { %5428 = vmatpush1.bf16.msra.mxu1 %v6513_v25  ;;  %v729_v25 = vand.u32 4294901760, %v603_v13  ;;  %v6564_v14 = vsub.f32 %v600_v22, %v727_v19  ;;  %v6584_v22 = vsub.f32 %v608_v41, %v743_v35 }
  0x44   :  { %5430 = vmatprep.subr.bf16.mxu1 %v6520_v47  ;;  %v6526_v48 = vpack.c.bf16 %v721_v15, %v717_v4  ;;  %v602_v47 = vld [vmem:[#allocation2 + $0x1b0] sm:$0xff]  ;;  %v6552_v8 = vsub.f32 %v597_v18, %v717_v4  ;;  %v612_v18 = vld [vmem:[#allocation2 + $0x200] sm:$0xff] }
  0x45   :  { %v731_v17 = vand.u32 4294901760, %v602_v47  ;;  %v6532_v26 = vpack.c.bf16 %v729_v25, %v725_v56  ;;  %v6562_v49 = vsub.f32 %v603_v13, %v729_v25  ;;  %8151 = vst [vmem:[#allocation72_spill] sm:$0xff] %v6584_v22 }
  0x46   :  { %8140 = vst [vmem:[#allocation61_spill] sm:$0xff] %v6526_v48 }
  0x47   :  { %5432 = vmatpush1.bf16.msra.mxu1 %v6522_v54  ;;  %8142 = vst [vmem:[#allocation63_spill] sm:$0xff] %v6532_v26  ;;  %v6534_v54 = vpack.c.bf16 %v731_v17, %v727_v19  ;;  %v6580_v19 = vsub.f32 %v611_v0, %v745_v40  ;;  %v6594_v0 = vsub.f32 %v613_v23, %v749_v28 }
  0x48   :  { %544 = vmatmul.mubr.f32.vlgmr.msra.gmra.mrb[0].mxu0 %v6306_v20  ;;  %v598_v20 = vld [vmem:[#allocation2 + $0x190] sm:$0xff]  ;;  %5434 = vmatprep.subr.bf16.mxu1 %v6526_v48 }
  0x49   :  { %v723_v3 = vand.u32 4294901760, %v598_v20  ;;  %8143 = vst [vmem:[#allocation64_spill] sm:$0xff] %v6534_v54  ;;  %v606_v48 = vld [vmem:[#allocation2 + $0x1d0] sm:$0xff]  ;;  %8149 = vst [vmem:[#allocation70_spill] sm:$0xff] %v6580_v19 }
  0x4a   :  { %v739_v50 = vand.u32 4294901760, %v606_v48  ;;  %8154 = vst [vmem:[#allocation75_spill] sm:$0xff] %v6594_v0 }
  0x4b   :  { %v6528_v11 = vpack.c.bf16 %v723_v3, %v719_v29  ;;  %v6558_v59 = vsub.f32 %v598_v20, %v723_v3  ;;  %v45_v20 = vlaneseq }
  0x4c   :  { %v6574_v52 = vsub.f32 %v606_v48, %v739_v50  ;;  %v43_v48 = vld [vmem:[#allocation2 + $0x420] ss:$8 sm:$0x3] }
  0x4d   :  { %8141 = vst [vmem:[#allocation62_spill] sm:$0xff] %v6528_v11  ;;  %5436 = vmatpush1.bf16.msra.mxu1 %v6528_v11  ;;  %v6540_v11 = vpack.c.bf16 %v739_v50, %v735_v7  ;;  %v751_v50 = vand.u32 4294901760, %v612_v18  ;;  %v755_v7 = vand.u32 4294901760, %v614_v55 }
  0x4e   :  { %5438 = vmatprep.subr.bf16.mxu1 %v6532_v26  ;;  %v741_v26 = vand.u32 4294901760, %v609_v24  ;;  %8146 = vst [vmem:[#allocation67_spill] sm:$0xff] %v6574_v52 }
  0x4f   :  { %8145 = vst [vmem:[#allocation66_spill] sm:$0xff] %v6540_v11  ;;  %v6600_v41 = vsub.f32 %v612_v18, %v751_v50  ;;  %v6602_v51 = vsub.f32 %v614_v55, %v755_v7 }
  0x50   :  { %v6576_v4 = vpack.c.bf16 %v745_v40, %v741_v26  ;;  %v6578_v25 = vsub.f32 %v609_v24, %v741_v26  ;;  %v777_v24 = vsub.f32 %v6335_v36, %v7894_v6  ;;  %v789_v26 = vsub.f32 %v6337_v43, %v7892_v16 }
  0x51   :  { %5440 = vmatpush1.bf16.msra.mxu1 %v6534_v54  ;;  %v6546_v54 = vsub.f32 %v595_v27, %v713_v57  ;;  %v6566_v27 = vsub.f32 %v602_v47, %v731_v17  ;;  %v615_v57 = vld [vmem:[#allocation2 + $0x218] sm:$0xff]  ;;  %v6582_v17 = vpack.c.bf16 %v747_v32, %v743_v35  ;;  %v6598_v32 = vpack.c.bf16 %v755_v7, %v751_v50 }
  0x52   :  { %5442 = vmatprep.subr.bf16.mxu1 %v6538_v61  ;;  %v6556_v61 = vsub.f32 %v596_v12, %v719_v29  ;;  %8147 = vst [vmem:[#allocation68_spill] sm:$0xff] %v6576_v4  ;;  %8148 = vst [vmem:[#allocation69_spill] sm:$0xff] %v6578_v25  ;;  %v753_v9 = vand.u32 4294901760, %v615_v57  ;;  %v778_v47 = vand.u32 4294901760, %v777_v24  ;;  %v790_v15 = vand.u32 4294901760, %v789_v26 }
  0x53   :  { %8150 = vst [vmem:[#allocation71_spill] sm:$0xff] %v6582_v17  ;;  %8156 = vst [vmem:[#allocation77_spill] sm:$0xff] %v6598_v32  ;;  %v6612_v29 = vshrl.u32 %v45_v20, 7  ;;  %v7888_v50 = vand.u32 4294901760, %v6350_v1  ;;  %v7889_v7 = vand.u32 4294901760, %v6352_v2  ;;  %v7893_v24 = vand.u32 4294901760, %v6355_v5 }
  0x54   :  { %v6592_v40 = vpack.c.bf16 %v753_v9, %v749_v28  ;;  %v6596_v35 = vsub.f32 %v615_v57, %v753_v9  ;;  %8157 = vst [vmem:[#allocation78_spill] sm:$0xff] %v6600_v41  ;;  %8158 = vst [vmem:[#allocation79_spill] sm:$0xff] %v6602_v51  ;;  %v5453_v12 = vpack.c.bf16 %v790_v15, %v778_v47  ;;  %v7891_v28 = vand.u32 4294901760, %v6344_v58 }
  0x55   :  { %5444 = vmatpush1.bf16.msra.mxu1 %v6540_v11  ;;  %v6560_v11 = vsub.f32 %v601_v53, %v725_v56  ;;  %8159 = vst [vmem:[#allocation80_spill] sm:$0xff] %v6612_v29  ;;  %v7887_v3 = vsub.s32 0, %v6612_v29  ;;  %v7886_v53 = vsub.s32 1, %v6612_v29  ;;  %v7890_v9 = vand.u32 4294901760, %v6346_v62 }
  0x56   :  { %5446 = vmatprep.subr.bf16.mxu1 %v6576_v4  ;;  %8153 = vst [vmem:[#allocation74_spill] sm:$0xff] %v6592_v40  ;;  %8155 = vst [vmem:[#allocation76_spill] sm:$0xff] %v6596_v35  ;;  %v783_v26 = vsub.f32 %v6344_v58, %v7891_v28  ;;  %v7895_v47 = vand.u32 4294901760, %v6363_v21  ;;  %v7922_v28 = vand.u32 4294901760, %v6371_v38  ;;  %v8165_v4 = vld [vmem:[#allocation19_spill] sm:$0xff] }
  0x57   :  { %v48_v13 = vrot.slane %v43_v48, %v7887_v3  ;;  %v52_v56 = vrot.slane %v43_v48, %v7886_v53  ;;  %v7927_v16 = vand.u32 4294901760, %v8165_v4 }
  0x58   :  { %v784_v53 = vand.u32 4294901760, %v783_v26  ;;  %v819_v3 = vsub.f32 %v6363_v21, %v7895_v47 }
  0x59   :  { %5448 = vmatpush1.bf16.msra.mxu1 %v6582_v17 }
  0x5a   :  { %5450 = vmatprep.subr.bf16.mxu1 %v6592_v40 }
  0x5d   :  { %5452 = vmatpush1.bf16.msra.mxu1 %v6598_v32  ;;  %v8164_v32 = vand.u32 4294901760, %v6376_v42 }
  0x5e   :  { %5454 = vmatprep.subr.bf16.mxu1 %v5453_v12  ;;  %v795_v12 = vsub.f32 %v6346_v62, %v7890_v9 }
  0x60   :  { %v796_v9 = vand.u32 4294901760, %v795_v12 }
  0x62   :  { %v5455_v40 = vpack.c.bf16 %v796_v9, %v784_v53 }
 0x11b   :  { %v545_v23 = vpop.f32.mrb[0].mxu0 }
 0x11c   :  { %v6061_v57 = vadd.f32 %v545_v23, %v48_v13  ;;  %v547_v18 = vpop.f32.mrb[1].mxu0  ;;  %v801_v13 = vsub.f32 %v6350_v1, %v7888_v50  ;;  %v7898_v23 = vand.u32 4294901760, %v6367_v34  ;;  %v7906_v50 = vand.u32 4294901760, %v6369_v37 }
 0x11d   :  { %v6062_v55 = vadd.f32 %v547_v18, %v52_v56  ;;  %v813_v56 = vsub.f32 %v6352_v2, %v7889_v7  ;;  %v807_v18 = vsub.f32 %v6355_v5, %v7893_v24 }
 0x11e   :  { %6167 = vtanh.f32 %v6061_v57  ;;  %v802_v6 = vand.u32 4294901760, %v801_v13  ;;  %v825_v26 = vsub.f32 %v6367_v34, %v7898_v23  ;;  %v837_v12 = vsub.f32 %v6369_v37, %v7906_v50  ;;  %v8166_v13 = vld [vmem:[#allocation21_spill] sm:$0xff]  ;;  %v8167_v34 = vld [vmem:[#allocation22_spill] sm:$0xff] }
 0x11f   :  { %6169 = vtanh.f32 %v6062_v55  ;;  %v808_v29 = vand.u32 4294901760, %v807_v18  ;;  %v820_v23 = vand.u32 4294901760, %v819_v3  ;;  %v831_v18 = vsub.f32 %v6371_v38, %v7922_v28 }
 0x120   :  { %v826_v50 = vand.u32 4294901760, %v825_v26  ;;  %v8169_v28 = vand.u32 4294901760, %v6378_v44 }
 0x121   :  { %v832_v53 = vand.u32 4294901760, %v831_v18  ;;  %v5459_v21 = vpack.c.bf16 %v820_v23, %v808_v29  ;;  %v8176_v18 = vand.u32 4294901760, %v8167_v34 }
 0x122   :  { %v849_v38 = vsub.f32 %v6378_v44, %v8169_v28  ;;  %v8174_v28 = vld [vmem:[#allocation29_spill] sm:$0xff] }
 0x128   :  { %v6168_v15 = vpop.eup %6167 }
 0x129   :  { %v6170_v20 = vpop.eup %6169  ;;  %v6632_v48 = vand.u32 4294901760, %v6168_v15 }
 0x12a   :  { %v6641_v57 = vand.u32 4294901760, %v6170_v20 }
 0x12b   :  { %8160 = vst [vmem:[#allocation81_spill] sm:$0xff] %v6632_v48  ;;  %v6647_v55 = vsub.f32 %v6168_v15, %v6632_v48  ;;  %v814_v15 = vand.u32 4294901760, %v813_v56 }
 0x12c   :  { %8161 = vst [vmem:[#allocation82_spill] sm:$0xff] %v6641_v57  ;;  %v6654_v7 = vsub.f32 %v6170_v20, %v6641_v57 }
 0x12d   :  { %8162 = vst [vmem:[#allocation83_spill] sm:$0xff] %v6647_v55  ;;  %v7901_v24 = vand.u32 4294901760, %v6647_v55  ;;  %v5457_v17 = vpack.c.bf16 %v814_v15, %v802_v6  ;;  %v8171_v15 = vld [vmem:[#allocation25_spill] sm:$0xff] }
 0x12e   :  { %8163 = vst [vmem:[#allocation84_spill] sm:$0xff] %v6654_v7  ;;  %v7917_v47 = vand.u32 4294901760, %v6654_v7  ;;  %v7931_v26 = vand.u32 4294901760, %v8171_v15 }
 0x12f   :  { %v766_v20 = vsub.f32 %v6647_v55, %v7901_v24  ;;  %v843_v24 = vsub.f32 %v6376_v42, %v8164_v32  ;;  %v8170_v32 = vand.u32 4294901760, %v6380_v45 }
 0x130   :  { %v760_v56 = vsub.f32 %v6654_v7, %v7917_v47  ;;  %v8168_v47 = vld [vmem:[#allocation24_spill] sm:$0xff]  ;;  %v838_v7 = vand.u32 4294901760, %v837_v12 }
 0x131   :  { %v767_v5 = vand.u32 4294901760, %v766_v20  ;;  %v861_v6 = vsub.f32 %v6380_v45, %v8170_v32  ;;  %v844_v9 = vand.u32 4294901760, %v843_v24  ;;  %v855_v20 = vsub.f32 %v8165_v4, %v7927_v16  ;;  %v8173_v12 = vld [vmem:[#allocation28_spill] sm:$0xff]  ;;  %v8184_v4 = vld [vmem:[#allocation35_spill] sm:$0xff] }
 0x132   :  { %v761_v55 = vand.u32 4294901760, %v760_v56  ;;  %v8172_v56 = vld [vmem:[#allocation27_spill] sm:$0xff]  ;;  %v8177_v29 = vand.u32 4294901760, %v8168_v47  ;;  %v5461_v32 = vpack.c.bf16 %v838_v7, %v826_v50  ;;  %v850_v16 = vand.u32 4294901760, %v849_v38  ;;  %v8180_v50 = vld [vmem:[#allocation30_spill] sm:$0xff] }
 0x133   :  { %v7933_v37 = vand.u32 4294901760, %v8172_v56  ;;  %v862_v3 = vand.u32 4294901760, %v861_v6  ;;  %v5463_v44 = vpack.c.bf16 %v844_v9, %v832_v53  ;;  %v8181_v7 = vld [vmem:[#allocation31_spill] sm:$0xff]  ;;  %v856_v53 = vand.u32 4294901760, %v855_v20 }
 0x134   :  { %762 = vmatprep.mubr.f32.mxu1 %v761_v55  ;;  %v8175_v55 = vand.u32 4294901760, %v8166_v13  ;;  %v885_v23 = vsub.f32 %v8168_v47, %v8177_v29  ;;  %v7946_v6 = vand.u32 4294901760, %v8181_v7  ;;  %v8183_v47 = vld [vmem:[#allocation34_spill] sm:$0xff]  ;;  %v7949_v45 = vand.u32 4294901760, %v8184_v4 }
 0x135   :  { %768 = vmatmul.mubr.f32.vlgmr.msra.gmra.mrb[0].mxu1 %v767_v5  ;;  %v873_v5 = vsub.f32 %v8167_v34, %v8176_v18  ;;  %v8179_v34 = vand.u32 4294901760, %v8174_v28 }
 0x136   :  { %5456 = vmatpush1.bf16.msra.mxu1 %v5455_v40  ;;  %1159 = vmatprep.mubr.f32.mxu1 %v6641_v57  ;;  %v867_v24 = vsub.f32 %v8166_v13, %v8175_v55  ;;  %v879_v40 = vsub.f32 %v8171_v15, %v7931_v26  ;;  %v891_v55 = vsub.f32 %v8172_v56, %v7933_v37  ;;  %v8178_v57 = vand.u32 4294901760, %v8173_v12  ;;  %v8182_v37 = vld [vmem:[#allocation33_spill] sm:$0xff] }
 0x137   :  { %5458 = vmatprep.subr.bf16.mxu1 %v5457_v17  ;;  %v909_v17 = vsub.f32 %v8174_v28, %v8179_v34  ;;  %v874_v29 = vand.u32 4294901760, %v873_v5  ;;  %v886_v26 = vand.u32 4294901760, %v885_v23  ;;  %v5465_v15 = vpack.c.bf16 %v862_v3, %v850_v16  ;;  %v8185_v34 = vld [vmem:[#allocation36_spill] sm:$0xff] }
 0x138   :  { %v897_v18 = vsub.f32 %v8173_v12, %v8178_v57  ;;  %v868_v9 = vand.u32 4294901760, %v867_v24  ;;  %v7945_v56 = vand.u32 4294901760, %v8182_v37  ;;  %v7944_v13 = vand.u32 4294901760, %v8183_v47 }
 0x139   :  { %v880_v57 = vand.u32 4294901760, %v879_v40  ;;  %v892_v12 = vand.u32 4294901760, %v891_v55  ;;  %v7951_v28 = vand.u32 4294901760, %v8185_v34  ;;  %v910_v42 = vand.u32 4294901760, %v909_v17  ;;  %v8188_v55 = vld [vmem:[#allocation40_spill] sm:$0xff] }
 0x13a   :  { %5460 = vmatpush1.bf16.msra.mxu1 %v5459_v21  ;;  %v898_v38 = vand.u32 4294901760, %v897_v18  ;;  %v8186_v21 = vand.u32 4294901760, %v8180_v50  ;;  %v915_v16 = vsub.f32 %v8181_v7, %v7946_v6  ;;  %v5467_v3 = vpack.c.bf16 %v868_v9, %v856_v53  ;;  %v8191_v6 = vld [vmem:[#allocation44_spill] sm:$0xff]  ;;  %v8192_v18 = vld [vmem:[#allocation45_spill] sm:$0xff] }
 0x13b   :  { %5462 = vmatprep.subr.bf16.mxu1 %v5461_v32  ;;  %v5469_v24 = vpack.c.bf16 %v886_v26, %v874_v29  ;;  %v921_v5 = vsub.f32 %v8182_v37, %v7945_v56  ;;  %v933_v23 = vsub.f32 %v8183_v47, %v7944_v13  ;;  %v8187_v32 = vld [vmem:[#allocation38_spill] sm:$0xff]  ;;  %v927_v17 = vsub.f32 %v8184_v4, %v7949_v45  ;;  %v8189_v29 = vld [vmem:[#allocation41_spill] sm:$0xff] }
 0x13c   :  { %v903_v20 = vsub.f32 %v8180_v50, %v8186_v21  ;;  %v5473_v26 = vpack.c.bf16 %v910_v42, %v898_v38  ;;  %v916_v9 = vand.u32 4294901760, %v915_v16  ;;  %v8190_v13 = vld [vmem:[#allocation42_spill] sm:$0xff]  ;;  %v8193_v4 = vand.u32 4294901760, %v8187_v32  ;;  %v8197_v21 = vld [vmem:[#allocation48_spill] sm:$0xff] }
 0x13d   :  { %v922_v37 = vand.u32 4294901760, %v921_v5  ;;  %v934_v45 = vand.u32 4294901760, %v933_v23  ;;  %v8194_v42 = vand.u32 4294901760, %v8188_v55  ;;  %v928_v38 = vand.u32 4294901760, %v927_v17 }
 0x13e   :  { %5464 = vmatpush1.bf16.msra.mxu1 %v5463_v44  ;;  %v939_v44 = vsub.f32 %v8185_v34, %v7951_v28  ;;  %v904_v53 = vand.u32 4294901760, %v903_v20  ;;  %v945_v28 = vsub.f32 %v8187_v32, %v8193_v4  ;;  %v8195_v20 = vld [vmem:[#allocation46_spill] sm:$0xff]  ;;  %v8199_v23 = vand.u32 4294901760, %v8189_v29 }
 0x13f   :  { %5466 = vmatprep.subr.bf16.mxu1 %v5465_v15  ;;  %v5471_v15 = vpack.c.bf16 %v892_v12, %v880_v57  ;;  %v957_v12 = vsub.f32 %v8188_v55, %v8194_v42  ;;  %v7956_v16 = vand.u32 4294901760, %v8195_v20  ;;  %v8200_v32 = vand.u32 4294901760, %v8190_v13 }
 0x140   :  { %v940_v57 = vand.u32 4294901760, %v939_v44  ;;  %v5475_v40 = vpack.c.bf16 %v916_v9, %v904_v53  ;;  %v951_v4 = vsub.f32 %v8189_v29, %v8199_v23  ;;  %v8201_v17 = vand.u32 4294901760, %v8191_v6 }
 0x141   :  { %v963_v42 = vsub.f32 %v8190_v13, %v8200_v32  ;;  %v8202_v56 = vand.u32 4294901760, %v8192_v18  ;;  %v5477_v9 = vpack.c.bf16 %v934_v45, %v922_v37  ;;  %v946_v5 = vand.u32 4294901760, %v945_v28  ;;  %v8206_v37 = vld [vmem:[#allocation51_spill] sm:$0xff]  ;;  %v8207_v28 = vld [vmem:[#allocation52_spill] sm:$0xff] }
 0x142   :  { %5468 = vmatpush1.bf16.msra.mxu1 %v5467_v3  ;;  %v8196_v3 = vld [vmem:[#allocation47_spill] sm:$0xff]  ;;  %v969_v44 = vsub.f32 %v8191_v6, %v8201_v17  ;;  %v5479_v47 = vpack.c.bf16 %v940_v57, %v928_v38  ;;  %v975_v23 = vsub.f32 %v8195_v20, %v7956_v16  ;;  %v8204_v13 = vand.u32 4294901760, %v8197_v21 }
 0x143   :  { %5470 = vmatprep.subr.bf16.mxu1 %v5469_v24  ;;  %v8198_v24 = vld [vmem:[#allocation50_spill] sm:$0xff]  ;;  %v981_v53 = vsub.f32 %v8192_v18, %v8202_v56  ;;  %v8203_v29 = vand.u32 4294901760, %v8196_v3  ;;  %v964_v38 = vand.u32 4294901760, %v963_v42  ;;  %v7963_v18 = vand.u32 4294901760, %v6548_v31 }
 0x144   :  { %v993_v17 = vsub.f32 %v8197_v21, %v8204_v13  ;;  %v8205_v6 = vand.u32 4294901760, %v8198_v24  ;;  %v970_v57 = vand.u32 4294901760, %v969_v44  ;;  %v976_v13 = vand.u32 4294901760, %v975_v23 }
 0x145   :  { %v987_v32 = vsub.f32 %v8196_v3, %v8203_v29  ;;  %v982_v16 = vand.u32 4294901760, %v981_v53  ;;  %v7974_v29 = vand.u32 4294901760, %v6544_v33  ;;  %v7962_v3 = vand.u32 4294901760, %v6546_v54 }
 0x146   :  { %5472 = vmatpush1.bf16.msra.mxu1 %v5471_v15  ;;  %v958_v15 = vand.u32 4294901760, %v957_v12  ;;  %v1005_v56 = vsub.f32 %v8198_v24, %v8205_v6  ;;  %v952_v12 = vand.u32 4294901760, %v951_v4  ;;  %v7964_v6 = vand.u32 4294901760, %v6550_v10 }
 0x147   :  { %5474 = vmatprep.subr.bf16.mxu1 %v5473_v26  ;;  %v7975_v26 = vand.u32 4294901760, %v8207_v28  ;;  %v988_v21 = vand.u32 4294901760, %v987_v32  ;;  %v994_v45 = vand.u32 4294901760, %v993_v17  ;;  %v5485_v44 = vpack.c.bf16 %v982_v16, %v970_v57 }
 0x148   :  { %v5481_v20 = vpack.c.bf16 %v958_v15, %v946_v5  ;;  %v1006_v24 = vand.u32 4294901760, %v1005_v56  ;;  %v5483_v42 = vpack.c.bf16 %v964_v38, %v952_v12  ;;  %v1017_v53 = vsub.f32 %v6544_v33, %v7974_v29 }
 0x149   :  { %v1011_v5 = vsub.f32 %v8207_v28, %v7975_v26  ;;  %v7973_v15 = vand.u32 4294901760, %v6552_v8  ;;  %v7965_v23 = vand.u32 4294901760, %v6554_v60  ;;  %v1023_v32 = vsub.f32 %v6548_v31, %v7963_v18 }
 0x14a   :  { %5476 = vmatpush1.bf16.msra.mxu1 %v5475_v40  ;;  %v8208_v40 = vand.u32 4294901760, %v8206_v37  ;;  %v5489_v16 = vpack.c.bf16 %v1006_v24, %v994_v45  ;;  %v7966_v12 = vand.u32 4294901760, %v6556_v61  ;;  %v7967_v38 = vand.u32 4294901760, %v6558_v59 }
 0x14b   :  { %5478 = vmatprep.subr.bf16.mxu1 %v5477_v9  ;;  %v1029_v9 = vsub.f32 %v6546_v54, %v7962_v3  ;;  %v1012_v56 = vand.u32 4294901760, %v1011_v5  ;;  %v7968_v57 = vand.u32 4294901760, %v6560_v11  ;;  %v1018_v3 = vand.u32 4294901760, %v1017_v53 }
 0x14c   :  { %v999_v4 = vsub.f32 %v8206_v37, %v8208_v40  ;;  %v7971_v40 = vand.u32 4294901760, %v6562_v49  ;;  %v1024_v24 = vand.u32 4294901760, %v1023_v32  ;;  %v1047_v53 = vsub.f32 %v6556_v61, %v7966_v12 }
 0x14d   :  { %v1030_v18 = vand.u32 4294901760, %v1029_v9  ;;  %v1059_v9 = vsub.f32 %v6558_v59, %v7967_v38  ;;  %v1065_v32 = vsub.f32 %v6560_v11, %v7968_v57 }
 0x14e   :  { %5480 = vmatpush1.bf16.msra.mxu1 %v5479_v47  ;;  %v1035_v47 = vsub.f32 %v6550_v10, %v7964_v6  ;;  %v1000_v17 = vand.u32 4294901760, %v999_v4  ;;  %v1041_v6 = vsub.f32 %v6552_v8, %v7973_v15  ;;  %v7970_v4 = vand.u32 4294901760, %v6566_v27 }
 0x14f   :  { %5482 = vmatprep.subr.bf16.mxu1 %v5481_v20  ;;  %v5487_v20 = vpack.c.bf16 %v988_v21, %v976_v13  ;;  %v1053_v21 = vsub.f32 %v6554_v60, %v7965_v23  ;;  %v7969_v13 = vand.u32 4294901760, %v6564_v14 }
 0x150   :  { %v1036_v45 = vand.u32 4294901760, %v1035_v47  ;;  %v5491_v5 = vpack.c.bf16 %v1012_v56, %v1000_v17  ;;  %v1077_v47 = vsub.f32 %v6562_v49, %v7971_v40  ;;  %v5493_v17 = vpack.c.bf16 %v1030_v18, %v1018_v3 }
 0x151   :  { %v1042_v56 = vand.u32 4294901760, %v1041_v6  ;;  %v1071_v12 = vsub.f32 %v6564_v14, %v7969_v13  ;;  %v1083_v38 = vsub.f32 %v6566_v27, %v7970_v4  ;;  %v7986_v18 = vand.u32 4294901760, %v6572_v46 }
 0x152   :  { %5484 = vmatpush1.bf16.msra.mxu1 %v5483_v42  ;;  %v7972_v42 = vand.u32 4294901760, %v6568_v63  ;;  %v5495_v23 = vpack.c.bf16 %v1036_v45, %v1024_v24  ;;  %v7985_v3 = vand.u32 4294901760, %v6574_v52  ;;  %v1048_v6 = vand.u32 4294901760, %v1047_v53 }
 0x153   :  { %5486 = vmatprep.subr.bf16.mxu1 %v5485_v44  ;;  %v7976_v44 = vand.u32 4294901760, %v6570_v30  ;;  %v1066_v24 = vand.u32 4294901760, %v1065_v32  ;;  %v1078_v45 = vand.u32 4294901760, %v1077_v47  ;;  %v7984_v4 = vand.u32 4294901760, %v6578_v25 }
 0x154   :  { %v1089_v57 = vsub.f32 %v6568_v63, %v7972_v42  ;;  %v7977_v40 = vand.u32 4294901760, %v6580_v19  ;;  %v1072_v42 = vand.u32 4294901760, %v1071_v12  ;;  %v1084_v15 = vand.u32 4294901760, %v1083_v38 }
 0x155   :  { %v7983_v32 = vand.u32 4294901760, %v6584_v22  ;;  %v7979_v47 = vand.u32 4294901760, %v6586_v39  ;;  %v1113_v12 = vsub.f32 %v6578_v25, %v7984_v4  ;;  %v8227_v4 = vld [vmem:[#allocation34_spill] sm:$0xff] }
 0x156   :  { %5488 = vmatpush1.bf16.msra.mxu1 %v5487_v20  ;;  %v1054_v20 = vand.u32 4294901760, %v1053_v21  ;;  %v1060_v21 = vand.u32 4294901760, %v1059_v9  ;;  %v1090_v29 = vand.u32 4294901760, %v1089_v57  ;;  %v5501_v9 = vpack.c.bf16 %v1078_v45, %v1066_v24 }
 0x157   :  { %5490 = vmatprep.subr.bf16.mxu1 %v5489_v16  ;;  %v1101_v16 = vsub.f32 %v6570_v30, %v7976_v44  ;;  %v1095_v44 = vsub.f32 %v6572_v46, %v7986_v18  ;;  %v1125_v38 = vsub.f32 %v6580_v19, %v7977_v40  ;;  %v7978_v57 = vand.u32 4294901760, %v6594_v0 }
 0x158   :  { %v5497_v13 = vpack.c.bf16 %v1054_v20, %v1042_v56  ;;  %v5499_v53 = vpack.c.bf16 %v1060_v21, %v1048_v6  ;;  %v1131_v6 = vsub.f32 %v6586_v39, %v7979_v47  ;;  %v7982_v21 = vand.u32 4294901760, %v6600_v41 }
 0x159   :  { %v1102_v26 = vand.u32 4294901760, %v1101_v16  ;;  %v1096_v20 = vand.u32 4294901760, %v1095_v44  ;;  %v7981_v24 = vand.u32 4294901760, %v6602_v51  ;;  %v1114_v45 = vand.u32 4294901760, %v1113_v12 }
 0x15a   :  { %5492 = vmatpush1.bf16.msra.mxu1 %v5491_v5  ;;  %v1107_v5 = vsub.f32 %v6574_v52, %v7985_v3  ;;  %v1126_v40 = vand.u32 4294901760, %v1125_v38  ;;  %v1132_v44 = vand.u32 4294901760, %v1131_v6  ;;  %v8210_v6 = vld [vmem:[#allocation8_spill] sm:$0xff] }
 0x15b   :  { %5494 = vmatprep.subr.bf16.mxu1 %v5493_v17  ;;  %v7980_v17 = vand.u32 4294901760, %v6596_v35  ;;  %v5505_v56 = vpack.c.bf16 %v1102_v26, %v1090_v29  ;;  %v1137_v26 = vsub.f32 %v6594_v0, %v7978_v57 }
 0x15c   :  { %v1108_v16 = vand.u32 4294901760, %v1107_v5  ;;  %v1143_v5 = vsub.f32 %v6600_v41, %v7982_v21  ;;  %v8225_v21 = vld [vmem:[#allocation29_spill] sm:$0xff] }
 0x15d   :  { %v1149_v29 = vsub.f32 %v6596_v35, %v7980_v17  ;;  %v1138_v12 = vand.u32 4294901760, %v1137_v26 }
 0x15e   :  { %5496 = vmatpush1.bf16.msra.mxu1 %v5495_v23  ;;  %v5503_v23 = vpack.c.bf16 %v1084_v15, %v1072_v42  ;;  %v5507_v15 = vpack.c.bf16 %v1108_v16, %v1096_v20  ;;  %v1144_v47 = vand.u32 4294901760, %v1143_v5  ;;  %v5517_v16 = vpack.c.bf16 %v6337_v43, %v6335_v36  ;;  %v8217_v5 = vld [vmem:[#allocation18_spill] sm:$0xff] }
 0x15f   :  { %5498 = vmatprep.subr.bf16.mxu1 %v5497_v13  ;;  %v1119_v13 = vsub.f32 %v6584_v22, %v7983_v32  ;;  %v1150_v38 = vand.u32 4294901760, %v1149_v29  ;;  %v8214_v29 = vld [vmem:[#allocation14_spill] sm:$0xff] }
 0x161   :  { %v1120_v42 = vand.u32 4294901760, %v1119_v13  ;;  %v5519_v13 = vpack.c.bf16 %v6346_v62, %v6344_v58 }
 0x162   :  { %5500 = vmatpush1.bf16.msra.mxu1 %v5499_v53  ;;  %v1155_v53 = vsub.f32 %v6602_v51, %v7981_v24 }
 0x163   :  { %5502 = vmatprep.subr.bf16.mxu1 %v5501_v9  ;;  %v5509_v9 = vpack.c.bf16 %v1126_v40, %v1114_v45  ;;  %v5511_v57 = vpack.c.bf16 %v1132_v44, %v1120_v42  ;;  %v5521_v40 = vpack.c.bf16 %v6352_v2, %v6350_v1  ;;  %v8213_v45 = vld [vmem:[#allocation13_spill] sm:$0xff] }
 0x164   :  { %v1156_v17 = vand.u32 4294901760, %v1155_v53  ;;  %v8216_v44 = vld [vmem:[#allocation17_spill] sm:$0xff] }
 0x165   :  { %v5529_v53 = vpack.c.bf16 %v8217_v5, %v8216_v44 }
 0x166   :  { %5504 = vmatpush1.bf16.msra.mxu1 %v5503_v23  ;;  %v5513_v23 = vpack.c.bf16 %v1150_v38, %v1138_v12  ;;  %v5515_v20 = vpack.c.bf16 %v1156_v17, %v1144_v47  ;;  %v8212_v17 = vld [vmem:[#allocation12_spill] sm:$0xff]  ;;  %v8219_v12 = vld [vmem:[#allocation21_spill] sm:$0xff] }
 0x167   :  { %5506 = vmatprep.subr.bf16.mxu1 %v5505_v56  ;;  %v8209_v56 = vld [vmem:[#allocation84_spill] sm:$0xff]  ;;  %v5525_v26 = vpack.c.bf16 %v8213_v45, %v8212_v17 }
 0x16a   :  { %5508 = vmatpush1.bf16.msra.mxu1 %v5507_v15  ;;  %v8215_v15 = vld [vmem:[#allocation16_spill] sm:$0xff] }
 0x16b   :  { %5510 = vmatprep.subr.bf16.mxu1 %v5509_v9  ;;  %v5527_v42 = vpack.c.bf16 %v8215_v15, %v8214_v29  ;;  %v8218_v9 = vld [vmem:[#allocation19_spill] sm:$0xff] }
 0x16c   :  { %v5531_v38 = vpack.c.bf16 %v8219_v12, %v8218_v9 }
 0x16e   :  { %5512 = vmatpush1.bf16.msra.mxu1 %v5511_v57  ;;  %v8211_v57 = vld [vmem:[#allocation10_spill] sm:$0xff] }
 0x16f   :  { %5514 = vmatprep.subr.bf16.mxu1 %v5513_v23  ;;  %v5523_v47 = vpack.c.bf16 %v8211_v57, %v8210_v6  ;;  %v8220_v23 = vld [vmem:[#allocation22_spill] sm:$0xff] }
 0x172   :  { %5516 = vmatpush1.bf16.msra.mxu1 %v5515_v20  ;;  %v8221_v20 = vld [vmem:[#allocation24_spill] sm:$0xff] }
 0x173   :  { %5518 = vmatprep.subr.bf16.mxu1 %v5517_v16  ;;  %v5533_v16 = vpack.c.bf16 %v8221_v20, %v8220_v23 }
 0x175   :  { %1161 = vmatmul.mubr.f32.vlgmr.msra.gmra.mrb[0].mxu1 %v6632_v48 }
 0x176   :  { %5520 = vmatpush1.bf16.msra.mxu1 %v5519_v13  ;;  %1361 = vmatprep.mubr.f32.mxu1 %v8209_v56  ;;  %v8222_v13 = vld [vmem:[#allocation25_spill] sm:$0xff] }
 0x177   :  { %5522 = vmatprep.subr.bf16.mxu1 %v5521_v40  ;;  %v8223_v40 = vld [vmem:[#allocation27_spill] sm:$0xff] }
 0x178   :  { %v5535_v24 = vpack.c.bf16 %v8223_v40, %v8222_v13  ;;  %v8231_v40 = vld [vmem:[#allocation42_spill] sm:$0xff] }
 0x17a   :  { %5524 = vmatpush1.bf16.msra.mxu1 %v5523_v47  ;;  %v8224_v47 = vld [vmem:[#allocation28_spill] sm:$0xff] }
 0x17b   :  { %5526 = vmatprep.subr.bf16.mxu1 %v5525_v26  ;;  %v5537_v32 = vpack.c.bf16 %v8225_v21, %v8224_v47  ;;  %v5539_v26 = vpack.c.bf16 %v8181_v7, %v8180_v50  ;;  %v8233_v47 = vld [vmem:[#allocation45_spill] sm:$0xff]  ;;  %v8235_v50 = vld [vmem:[#allocation47_spill] sm:$0xff] }
 0x17e   :  { %5528 = vmatpush1.bf16.msra.mxu1 %v5527_v42  ;;  %v8226_v42 = vld [vmem:[#allocation33_spill] sm:$0xff] }
 0x17f   :  { %5530 = vmatprep.subr.bf16.mxu1 %v5529_v53  ;;  %v5541_v3 = vpack.c.bf16 %v8227_v4, %v8226_v42  ;;  %v8228_v53 = vld [vmem:[#allocation35_spill] sm:$0xff]  ;;  %v8237_v42 = vld [vmem:[#allocation50_spill] sm:$0xff] }
 0x180   :  { %v5543_v18 = vpack.c.bf16 %v8185_v34, %v8228_v53 }
 0x182   :  { %5532 = vmatpush1.bf16.msra.mxu1 %v5531_v38  ;;  %v8229_v38 = vld [vmem:[#allocation38_spill] sm:$0xff] }
 0x183   :  { %5534 = vmatprep.subr.bf16.mxu1 %v5533_v16  ;;  %v5545_v48 = vpack.c.bf16 %v8188_v55, %v8229_v38  ;;  %v8230_v16 = vld [vmem:[#allocation41_spill] sm:$0xff] }
 0x184   :  { %v5547_v21 = vpack.c.bf16 %v8231_v40, %v8230_v16 }
 0x186   :  { %5536 = vmatpush1.bf16.msra.mxu1 %v5535_v24  ;;  %v8232_v24 = vld [vmem:[#allocation44_spill] sm:$0xff] }
 0x187   :  { %5538 = vmatprep.subr.bf16.mxu1 %v5537_v32  ;;  %v5549_v7 = vpack.c.bf16 %v8233_v47, %v8232_v24  ;;  %v8234_v32 = vld [vmem:[#allocation46_spill] sm:$0xff] }
 0x188   :  { %v5551_v4 = vpack.c.bf16 %v8235_v50, %v8234_v32 }
 0x18a   :  { %5540 = vmatpush1.bf16.msra.mxu1 %v5539_v26  ;;  %v8236_v26 = vld [vmem:[#allocation48_spill] sm:$0xff] }
 0x18b   :  { %5542 = vmatprep.subr.bf16.mxu1 %v5541_v3  ;;  %v5553_v34 = vpack.c.bf16 %v8237_v42, %v8236_v26  ;;  %v5555_v3 = vpack.c.bf16 %v8207_v28, %v8206_v37 }
 0x18e   :  { %5544 = vmatpush1.bf16.msra.mxu1 %v5543_v18  ;;  %v5557_v18 = vpack.c.bf16 %v6546_v54, %v6544_v33 }
 0x18f   :  { %5546 = vmatprep.subr.bf16.mxu1 %v5545_v48  ;;  %v5559_v48 = vpack.c.bf16 %v6550_v10, %v6548_v31 }
 0x192   :  { %5548 = vmatpush1.bf16.msra.mxu1 %v5547_v21  ;;  %v5561_v21 = vpack.c.bf16 %v6554_v60, %v6552_v8 }
 0x193   :  { %5550 = vmatprep.subr.bf16.mxu1 %v5549_v7  ;;  %v5563_v7 = vpack.c.bf16 %v6558_v59, %v6556_v61 }
 0x196   :  { %5552 = vmatpush1.bf16.msra.mxu1 %v5551_v4  ;;  %v5565_v4 = vpack.c.bf16 %v6562_v49, %v6560_v11 }
 0x197   :  { %5554 = vmatprep.subr.bf16.mxu1 %v5553_v34  ;;  %v5567_v34 = vpack.c.bf16 %v6566_v27, %v6564_v14 }
 0x19a   :  { %5556 = vmatpush1.bf16.msra.mxu1 %v5555_v3  ;;  %v5569_v3 = vpack.c.bf16 %v6570_v30, %v6568_v63 }
 0x19b   :  { %5558 = vmatprep.subr.bf16.mxu1 %v5557_v18  ;;  %v5571_v18 = vpack.c.bf16 %v6574_v52, %v6572_v46  ;;  %v8240_v52 = vld [vmem:[#allocation6_spill] sm:$0xff] }
 0x19e   :  { %5560 = vmatpush1.bf16.msra.mxu1 %v5559_v48  ;;  %v5573_v48 = vpack.c.bf16 %v6580_v19, %v6578_v25 }
 0x19f   :  { %5562 = vmatprep.subr.bf16.mxu1 %v5561_v21  ;;  %v5575_v21 = vpack.c.bf16 %v6586_v39, %v6584_v22  ;;  %v8242_v39 = vld [vmem:[#allocation7_spill] sm:$0xff] }
 0x1a2   :  { %5564 = vmatpush1.bf16.msra.mxu1 %v5563_v7  ;;  %v5577_v7 = vpack.c.bf16 %v6596_v35, %v6594_v0  ;;  %v8244_v35 = vld [vmem:[#allocation11_spill] sm:$0xff] }
 0x1a3   :  { %5566 = vmatprep.subr.bf16.mxu1 %v5565_v4  ;;  %v5579_v4 = vpack.c.bf16 %v6602_v51, %v6600_v41  ;;  %v8246_v51 = vld [vmem:[#allocation20_spill] sm:$0xff]  ;;  %v1932_v41 = vld [vmem:[#allocation2 + $0x330] sm:$0xff]  ;;  %v1917_v0 = vld [vmem:[#allocation2 + $0x240] sm:$0xff] }
 0x1a6   :  { %5568 = vmatpush1.bf16.msra.mxu1 %v5567_v34  ;;  %v8238_v34 = vld [vmem:[#allocation5_spill] sm:$0xff] }
 0x1a7   :  { %5570 = vmatprep.subr.bf16.mxu1 %v5569_v3  ;;  %v8239_v3 = vld [vmem:[#allocation83_spill] sm:$0xff] }
 0x1aa   :  { %5572 = vmatpush1.bf16.msra.mxu1 %v5571_v18  ;;  %v8241_v18 = vand.u32 4294901760, %v8209_v56  ;;  %v8251_v56 = vld [vmem:[#allocation39_spill] sm:$0xff] }
 0x1ab   :  { %5574 = vmatprep.subr.bf16.mxu1 %v5573_v48  ;;  %v8243_v48 = vld [vmem:[#allocation9_spill] sm:$0xff] }
 0x1ae   :  { %5576 = vmatpush1.bf16.msra.mxu1 %v5575_v21  ;;  %v8245_v21 = vld [vmem:[#allocation15_spill] sm:$0xff] }
 0x1af   :  { %5578 = vmatprep.subr.bf16.mxu1 %v5577_v7  ;;  %v8247_v7 = vld [vmem:[#allocation23_spill] sm:$0xff] }
 0x1b2   :  { %5580 = vmatpush1.bf16.msra.mxu1 %v5579_v4  ;;  %v8248_v4 = vld [vmem:[#allocation26_spill] sm:$0xff] }
 0x1b3   :  { %5582 = vmatprep.subr.bf16.mxu1 %v8238_v34  ;;  %v8249_v34 = vld [vmem:[#allocation32_spill] sm:$0xff] }
 0x1b5   :  { %1364 = vmatmul.mubr.f32.vlgmr.msra.gmra.mrb[0].mxu1 %v8239_v3 }
 0x1b6   :  { %5584 = vmatpush1.bf16.msra.mxu1 %v8240_v52  ;;  %1501 = vmatprep.mubr.f32.mxu1 %v8241_v18  ;;  %v8250_v52 = vld [vmem:[#allocation37_spill] sm:$0xff]  ;;  %v8252_v18 = vld [vmem:[#allocation43_spill] sm:$0xff] }
 0x1b7   :  { %5586 = vmatprep.subr.bf16.mxu1 %v8242_v39  ;;  %v8253_v39 = vld [vmem:[#allocation49_spill] sm:$0xff] }
 0x1ba   :  { %5588 = vmatpush1.bf16.msra.mxu1 %v8243_v48  ;;  %v8254_v48 = vld [vmem:[#allocation53_spill] sm:$0xff] }
 0x1bb   :  { %5590 = vmatprep.subr.bf16.mxu1 %v8244_v35  ;;  %v8255_v35 = vld [vmem:[#allocation54_spill] sm:$0xff] }
 0x1be   :  { %5592 = vmatpush1.bf16.msra.mxu1 %v8245_v21  ;;  %v8256_v21 = vld [vmem:[#allocation55_spill] sm:$0xff] }
 0x1bf   :  { %5594 = vmatprep.subr.bf16.mxu1 %v8246_v51  ;;  %v8257_v51 = vld [vmem:[#allocation56_spill] sm:$0xff] }
 0x1c2   :  { %5596 = vmatpush1.bf16.msra.mxu1 %v8247_v7  ;;  %v8258_v7 = vld [vmem:[#allocation57_spill] sm:$0xff] }
 0x1c3   :  { %5598 = vmatprep.subr.bf16.mxu1 %v8248_v4  ;;  %v8259_v4 = vld [vmem:[#allocation58_spill] sm:$0xff] }
 0x1c6   :  { %5600 = vmatpush1.bf16.msra.mxu1 %v8249_v34  ;;  %v8260_v34 = vld [vmem:[#allocation59_spill] sm:$0xff] }
 0x1c7   :  { %5602 = vmatprep.subr.bf16.mxu1 %v8250_v52  ;;  %v8261_v52 = vld [vmem:[#allocation60_spill] sm:$0xff] }
 0x1ca   :  { %5604 = vmatpush1.bf16.msra.mxu1 %v8251_v56  ;;  %v8262_v56 = vld [vmem:[#allocation61_spill] sm:$0xff] }
 0x1cb   :  { %5606 = vmatprep.subr.bf16.mxu1 %v8252_v18  ;;  %v8263_v18 = vld [vmem:[#allocation62_spill] sm:$0xff] }
 0x1ce   :  { %5608 = vmatpush1.bf16.msra.mxu1 %v8253_v39  ;;  %v8264_v39 = vld [vmem:[#allocation63_spill] sm:$0xff] }
 0x1cf   :  { %5610 = vmatprep.subr.bf16.mxu1 %v8254_v48  ;;  %v8265_v48 = vld [vmem:[#allocation64_spill] sm:$0xff] }
 0x1d2   :  { %5612 = vmatpush1.bf16.msra.mxu1 %v8255_v35  ;;  %v8266_v35 = vld [vmem:[#allocation65_spill] sm:$0xff] }
 0x1d3   :  { %5614 = vmatprep.subr.bf16.mxu1 %v8256_v21  ;;  %v8267_v21 = vld [vmem:[#allocation66_spill] sm:$0xff] }
 0x1d6   :  { %5616 = vmatpush1.bf16.msra.mxu1 %v8257_v51  ;;  %v8268_v51 = vld [vmem:[#allocation68_spill] sm:$0xff] }
 0x1d7   :  { %5618 = vmatprep.subr.bf16.mxu1 %v8258_v7  ;;  %v8269_v7 = vld [vmem:[#allocation71_spill] sm:$0xff] }
 0x1da   :  { %5620 = vmatpush1.bf16.msra.mxu1 %v8259_v4  ;;  %v8270_v4 = vld [vmem:[#allocation74_spill] sm:$0xff] }
 0x1db   :  { %5622 = vmatprep.subr.bf16.mxu1 %v8260_v34 }
 0x1de   :  { %5624 = vmatpush1.bf16.msra.mxu1 %v8261_v52  ;;  %v8271_v52 = vand.u32 4294901760, %v6335_v36  ;;  %v1931_v36 = vld [vmem:[#allocation2 + $0x320] sm:$0xff] }
 0x1df   :  { %5626 = vmatprep.subr.bf16.mxu1 %v8262_v56  ;;  %v8272_v56 = vand.u32 4294901760, %v6337_v43  ;;  %v1915_v43 = vld [vmem:[#allocation2 + $0x220] sm:$0xff] }
 0x1e1   :  { %v5645_v34 = vpack.c.bf16 %v8272_v56, %v8271_v52  ;;  %v8279_v52 = vld [vmem:[#allocation82_spill] sm:$0xff]  ;;  %v1949_v56 = vand.u32 4294901760, %v1915_v43 }
 0x1e2   :  { %5628 = vmatpush1.bf16.msra.mxu1 %v8263_v18  ;;  %v8273_v18 = vld [vmem:[#allocation77_spill] sm:$0xff] }
 0x1e3   :  { %5630 = vmatprep.subr.bf16.mxu1 %v8264_v39  ;;  %v8274_v39 = vand.u32 4294901760, %v6344_v58  ;;  %v8280_v58 = vand.u32 4294901760, %v8210_v6  ;;  %v1918_v6 = vld [vmem:[#allocation2 + $0x250] sm:$0xff] }
 0x1e6   :  { %5632 = vmatpush1.bf16.msra.mxu1 %v8265_v48  ;;  %v8275_v48 = vand.u32 4294901760, %v6346_v62  ;;  %v8281_v62 = vand.u32 4294901760, %v8211_v57 }
 0x1e7   :  { %5634 = vmatprep.subr.bf16.mxu1 %v8266_v35 }
 0x1e8   :  { %v5647_v35 = vpack.c.bf16 %v8275_v48, %v8274_v39  ;;  %v5651_v39 = vpack.c.bf16 %v8281_v62, %v8280_v58  ;;  %v2000_v48 = vand.u32 4294901760, %v1932_v41  ;;  %v7017_v62 = vsub.f32 %v1915_v43, %v1949_v56 }
 0x1e9   :  { %v1958_v43 = vand.u32 4294901760, %v1918_v6 }
 0x1ea   :  { %5636 = vmatpush1.bf16.msra.mxu1 %v8267_v21  ;;  %v8276_v21 = vand.u32 4294901760, %v6350_v1  ;;  %v1916_v1 = vld [vmem:[#allocation2 + $0x230] sm:$0xff]  ;;  %v7015_v58 = vsub.f32 %v1932_v41, %v2000_v48 }
 0x1eb   :  { %5638 = vmatprep.subr.bf16.mxu1 %v8268_v51  ;;  %v8277_v51 = vand.u32 4294901760, %v6352_v2  ;;  %v1933_v2 = vld [vmem:[#allocation2 + $0x340] sm:$0xff] }
 0x1ee   :  { %5640 = vmatpush1.bf16.msra.mxu1 %v8269_v7  ;;  %v5649_v7 = vpack.c.bf16 %v8277_v51, %v8276_v21  ;;  %v1934_v51 = vld [vmem:[#allocation2 + $0x350] sm:$0xff]  ;;  %v8283_v21 = vand.u32 4294901760, %v8213_v45 }
 0x1ef   :  { %5642 = vmatprep.subr.bf16.mxu1 %v8270_v4  ;;  %v8278_v4 = vand.u32 4294901760, %v8239_v3  ;;  %v8282_v3 = vand.u32 4294901760, %v8212_v17 }
 0x1f2   :  { %5644 = vmatpush1.bf16.msra.mxu1 %v8273_v18  ;;  %v2003_v18 = vand.u32 4294901760, %v1933_v2 }
 0x1f3   :  { %5646 = vmatprep.subr.bf16.mxu1 %v5645_v34  ;;  %v1997_v34 = vand.u32 4294901760, %v1931_v36 }
 0x1f4   :  { %v7025_v45 = vsub.f32 %v1933_v2, %v2003_v18 }
 0x1f5   :  { %1505 = vmatmul.mubr.f32.vlgmr.msra.gmra.mrb[0].mxu1 %v8278_v4  ;;  %v5653_v4 = vpack.c.bf16 %v8283_v21, %v8282_v3  ;;  %v7011_v22 = vpack.c.bf16 %v2000_v48, %v1997_v34  ;;  %v7013_v57 = vsub.f32 %v1931_v36, %v1997_v34  ;;  %v8286_v3 = vand.u32 4294901760, %v8214_v29 }
 0x1f6   :  { %5648 = vmatpush1.bf16.msra.mxu1 %v5647_v35  ;;  %1768 = vmatprep.mubr.f32.mxu1 %v8279_v52  ;;  %v1952_v35 = vand.u32 4294901760, %v1916_v1  ;;  %v2006_v52 = vand.u32 4294901760, %v1934_v51  ;;  %v8287_v21 = vand.u32 4294901760, %v8215_v15  ;;  %v1955_v36 = vand.u32 4294901760, %v1917_v0 }
 0x1f7   :  { %5650 = vmatprep.subr.bf16.mxu1 %v5649_v7  ;;  %5774 = vmatprep.subr.bf16.mxu0 %v7011_v22  ;;  %v8288_v34 = vand.u32 4294901760, %v8216_v44  ;;  %v8289_v48 = vand.u32 4294901760, %v8217_v5  ;;  %v8293_v44 = vand.u32 4294901760, %v8220_v23  ;;  %v8294_v5 = vand.u32 4294901760, %v8221_v20 }
 0x1f8   :  { %v7019_v19 = vpack.c.bf16 %v1952_v35, %v1949_v56  ;;  %v7021_v7 = vsub.f32 %v1916_v1, %v1952_v35  ;;  %v7023_v17 = vpack.c.bf16 %v2006_v52, %v2003_v18  ;;  %v5655_v25 = vpack.c.bf16 %v8287_v21, %v8286_v3  ;;  %v8302_v21 = vld [vmem:[#allocation30_spill] sm:$0xff] }
 0x1f9   :  { %v7032_v41 = vsub.f32 %v1934_v51, %v2006_v52  ;;  %v5657_v1 = vpack.c.bf16 %v8289_v48, %v8288_v34  ;;  %v7040_v29 = vpack.c.bf16 %v1958_v43, %v1955_v36  ;;  %v7042_v15 = vsub.f32 %v1917_v0, %v1955_v36  ;;  %v8296_v51 = vld [vmem:[#allocation27_spill] sm:$0xff]  ;;  %v8306_v34 = vld [vmem:[#allocation33_spill] sm:$0xff] }
 0x1fa   :  { %8284 = vst [vmem:[#allocation40_spill] sm:$0xff] %v7019_v19  ;;  %8285 = vst [vmem:[#allocation51_spill] sm:$0xff] %v7023_v17  ;;  %5652 = vmatpush1.bf16.msra.mxu1 %v5651_v39  ;;  %5776 = vmatpush3.bf16.msra.mxu0 %v7019_v19  ;;  %v7044_v18 = vsub.f32 %v1918_v6, %v1958_v43  ;;  %v8291_v52 = vand.u32 4294901760, %v8218_v9  ;;  %v8292_v39 = vand.u32 4294901760, %v8219_v12  ;;  %v8295_v0 = vand.u32 4294901760, %v8222_v13  ;;  %v8300_v6 = vld [vmem:[#allocation29_spill] sm:$0xff] }
 0x1fb   :  { %5654 = vmatprep.subr.bf16.mxu1 %v5653_v4  ;;  %5778 = vmatprep.subr.bf16.mxu0 %v7023_v17  ;;  %8290 = vst [vmem:[#allocation52_spill] sm:$0xff] %v7040_v29  ;;  %v5661_v2 = vpack.c.bf16 %v8294_v5, %v8293_v44  ;;  %v8297_v4 = vand.u32 4294901760, %v8296_v51  ;;  %v8301_v12 = vand.u32 4294901760, %v8300_v6  ;;  %v8303_v23 = vand.u32 4294901760, %v8302_v21  ;;  %v8304_v36 = vld [vmem:[#allocation31_spill] sm:$0xff] }
 0x1fc   :  { %v5659_v56 = vpack.c.bf16 %v8292_v39, %v8291_v52  ;;  %v8305_v20 = vand.u32 4294901760, %v8304_v36  ;;  %v8307_v48 = vand.u32 4294901760, %v8306_v34  ;;  %v8310_v39 = vand.u32 4294901760, %v8228_v53 }
 0x1fd   :  { %v5663_v35 = vpack.c.bf16 %v8297_v4, %v8295_v0  ;;  %v8314_v0 = vand.u32 4294901760, %v8188_v55  ;;  %v8315_v4 = vand.u32 4294901760, %v8230_v16  ;;  %v8318_v53 = vand.u32 4294901760, %v8233_v47 }
 0x1fe   :  { %5656 = vmatpush1.bf16.msra.mxu1 %v5655_v25  ;;  %5780 = vmatpush3.bf16.msra.mxu0 %v7040_v29  ;;  %v8298_v25 = vld [vmem:[#allocation28_spill] sm:$0xff]  ;;  %v5667_v43 = vpack.c.bf16 %v8305_v20, %v8303_v23  ;;  %v8321_v55 = vand.u32 4294901760, %v8236_v26  ;;  %v8322_v16 = vand.u32 4294901760, %v8237_v42  ;;  %v8325_v47 = vand.u32 4294901760, %v6544_v33 }
 0x1ff   :  { %5658 = vmatprep.subr.bf16.mxu1 %v5657_v1  ;;  %v8299_v9 = vand.u32 4294901760, %v8298_v25  ;;  %v8308_v1 = vld [vmem:[#allocation34_spill] sm:$0xff]  ;;  %v8328_v26 = vand.u32 4294901760, %v6550_v10  ;;  %v8329_v42 = vand.u32 4294901760, %v6552_v8  ;;  %v8332_v33 = vand.u32 4294901760, %v6558_v59 }
 0x200   :  { %v8309_v13 = vand.u32 4294901760, %v8308_v1  ;;  %v5681_v21 = vpack.c.bf16 %v8322_v16, %v8321_v55  ;;  %v8335_v10 = vand.u32 4294901760, %v6564_v14  ;;  %v8336_v8 = vand.u32 4294901760, %v6566_v27  ;;  %v8346_v27 = vld [vmem:[#allocation72_spill] sm:$0xff]  ;;  %v8359_v55 = vld [vmem:[#allocation81_spill] sm:$0xff]  ;;  %v8360_v16 = vld [vmem:[#allocation6_spill] sm:$0xff] }
 0x201   :  { %v5665_v3 = vpack.c.bf16 %v8301_v12, %v8299_v9  ;;  %v8317_v9 = vand.u32 4294901760, %v8232_v24  ;;  %v8319_v12 = vand.u32 4294901760, %v8234_v32  ;;  %v8324_v24 = vand.u32 4294901760, %v8207_v28 }
 0x202   :  { %5660 = vmatpush1.bf16.msra.mxu1 %v5659_v56  ;;  %v5669_v52 = vpack.c.bf16 %v8309_v13, %v8307_v48  ;;  %v8311_v56 = vld [vmem:[#allocation36_spill] sm:$0xff]  ;;  %v8326_v32 = vand.u32 4294901760, %v6546_v54  ;;  %v8331_v28 = vand.u32 4294901760, %v6556_v61  ;;  %v8333_v54 = vand.u32 4294901760, %v6560_v11 }
 0x203   :  { %5662 = vmatprep.subr.bf16.mxu1 %v5661_v2  ;;  %v8312_v44 = vand.u32 4294901760, %v8311_v56  ;;  %v8313_v2 = vand.u32 4294901760, %v8229_v38  ;;  %v5677_v6 = vpack.c.bf16 %v8318_v53, %v8317_v9  ;;  %v8320_v38 = vand.u32 4294901760, %v8235_v50  ;;  %v8354_v9 = vld [vmem:[#allocation78_spill] sm:$0xff] }
 0x204   :  { %v5685_v36 = vpack.c.bf16 %v8326_v32, %v8325_v47  ;;  %v8327_v50 = vand.u32 4294901760, %v6548_v31  ;;  %v5691_v34 = vpack.c.bf16 %v8332_v33, %v8331_v28  ;;  %v8334_v31 = vand.u32 4294901760, %v6562_v49  ;;  %v8342_v49 = vld [vmem:[#allocation69_spill] sm:$0xff]  ;;  %v8365_v47 = vld [vmem:[#allocation15_spill] sm:$0xff]  ;;  %v8366_v32 = vld [vmem:[#allocation20_spill] sm:$0xff] }
 0x205   :  { %v5671_v5 = vpack.c.bf16 %v8312_v44, %v8310_v39  ;;  %v5673_v51 = vpack.c.bf16 %v8314_v0, %v8313_v2  ;;  %v5695_v1 = vpack.c.bf16 %v8336_v8, %v8335_v10  ;;  %v8338_v61 = vand.u32 4294901760, %v6570_v30  ;;  %v8344_v44 = vld [vmem:[#allocation70_spill] sm:$0xff]  ;;  %v8348_v0 = vld [vmem:[#allocation73_spill] sm:$0xff]  ;;  %v8350_v30 = vld [vmem:[#allocation75_spill] sm:$0xff] }
 0x206   :  { %5664 = vmatpush1.bf16.msra.mxu1 %v5663_v35  ;;  %v8316_v35 = vand.u32 4294901760, %v8231_v40  ;;  %v8323_v40 = vand.u32 4294901760, %v8206_v37  ;;  %v5687_v20 = vpack.c.bf16 %v8328_v26, %v8327_v50  ;;  %v8330_v37 = vand.u32 4294901760, %v6554_v60  ;;  %v8368_v50 = vld [vmem:[#allocation26_spill] sm:$0xff]  ;;  %v8369_v26 = vld [vmem:[#allocation32_spill] sm:$0xff]  ;;  %v8374_v28 = vld [vmem:[#allocation53_spill] sm:$0xff] }
 0x207   :  { %5666 = vmatprep.subr.bf16.mxu1 %v5665_v3  ;;  %v5679_v3 = vpack.c.bf16 %v8320_v38, %v8319_v12  ;;  %v5693_v48 = vpack.c.bf16 %v8334_v31, %v8333_v54  ;;  %v8337_v60 = vand.u32 4294901760, %v6568_v63  ;;  %v8339_v59 = vand.u32 4294901760, %v6572_v46  ;;  %v8375_v33 = vld [vmem:[#allocation54_spill] sm:$0xff]  ;;  %v8377_v54 = vld [vmem:[#allocation56_spill] sm:$0xff]  ;;  %v8378_v31 = vld [vmem:[#allocation57_spill] sm:$0xff] }
 0x208   :  { %v5675_v25 = vpack.c.bf16 %v8316_v35, %v8315_v4  ;;  %v5683_v23 = vpack.c.bf16 %v8324_v24, %v8323_v40  ;;  %v8343_v56 = vand.u32 4294901760, %v8342_v49  ;;  %v8345_v14 = vand.u32 4294901760, %v8344_v44  ;;  %v8352_v35 = vld [vmem:[#allocation76_spill] sm:$0xff]  ;;  %v8362_v40 = vld [vmem:[#allocation7_spill] sm:$0xff]  ;;  %v8363_v24 = vld [vmem:[#allocation9_spill] sm:$0xff] }
 0x209   :  { %v5697_v13 = vpack.c.bf16 %v8338_v61, %v8337_v60  ;;  %v8347_v2 = vand.u32 4294901760, %v8346_v27  ;;  %v8349_v63 = vand.u32 4294901760, %v8348_v0  ;;  %v8351_v4 = vand.u32 4294901760, %v8350_v30  ;;  %v8380_v10 = vld [vmem:[#allocation59_spill] sm:$0xff]  ;;  %v8381_v8 = vld [vmem:[#allocation60_spill] sm:$0xff]  ;;  %v8383_v60 = vld [vmem:[#allocation62_spill] sm:$0xff] }
 0x20a   :  { %5668 = vmatpush1.bf16.msra.mxu1 %v5667_v43  ;;  %v5689_v43 = vpack.c.bf16 %v8330_v37, %v8329_v42  ;;  %v8353_v46 = vand.u32 4294901760, %v8352_v35  ;;  %v8355_v53 = vand.u32 4294901760, %v8354_v9  ;;  %v8371_v42 = vld [vmem:[#allocation39_spill] sm:$0xff]  ;;  %v8390_v49 = vld [vmem:[#allocation74_spill] sm:$0xff]  ;;  %v1920_v0 = vld [vmem:[#allocation2 + $0x270] sm:$0xff] }
 0x20b   :  { %5670 = vmatprep.subr.bf16.mxu1 %v5669_v52  ;;  %v8340_v52 = vld [vmem:[#allocation67_spill] sm:$0xff] }
 0x20c   :  { %v8341_v11 = vand.u32 4294901760, %v8340_v52  ;;  %v8372_v37 = vld [vmem:[#allocation43_spill] sm:$0xff]  ;;  %v8387_v52 = vld [vmem:[#allocation66_spill] sm:$0xff] }
 0x20d   :  { %v8384_v61 = vld [vmem:[#allocation63_spill] sm:$0xff] }
 0x20e   :  { %5672 = vmatpush1.bf16.msra.mxu1 %v5671_v5  ;;  %v5699_v39 = vpack.c.bf16 %v8341_v11, %v8339_v59  ;;  %v5701_v5 = vpack.c.bf16 %v8345_v14, %v8343_v56  ;;  %v8386_v59 = vld [vmem:[#allocation65_spill] sm:$0xff]  ;;  %v8388_v11 = vld [vmem:[#allocation68_spill] sm:$0xff]  ;;  %v1935_v44 = vld [vmem:[#allocation2 + $0x360] sm:$0xff] }
 0x20f   :  { %5674 = vmatprep.subr.bf16.mxu1 %v5673_v51  ;;  %v5703_v51 = vpack.c.bf16 %v8349_v63, %v8347_v2  ;;  %v8391_v56 = vld [vmem:[#allocation77_spill] sm:$0xff]  ;;  %v1919_v2 = vld [vmem:[#allocation2 + $0x260] sm:$0xff] }
 0x210   :  { %v1936_v14 = vld [vmem:[#allocation2 + $0x370] sm:$0xff]  ;;  %v1961_v63 = vand.u32 4294901760, %v1919_v2  ;;  %v1937_v35 = vld [vmem:[#allocation2 + $0x380] sm:$0xff] }
 0x211   :  { %v2012_v27 = vand.u32 4294901760, %v1936_v14 }
 0x212   :  { %5676 = vmatpush1.bf16.msra.mxu1 %v5675_v25  ;;  %v5705_v25 = vpack.c.bf16 %v8353_v46, %v8351_v4  ;;  %v1938_v46 = vld [vmem:[#allocation2 + $0x390] sm:$0xff] }
 0x213   :  { %5678 = vmatprep.subr.bf16.mxu1 %v5677_v6  ;;  %v8356_v6 = vld [vmem:[#allocation79_spill] sm:$0xff]  ;;  %v2018_v9 = vand.u32 4294901760, %v1938_v46 }
 0x214   :  { %v8357_v12 = vand.u32 4294901760, %v8356_v6  ;;  %v1922_v6 = vld [vmem:[#allocation2 + $0x290] sm:$0xff] }
 0x216   :  { %5680 = vmatpush1.bf16.msra.mxu1 %v5679_v3  ;;  %v5707_v38 = vpack.c.bf16 %v8357_v12, %v8355_v53  ;;  %v8358_v3 = vld [vmem:[#allocation5_spill] sm:$0xff]  ;;  %v1921_v53 = vld [vmem:[#allocation2 + $0x280] sm:$0xff] }
 0x217   :  { %5682 = vmatprep.subr.bf16.mxu1 %v5681_v21  ;;  %v8361_v21 = vld [vmem:[#allocation82_spill] sm:$0xff]  ;;  %v1967_v12 = vand.u32 4294901760, %v1921_v53 }
 0x21a   :  { %5684 = vmatpush1.bf16.msra.mxu1 %v5683_v23  ;;  %v8364_v23 = vld [vmem:[#allocation11_spill] sm:$0xff] }
 0x21b   :  { %5686 = vmatprep.subr.bf16.mxu1 %v5685_v36  ;;  %v8367_v36 = vld [vmem:[#allocation23_spill] sm:$0xff] }
 0x21e   :  { %5688 = vmatpush1.bf16.msra.mxu1 %v5687_v20  ;;  %v8370_v20 = vld [vmem:[#allocation37_spill] sm:$0xff] }
 0x21f   :  { %5690 = vmatprep.subr.bf16.mxu1 %v5689_v43  ;;  %v8373_v43 = vld [vmem:[#allocation49_spill] sm:$0xff] }
 0x222   :  { %5692 = vmatpush1.bf16.msra.mxu1 %v5691_v34  ;;  %v8376_v34 = vld [vmem:[#allocation55_spill] sm:$0xff] }
 0x223   :  { %5694 = vmatprep.subr.bf16.mxu1 %v5693_v48  ;;  %v8379_v48 = vld [vmem:[#allocation58_spill] sm:$0xff] }
 0x226   :  { %5696 = vmatpush1.bf16.msra.mxu1 %v5695_v1  ;;  %v8382_v1 = vld [vmem:[#allocation61_spill] sm:$0xff] }
 0x227   :  { %5698 = vmatprep.subr.bf16.mxu1 %v5697_v13  ;;  %v8385_v13 = vld [vmem:[#allocation64_spill] sm:$0xff] }
 0x22a   :  { %5700 = vmatpush1.bf16.msra.mxu1 %v5699_v39  ;;  %v8389_v39 = vld [vmem:[#allocation71_spill] sm:$0xff] }
 0x22b   :  { %5702 = vmatprep.subr.bf16.mxu1 %v5701_v5  ;;  %v2009_v5 = vand.u32 4294901760, %v1935_v44 }
 0x22d   :  { %v7182_v30 = vpack.c.bf16 %v2012_v27, %v2009_v5 }
 0x22e   :  { %5704 = vmatpush1.bf16.msra.mxu1 %v5703_v51  ;;  %v1964_v51 = vand.u32 4294901760, %v1920_v0 }
 0x22f   :  { %5706 = vmatprep.subr.bf16.mxu1 %v5705_v25  ;;  %8392 = vst [vmem:[#allocation84_spill] sm:$0xff] %v7182_v30  ;;  %5782 = vmatprep.subr.bf16.mxu0 %v7182_v30  ;;  %v2015_v25 = vand.u32 4294901760, %v1937_v35 }
 0x230   :  { %v7184_v4 = vpack.c.bf16 %v1964_v51, %v1961_v63 }
 0x232   :  { %5708 = vmatpush1.bf16.msra.mxu1 %v5707_v38  ;;  %8393 = vst [vmem:[#allocation8_spill] sm:$0xff] %v7184_v4  ;;  %5784 = vmatpush3.bf16.msra.mxu0 %v7184_v4  ;;  %v1970_v38 = vand.u32 4294901760, %v1922_v6 }
 0x233   :  { %5710 = vmatprep.subr.bf16.mxu1 %v8358_v3  ;;  %v7188_v3 = vpack.c.bf16 %v2018_v9, %v2015_v25 }
 0x235   :  { %1770 = vmatmul.mubr.f32.vlgmr.msra.gmra.mrb[0].mxu1 %v8359_v55  ;;  %8394 = vst [vmem:[#allocation10_spill] sm:$0xff] %v7188_v3  ;;  %5786 = vmatprep.subr.bf16.mxu0 %v7188_v3  ;;  %v7222_v3 = vsub.f32 %v1922_v6, %v1970_v38 }
 0x236   :  { %5712 = vmatpush1.bf16.msra.mxu1 %v8360_v16  ;;  %1905 = vmatprep.mubr.f32.mxu1 %v8361_v21  ;;  %v1939_v16 = vld [vmem:[#allocation2 + $0x3a0] sm:$0xff]  ;;  %v1940_v21 = vld [vmem:[#allocation2 + $0x3b0] sm:$0xff] }
 0x237   :  { %5714 = vmatprep.subr.bf16.mxu1 %v8362_v40  ;;  %v2021_v40 = vand.u32 4294901760, %v1939_v16  ;;  %8401 = vst [vmem:[#allocation19_spill] sm:$0xff] %v7222_v3 }
 0x23a   :  { %5716 = vmatpush1.bf16.msra.mxu1 %v8363_v24  ;;  %v2024_v24 = vand.u32 4294901760, %v1940_v21 }
 0x23b   :  { %5718 = vmatprep.subr.bf16.mxu1 %v8364_v23  ;;  %v1923_v23 = vld [vmem:[#allocation2 + $0x2a0] sm:$0xff] }
 0x23e   :  { %5720 = vmatpush1.bf16.msra.mxu1 %v8365_v47  ;;  %v1924_v47 = vld [vmem:[#allocation2 + $0x2b0] sm:$0xff] }
 0x23f   :  { %5722 = vmatprep.subr.bf16.mxu1 %v8366_v32  ;;  %v1973_v32 = vand.u32 4294901760, %v1923_v23 }
 0x242   :  { %5724 = vmatpush1.bf16.msra.mxu1 %v8367_v36  ;;  %v1976_v36 = vand.u32 4294901760, %v1924_v47 }
 0x243   :  { %5726 = vmatprep.subr.bf16.mxu1 %v8368_v50  ;;  %v7194_v50 = vpack.c.bf16 %v2024_v24, %v2021_v40 }
 0x245   :  { %8396 = vst [vmem:[#allocation13_spill] sm:$0xff] %v7194_v50 }
 0x246   :  { %5728 = vmatpush1.bf16.msra.mxu1 %v8369_v26  ;;  %v7196_v26 = vpack.c.bf16 %v1976_v36, %v1973_v32 }
 0x247   :  { %5730 = vmatprep.subr.bf16.mxu1 %v8370_v20  ;;  %v1941_v20 = vld [vmem:[#allocation2 + $0x3c0] sm:$0xff] }
 0x248   :  { %8397 = vst [vmem:[#allocation14_spill] sm:$0xff] %v7196_v26 }
 0x24a   :  { %5732 = vmatpush1.bf16.msra.mxu1 %v8371_v42  ;;  %v1942_v42 = vld [vmem:[#allocation2 + $0x3d0] sm:$0xff] }
 0x24b   :  { %5734 = vmatprep.subr.bf16.mxu1 %v8372_v37  ;;  %v2027_v37 = vand.u32 4294901760, %v1941_v20 }
 0x24e   :  { %5736 = vmatpush1.bf16.msra.mxu1 %v8373_v43  ;;  %v2030_v43 = vand.u32 4294901760, %v1942_v42 }
 0x24f   :  { %5738 = vmatprep.subr.bf16.mxu1 %v8374_v28  ;;  %v1925_v28 = vld [vmem:[#allocation2 + $0x2c0] sm:$0xff] }
 0x252   :  { %5740 = vmatpush1.bf16.msra.mxu1 %v8375_v33  ;;  %v1926_v33 = vld [vmem:[#allocation2 + $0x2d0] sm:$0xff] }
 0x253   :  { %5742 = vmatprep.subr.bf16.mxu1 %v8376_v34  ;;  %v1979_v34 = vand.u32 4294901760, %v1925_v28 }
 0x256   :  { %5744 = vmatpush1.bf16.msra.mxu1 %v8377_v54  ;;  %v1982_v54 = vand.u32 4294901760, %v1926_v33 }
 0x257   :  { %5746 = vmatprep.subr.bf16.mxu1 %v8378_v31  ;;  %v7200_v31 = vpack.c.bf16 %v2030_v43, %v2027_v37 }
 0x259   :  { %8398 = vst [vmem:[#allocation16_spill] sm:$0xff] %v7200_v31 }
 0x25a   :  { %5748 = vmatpush1.bf16.msra.mxu1 %v8379_v48  ;;  %v7202_v48 = vpack.c.bf16 %v1982_v54, %v1979_v34 }
 0x25b   :  { %5750 = vmatprep.subr.bf16.mxu1 %v8380_v10  ;;  %v1943_v10 = vld [vmem:[#allocation2 + $0x3e0] sm:$0xff] }
 0x25c   :  { %8399 = vst [vmem:[#allocation17_spill] sm:$0xff] %v7202_v48 }
 0x25e   :  { %5752 = vmatpush1.bf16.msra.mxu1 %v8381_v8  ;;  %v1944_v8 = vld [vmem:[#allocation2 + $0x3f0] sm:$0xff] }
 0x25f   :  { %5754 = vmatprep.subr.bf16.mxu1 %v8382_v1  ;;  %v2033_v1 = vand.u32 4294901760, %v1943_v10 }
 0x262   :  { %5756 = vmatpush1.bf16.msra.mxu1 %v8383_v60  ;;  %v2036_v60 = vand.u32 4294901760, %v1944_v8 }
 0x263   :  { %5758 = vmatprep.subr.bf16.mxu1 %v8384_v61  ;;  %v1927_v61 = vld [vmem:[#allocation2 + $0x2e0] sm:$0xff] }
 0x266   :  { %5760 = vmatpush1.bf16.msra.mxu1 %v8385_v13  ;;  %v1928_v13 = vld [vmem:[#allocation2 + $0x2f0] sm:$0xff] }
 0x267   :  { %5762 = vmatprep.subr.bf16.mxu1 %v8386_v59  ;;  %v7206_v59 = vpack.c.bf16 %v2036_v60, %v2033_v1 }
 0x269   :  { %8400 = vst [vmem:[#allocation18_spill] sm:$0xff] %v7206_v59 }
 0x26a   :  { %5764 = vmatpush1.bf16.msra.mxu1 %v8387_v52  ;;  %v1985_v52 = vand.u32 4294901760, %v1927_v61 }
 0x26b   :  { %5766 = vmatprep.subr.bf16.mxu1 %v8388_v11  ;;  %v1988_v11 = vand.u32 4294901760, %v1928_v13 }
 0x26d   :  { %v7245_v6 = vpack.c.bf16 %v1988_v11, %v1985_v52 }
 0x26e   :  { %5768 = vmatpush1.bf16.msra.mxu1 %v8389_v39  ;;  %v7208_v39 = vsub.f32 %v1935_v44, %v2009_v5  ;;  %v7227_v44 = vsub.f32 %v1940_v21, %v2024_v24  ;;  %v7231_v5 = vsub.f32 %v1924_v47, %v1976_v36  ;;  %v8025_v47 = vand.u32 4294901760, %v7015_v58 }
 0x26f   :  { %5770 = vmatprep.subr.bf16.mxu1 %v8390_v49  ;;  %v7210_v49 = vsub.f32 %v1936_v14, %v2012_v27  ;;  %v7229_v14 = vsub.f32 %v1923_v23, %v1973_v32  ;;  %v1945_v27 = vld [vmem:[#allocation2 + $0x400] sm:$0xff]  ;;  %8412 = vst [vmem:[#allocation46_spill] sm:$0xff] %v7245_v6  ;;  %v8026_v23 = vand.u32 4294901760, %v7013_v57  ;;  %v8023_v32 = vand.u32 4294901760, %v7017_v62 }
 0x270   :  { %8403 = vst [vmem:[#allocation22_spill] sm:$0xff] %v7227_v44  ;;  %8405 = vst [vmem:[#allocation25_spill] sm:$0xff] %v7231_v5 }
 0x271   :  { %8404 = vst [vmem:[#allocation24_spill] sm:$0xff] %v7229_v14 }
 0x272   :  { %5772 = vmatpush1.bf16.msra.mxu1 %v8391_v56  ;;  %v7212_v56 = vsub.f32 %v1919_v2, %v1961_v63  ;;  %v1946_v2 = vld [vmem:[#allocation2 + $0x410] sm:$0xff]  ;;  %v7233_v63 = vsub.f32 %v1941_v20, %v2027_v37 }
 0x273   :  { %v2042_v21 = vand.u32 4294901760, %v1946_v2 }
 0x274   :  { %8406 = vst [vmem:[#allocation35_spill] sm:$0xff] %v7233_v63 }
 0x275   :  { %1907 = vmatmul.mubr.f32.vlgmr.msra.gmra.mrb[0].mxu1 %v8359_v55  ;;  %v7190_v55 = vpack.c.bf16 %v1970_v38, %v1967_v12  ;;  %v7249_v38 = vsub.f32 %v1928_v13, %v1988_v11  ;;  %v8015_v13 = vand.u32 4294901760, %v7042_v15 }
 0x277   :  { %8395 = vst [vmem:[#allocation12_spill] sm:$0xff] %v7190_v55  ;;  %5788 = vmatpush3.bf16.msra.mxu0 %v7190_v55  ;;  %v7220_v55 = vsub.f32 %v1921_v53, %v1967_v12  ;;  %v7243_v53 = vsub.f32 %v1944_v8, %v2036_v60  ;;  %v7247_v12 = vsub.f32 %v1927_v61, %v1985_v52  ;;  %8414 = vst [vmem:[#allocation48_spill] sm:$0xff] %v7249_v38 }
 0x278   :  { %5790 = vmatprep.subr.bf16.mxu0 %v7194_v50  ;;  %v7216_v50 = vsub.f32 %v1937_v35, %v2015_v25  ;;  %v7237_v35 = vsub.f32 %v1925_v28, %v1979_v34  ;;  %v1930_v25 = vld [vmem:[#allocation2 + $0x310] sm:$0xff]  ;;  %v2183_v34 = vsub.f32 %v7015_v58, %v8025_v47  ;;  %v8013_v8 = vand.u32 4294901760, %v7025_v45 }
 0x279   :  { %8411 = vst [vmem:[#allocation45_spill] sm:$0xff] %v7243_v53  ;;  %8413 = vst [vmem:[#allocation47_spill] sm:$0xff] %v7247_v12  ;;  %v1994_v24 = vand.u32 4294901760, %v1930_v25  ;;  %v8022_v52 = vand.u32 4294901760, %v7044_v18 }
 0x27a   :  { %8408 = vst [vmem:[#allocation41_spill] sm:$0xff] %v7237_v35  ;;  %v2184_v61 = vand.u32 4294901760, %v2183_v34 }
 0x27b   :  { %5792 = vmatpush3.bf16.msra.mxu0 %v7196_v26  ;;  %v7214_v26 = vsub.f32 %v1920_v0, %v1964_v51  ;;  %v1929_v0 = vld [vmem:[#allocation2 + $0x300] sm:$0xff]  ;;  %v7235_v51 = vsub.f32 %v1942_v42, %v2030_v43  ;;  %v7259_v42 = vsub.f32 %v1946_v2, %v2042_v21  ;;  %v7265_v28 = vsub.f32 %v1930_v25, %v1994_v24 }
 0x27c   :  { %5794 = vmatprep.subr.bf16.mxu0 %v7200_v31  ;;  %v7218_v31 = vsub.f32 %v1938_v46, %v2018_v9  ;;  %v7239_v46 = vsub.f32 %v1926_v33, %v1982_v54  ;;  %v7241_v9 = vsub.f32 %v1943_v10, %v2033_v1  ;;  %v2176_v33 = vsub.f32 %v7013_v57, %v8026_v23 }
 0x27d   :  { %8407 = vst [vmem:[#allocation38_spill] sm:$0xff] %v7235_v51  ;;  %8416 = vst [vmem:[#allocation83_spill] sm:$0xff] %v7259_v42  ;;  %v2064_v54 = vsub.f32 %v7017_v62, %v8023_v32  ;;  %v8014_v10 = vand.u32 4294901760, %v7021_v7  ;;  %v8016_v1 = vand.u32 4294901760, %v7032_v41  ;;  %v2190_v2 = vsub.f32 %v7025_v45, %v8013_v8 }
 0x27e   :  { %8409 = vst [vmem:[#allocation42_spill] sm:$0xff] %v7239_v46  ;;  %8410 = vst [vmem:[#allocation44_spill] sm:$0xff] %v7241_v9  ;;  %v2177_v60 = vand.u32 4294901760, %v2176_v33 }
 0x27f   :  { %5796 = vmatpush3.bf16.msra.mxu0 %v7202_v48  ;;  %v7225_v48 = vsub.f32 %v1939_v16, %v2021_v40  ;;  %v2039_v16 = vand.u32 4294901760, %v1945_v27  ;;  %v1991_v40 = vand.u32 4294901760, %v1929_v0  ;;  %8418 = vst [vmem:[#allocation28_spill] sm:$0xff] %v7265_v28  ;;  %v2065_v11 = vand.u32 4294901760, %v2064_v54 }
 0x280   :  { %5798 = vmatprep.subr.bf16.mxu0 %v7206_v59  ;;  %v5805_v25 = vpack.c.bf16 %v2184_v61, %v2177_v60  ;;  %v2191_v33 = vand.u32 4294901760, %v2190_v2  ;;  %v8020_v54 = vand.u32 4294901760, %v7210_v49  ;;  %v8018_v61 = vand.u32 4294901760, %v7212_v56 }
 0x281   :  { %8402 = vst [vmem:[#allocation21_spill] sm:$0xff] %v7225_v48  ;;  %v7255_v36 = vpack.c.bf16 %v2042_v21, %v2039_v16  ;;  %v7257_v20 = vsub.f32 %v1945_v27, %v2039_v16  ;;  %v7261_v37 = vsub.f32 %v1929_v0, %v1991_v40  ;;  %v7263_v43 = vpack.c.bf16 %v1994_v24, %v1991_v40 }
 0x282   :  { %v2071_v27 = vsub.f32 %v7021_v7, %v8014_v10  ;;  %v2197_v0 = vsub.f32 %v7032_v41, %v8016_v1  ;;  %v2078_v16 = vsub.f32 %v7042_v15, %v8015_v13  ;;  %v2085_v21 = vsub.f32 %v7044_v18, %v8022_v52 }
 0x283   :  { %5800 = vmatpush3.bf16.msra.mxu0 %v7245_v6  ;;  %8415 = vst [vmem:[#allocation50_spill] sm:$0xff] %v7255_v36  ;;  %8417 = vst [vmem:[#allocation27_spill] sm:$0xff] %v7263_v43  ;;  %v8017_v40 = vand.u32 4294901760, %v7208_v39  ;;  %v8019_v2 = vand.u32 4294901760, %v7214_v26  ;;  %v8061_v59 = vand.u32 4294901760, %v7265_v28 }
 0x284   :  { %5802 = vmatprep.subr.bf16.mxu0 %v7255_v36  ;;  %v2072_v24 = vand.u32 4294901760, %v2071_v27  ;;  %v2198_v34 = vand.u32 4294901760, %v2197_v0  ;;  %v2079_v8 = vand.u32 4294901760, %v2078_v16  ;;  %v2086_v10 = vand.u32 4294901760, %v2085_v21 }
 0x285   :  { %v2204_v60 = vsub.f32 %v7208_v39, %v8017_v40  ;;  %v2211_v27 = vsub.f32 %v7210_v49, %v8020_v54  ;;  %v2092_v16 = vsub.f32 %v7212_v56, %v8018_v61  ;;  %v8021_v21 = vand.u32 4294901760, %v7216_v50 }
 0x286   :  { %v7304_v13 = vpack.c.bf16 %v2072_v24, %v2065_v11  ;;  %v7306_v1 = vpack.c.bf16 %v2198_v34, %v2191_v33  ;;  %v7312_v0 = vpack.c.bf16 %v2086_v10, %v2079_v8  ;;  %v2099_v11 = vsub.f32 %v7214_v26, %v8019_v2 }
 0x287   :  { %5804 = vmatpush3.bf16.msra.mxu0 %v7263_v43  ;;  %v2212_v40 = vand.u32 4294901760, %v2211_v27  ;;  %v8024_v24 = vand.u32 4294901760, %v7218_v31  ;;  %v8028_v33 = vand.u32 4294901760, %v7220_v55  ;;  %v2093_v34 = vand.u32 4294901760, %v2092_v16 }
 0x288   :  { %5806 = vmatprep.subr.bf16.mxu0 %v5805_v25  ;;  %v2205_v25 = vand.u32 4294901760, %v2204_v60  ;;  %v2218_v10 = vsub.f32 %v7216_v50, %v8021_v21  ;;  %v8027_v8 = vand.u32 4294901760, %v7222_v3  ;;  %v8029_v60 = vand.u32 4294901760, %v7225_v48 }
 0x289   :  { %v2100_v27 = vand.u32 4294901760, %v2099_v11  ;;  %v2225_v2 = vsub.f32 %v7218_v31, %v8024_v24  ;;  %v2106_v54 = vsub.f32 %v7220_v55, %v8028_v33  ;;  %v8031_v24 = vand.u32 4294901760, %v7229_v14 }
 0x28a   :  { %v7328_v61 = vpack.c.bf16 %v2212_v40, %v2205_v25  ;;  %v2219_v16 = vand.u32 4294901760, %v2218_v10  ;;  %v2113_v21 = vsub.f32 %v7222_v3, %v8027_v8  ;;  %v2232_v52 = vsub.f32 %v7225_v48, %v8029_v60 }
 0x28b   :  { %v8030_v40 = vand.u32 4294901760, %v7227_v44  ;;  %v7343_v25 = vpack.c.bf16 %v2100_v27, %v2093_v34  ;;  %v2226_v11 = vand.u32 4294901760, %v2225_v2  ;;  %v2107_v32 = vand.u32 4294901760, %v2106_v54 }
 0x28c   :  { %v2114_v47 = vand.u32 4294901760, %v2113_v21  ;;  %v2233_v23 = vand.u32 4294901760, %v2232_v52  ;;  %v8032_v8 = vand.u32 4294901760, %v7231_v5  ;;  %v2120_v60 = vsub.f32 %v7229_v14, %v8031_v24 }
 0x28d   :  { %v2239_v10 = vsub.f32 %v7227_v44, %v8030_v40  ;;  %v7350_v33 = vpack.c.bf16 %v2226_v11, %v2219_v16  ;;  %v8035_v34 = vand.u32 4294901760, %v7233_v63  ;;  %v8038_v54 = vand.u32 4294901760, %v7235_v51 }
 0x28e   :  { %v7357_v2 = vpack.c.bf16 %v2114_v47, %v2107_v32  ;;  %v2127_v52 = vsub.f32 %v7231_v5, %v8032_v8  ;;  %v8041_v27 = vand.u32 4294901760, %v7237_v35  ;;  %v2121_v40 = vand.u32 4294901760, %v2120_v60 }
 0x28f   :  { %v2240_v21 = vand.u32 4294901760, %v2239_v10  ;;  %v2246_v16 = vsub.f32 %v7233_v63, %v8035_v34  ;;  %v2253_v11 = vsub.f32 %v7235_v51, %v8038_v54  ;;  %v8042_v24 = vand.u32 4294901760, %v7239_v46 }
 0x290   :  { %v2128_v32 = vand.u32 4294901760, %v2127_v52  ;;  %v2134_v10 = vsub.f32 %v7237_v35, %v8041_v27  ;;  %v8043_v8 = vand.u32 4294901760, %v7241_v9  ;;  %v8044_v36 = vand.u32 4294901760, %v7243_v53 }
 0x291   :  { %v7370_v47 = vpack.c.bf16 %v2240_v21, %v2233_v23  ;;  %v2247_v60 = vand.u32 4294901760, %v2246_v16  ;;  %v2254_v43 = vand.u32 4294901760, %v2253_v11  ;;  %v2141_v34 = vsub.f32 %v7239_v46, %v8042_v24 }
 0x292   :  { %v7380_v54 = vpack.c.bf16 %v2128_v32, %v2121_v40  ;;  %v2135_v6 = vand.u32 4294901760, %v2134_v10  ;;  %v2260_v23 = vsub.f32 %v7241_v9, %v8043_v8  ;;  %v8045_v21 = vand.u32 4294901760, %v7247_v12 }
 0x293   :  { %v7386_v52 = vpack.c.bf16 %v2254_v43, %v2247_v60  ;;  %v2142_v27 = vand.u32 4294901760, %v2141_v34  ;;  %v2267_v16 = vsub.f32 %v7243_v53, %v8044_v36  ;;  %v8048_v11 = vand.u32 4294901760, %v7249_v38 }
 0x294   :  { %v2261_v24 = vand.u32 4294901760, %v2260_v23  ;;  %v2148_v40 = vsub.f32 %v7247_v12, %v8045_v21  ;;  %v8053_v32 = vand.u32 4294901760, %v7257_v20  ;;  %v8060_v10 = vand.u32 4294901760, %v7259_v42 }
 0x295   :  { %v7397_v8 = vpack.c.bf16 %v2142_v27, %v2135_v6  ;;  %v2268_v43 = vand.u32 4294901760, %v2267_v16  ;;  %v2155_v34 = vsub.f32 %v7249_v38, %v8048_v11  ;;  %v8062_v60 = vand.u32 4294901760, %v7261_v37 }
 0x296   :  { %v2149_v36 = vand.u32 4294901760, %v2148_v40  ;;  %v2274_v23 = vsub.f32 %v7257_v20, %v8053_v32  ;;  %v2281_v21 = vsub.f32 %v7259_v42, %v8060_v10  ;;  %v2169_v40 = vsub.f32 %v7265_v28, %v8061_v59 }
 0x297   :  { %v5829_v6 = vpack.c.bf16 %v2268_v43, %v2261_v24  ;;  %v2156_v27 = vand.u32 4294901760, %v2155_v34  ;;  %v2162_v16 = vsub.f32 %v7261_v37, %v8062_v60  ;;  %v5837_v10 = vpack.c.bf16 %v7015_v58, %v7013_v57 }
 0x298   :  { %v2275_v11 = vand.u32 4294901760, %v2274_v23  ;;  %v2282_v4 = vand.u32 4294901760, %v2281_v21  ;;  %v2170_v17 = vand.u32 4294901760, %v2169_v40  ;;  %v5839_v24 = vpack.c.bf16 %v7021_v7, %v7017_v62 }
 0x299   :  { %v5831_v30 = vpack.c.bf16 %v2156_v27, %v2149_v36  ;;  %v2163_v32 = vand.u32 4294901760, %v2162_v16  ;;  %v5841_v43 = vpack.c.bf16 %v7032_v41, %v7025_v45  ;;  %v5843_v21 = vpack.c.bf16 %v7044_v18, %v7042_v15 }
 0x29a   :  { %v5833_v29 = vpack.c.bf16 %v2282_v4, %v2275_v11  ;;  %v5845_v34 = vpack.c.bf16 %v7210_v49, %v7208_v39  ;;  %v5847_v4 = vpack.c.bf16 %v7214_v26, %v7212_v56  ;;  %v5851_v36 = vpack.c.bf16 %v7222_v3, %v7220_v55 }
 0x29b   :  { %v5835_v19 = vpack.c.bf16 %v2170_v17, %v2163_v32  ;;  %v5849_v17 = vpack.c.bf16 %v7218_v31, %v7216_v50  ;;  %v5853_v11 = vpack.c.bf16 %v7227_v44, %v7225_v48  ;;  %v5855_v32 = vpack.c.bf16 %v7231_v5, %v7229_v14  ;;  %v617_v44 = vld [vmem:[#allocation2 + $0x430] ss:$8 sm:$0x3]  ;;  %v8419_v5 = vld [vmem:[#allocation80_spill] sm:$0xff] }
 0x29c   :  { %v5857_v23 = vpack.c.bf16 %v7235_v51, %v7233_v63  ;;  %v5859_v27 = vpack.c.bf16 %v7239_v46, %v7237_v35  ;;  %v5861_v16 = vpack.c.bf16 %v7243_v53, %v7241_v9  ;;  %v5863_v40 = vpack.c.bf16 %v7249_v38, %v7247_v12 }
 0x29d   :  { %v5865_v59 = vpack.c.bf16 %v7259_v42, %v7257_v20  ;;  %v5867_v60 = vpack.c.bf16 %v7265_v28, %v7261_v37  ;;  %v8420_v14 = vsub.s32 0, %v8419_v5  ;;  %v8421_v51 = vsub.s32 1, %v8419_v5 }
 0x29f   :  { %v622_v48 = vrot.slane %v617_v44, %v8420_v14  ;;  %v626_v63 = vrot.slane %v617_v44, %v8421_v51 }
 0x348   :  { %v1908_v46 = vpop.f32.mrb[0].mxu1 }
 0x349   :  { %v6063_v35 = vadd.f32 %v1908_v46, %v622_v48  ;;  %v1910_v3 = vpop.f32.mrb[1].mxu1  ;;  %v8426_v46 = vld [vmem:[#allocation8_spill] sm:$0xff] }
 0x34a   :  { %v6064_v53 = vadd.f32 %v1910_v3, %v626_v63 }
 0x34b   :  { %6171 = vtanh.f32 %v6063_v35  ;;  %v8425_v35 = vld [vmem:[#allocation84_spill] sm:$0xff] }
 0x34c   :  { %6173 = vtanh.f32 %v6064_v53  ;;  %v8427_v53 = vld [vmem:[#allocation10_spill] sm:$0xff] }
 0x355   :  { %v6172_v38 = vpop.eup %6171 }
 0x356   :  { %v6174_v12 = vpop.eup %6173  ;;  %v7452_v9 = vand.u32 4294901760, %v6172_v38 }
 0x357   :  { %v7454_v42 = vand.u32 4294901760, %v6174_v12 }
 0x358   :  { %v7457_v28 = vsub.f32 %v6172_v38, %v7452_v9  ;;  %v8430_v38 = vld [vmem:[#allocation14_spill] sm:$0xff] }
 0x359   :  { %v2045_v14 = vsub.f32 %v6174_v12, %v7454_v42  ;;  %v8428_v12 = vld [vmem:[#allocation12_spill] sm:$0xff] }
 0x35a   :  { %v2052_v5 = vand.u32 4294901760, %v7457_v28 }
 0x35b   :  { %v2046_v44 = vand.u32 4294901760, %v2045_v14 }
 0x35c   :  { %v2053_v3 = vsub.f32 %v7457_v28, %v2052_v5 }
 0x35d   :  { %v2047_v48 = vsub.f32 %v2045_v14, %v2046_v44 }
 0x35e   :  { %v2054_v51 = vand.u32 4294901760, %v2053_v3  ;;  %v8466_v3 = vld [vmem:[#allocation41_spill] sm:$0xff] }
 0x35f   :  { %v2048_v63 = vand.u32 4294901760, %v2047_v48  ;;  %v8467_v48 = vand.u32 4294901760, %v8466_v3 }
 0x361   :  { %2049 = vmatprep.mubr.f32.mxu0 %v2048_v63  ;;  %v8468_v63 = vld [vmem:[#allocation42_spill] sm:$0xff] }
 0x362   :  { %2055 = vmatmul.mubr.f32.vlgmr.msra.gmra.mrb[2].mxu0 %v2054_v51  ;;  %v8469_v51 = vand.u32 4294901760, %v8468_v63 }
 0x363   :  { %5808 = vmatpush3.bf16.msra.mxu0 %v7304_v13  ;;  %2285 = vmatprep.mubr.f32.mxu0 %v7454_v42  ;;  %v8432_v13 = vld [vmem:[#allocation17_spill] sm:$0xff] }
 0x364   :  { %5810 = vmatprep.subr.bf16.mxu0 %v7306_v1  ;;  %v8431_v1 = vld [vmem:[#allocation16_spill] sm:$0xff] }
 0x367   :  { %5812 = vmatpush3.bf16.msra.mxu0 %v7312_v0  ;;  %v8434_v0 = vld [vmem:[#allocation46_spill] sm:$0xff] }
 0x368   :  { %5814 = vmatprep.subr.bf16.mxu0 %v7328_v61  ;;  %v8433_v61 = vld [vmem:[#allocation18_spill] sm:$0xff] }
 0x36b   :  { %5816 = vmatpush3.bf16.msra.mxu0 %v7343_v25  ;;  %v8437_v25 = vand.u32 4294901760, %v7015_v58  ;;  %v8444_v58 = vand.u32 4294901760, %v7044_v18  ;;  %v8451_v18 = vand.u32 4294901760, %v7220_v55 }
 0x36c   :  { %5818 = vmatprep.subr.bf16.mxu0 %v7350_v33  ;;  %v8435_v33 = vld [vmem:[#allocation50_spill] sm:$0xff] }
 0x36f   :  { %5820 = vmatpush3.bf16.msra.mxu0 %v7357_v2  ;;  %v8438_v2 = vld [vmem:[#allocation27_spill] sm:$0xff] }
 0x370   :  { %5822 = vmatprep.subr.bf16.mxu0 %v7370_v47  ;;  %v8439_v47 = vand.u32 4294901760, %v7017_v62 }
 0x373   :  { %5824 = vmatpush3.bf16.msra.mxu0 %v7380_v54 }
 0x374   :  { %5826 = vmatprep.subr.bf16.mxu0 %v7386_v52  ;;  %v8440_v52 = vand.u32 4294901760, %v7021_v7  ;;  %v8445_v7 = vand.u32 4294901760, %v7208_v39 }
 0x377   :  { %5828 = vmatpush3.bf16.msra.mxu0 %v7397_v8  ;;  %v8436_v8 = vand.u32 4294901760, %v7013_v57  ;;  %v8443_v57 = vand.u32 4294901760, %v7042_v15  ;;  %v8450_v15 = vand.u32 4294901760, %v7218_v31  ;;  %v8462_v31 = vld [vmem:[#allocation35_spill] sm:$0xff] }
 0x378   :  { %5830 = vmatprep.subr.bf16.mxu0 %v5829_v6  ;;  %v8442_v6 = vand.u32 4294901760, %v7032_v41  ;;  %v8447_v41 = vand.u32 4294901760, %v7212_v56 }
 0x379   :  { %v5901_v54 = vpack.c.bf16 %v8437_v25, %v8436_v8  ;;  %v5907_v62 = vpack.c.bf16 %v8444_v58, %v8443_v57  ;;  %v5923_v8 = vpack.c.bf16 %v8469_v51, %v8467_v48  ;;  %v8470_v25 = vld [vmem:[#allocation44_spill] sm:$0xff] }
 0x37b   :  { %5832 = vmatpush3.bf16.msra.mxu0 %v5831_v30  ;;  %v8424_v30 = vld [vmem:[#allocation52_spill] sm:$0xff] }
 0x37c   :  { %5834 = vmatprep.subr.bf16.mxu0 %v5833_v29  ;;  %v8423_v29 = vld [vmem:[#allocation51_spill] sm:$0xff] }
 0x37f   :  { %5836 = vmatpush3.bf16.msra.mxu0 %v5835_v19  ;;  %v8422_v19 = vld [vmem:[#allocation40_spill] sm:$0xff] }
 0x380   :  { %5838 = vmatprep.subr.bf16.mxu0 %v5837_v10  ;;  %v5903_v10 = vpack.c.bf16 %v8440_v52, %v8439_v47  ;;  %v8472_v47 = vld [vmem:[#allocation45_spill] sm:$0xff] }
 0x381   :  { %v8473_v52 = vand.u32 4294901760, %v8472_v47  ;;  %v3424_v47 = vld [vmem:[%s7795_s5 + $0x8] sm:$0xff] }
 0x382   :  { %2287 = vmatmul.mubr.f32.vlgmr.msra.gmra.mrb[4].mxu0 %v7452_v9 }
 0x383   :  { %5840 = vmatpush3.bf16.msra.mxu0 %v5839_v24  ;;  %2422 = vmatprep.mubr.f32.mxu0 %v2045_v14  ;;  %v8463_v14 = vand.u32 4294901760, %v8462_v31 }
 0x384   :  { %5842 = vmatprep.subr.bf16.mxu0 %v5841_v43  ;;  %v8446_v43 = vand.u32 4294901760, %v7210_v49  ;;  %v8454_v49 = vld [vmem:[#allocation21_spill] sm:$0xff] }
 0x387   :  { %5844 = vmatpush3.bf16.msra.mxu0 %v5843_v21 }
 0x388   :  { %5846 = vmatprep.subr.bf16.mxu0 %v5845_v34  ;;  %v8449_v34 = vand.u32 4294901760, %v7216_v50 }
 0x38b   :  { %5848 = vmatpush3.bf16.msra.mxu0 %v5847_v4  ;;  %v5913_v4 = vpack.c.bf16 %v8450_v15, %v8449_v34  ;;  %v7603_v15 = vld [vmem:[%s7792_s2 + $0x18] sm:$0xff] }
 0x38c   :  { %5850 = vmatprep.subr.bf16.mxu0 %v5849_v17  ;;  %v8452_v17 = vld [vmem:[#allocation19_spill] sm:$0xff] }
 0x38d   :  { %v8453_v39 = vand.u32 4294901760, %v8452_v17 }
 0x38f   :  { %5852 = vmatpush3.bf16.msra.mxu0 %v5851_v36  ;;  %v5915_v36 = vpack.c.bf16 %v8453_v39, %v8451_v18 }
 0x390   :  { %5854 = vmatprep.subr.bf16.mxu0 %v5853_v11  ;;  %v8455_v11 = vand.u32 4294901760, %v8454_v49 }
 0x393   :  { %5856 = vmatpush3.bf16.msra.mxu0 %v5855_v32  ;;  %v8456_v32 = vld [vmem:[#allocation22_spill] sm:$0xff] }
 0x394   :  { %5858 = vmatprep.subr.bf16.mxu0 %v5857_v23  ;;  %v8457_v56 = vand.u32 4294901760, %v8456_v32 }
 0x396   :  { %v5917_v23 = vpack.c.bf16 %v8457_v56, %v8455_v11 }
 0x397   :  { %5860 = vmatpush3.bf16.msra.mxu0 %v5859_v27 }
 0x398   :  { %5862 = vmatprep.subr.bf16.mxu0 %v5861_v16  ;;  %v8460_v16 = vld [vmem:[#allocation25_spill] sm:$0xff] }
 0x399   :  { %v8461_v50 = vand.u32 4294901760, %v8460_v16 }
 0x39b   :  { %5864 = vmatpush3.bf16.msra.mxu0 %v5863_v40 }
 0x39c   :  { %5866 = vmatprep.subr.bf16.mxu0 %v5865_v59  ;;  %v8429_v59 = vld [vmem:[#allocation13_spill] sm:$0xff] }
 0x39f   :  { %5868 = vmatpush3.bf16.msra.mxu0 %v5867_v60  ;;  %v8441_v60 = vand.u32 4294901760, %v7025_v45  ;;  %v5909_v45 = vpack.c.bf16 %v8446_v43, %v8445_v7  ;;  %v8479_v7 = vld [vmem:[#allocation83_spill] sm:$0xff] }
 0x3a0   :  { %5870 = vmatprep.subr.bf16.mxu0 %v7011_v22  ;;  %v8480_v43 = vand.u32 4294901760, %v8479_v7 }
 0x3a1   :  { %v5905_v24 = vpack.c.bf16 %v8442_v6, %v8441_v60  ;;  %v8474_v60 = vld [vmem:[#allocation47_spill] sm:$0xff] }
 0x3a2   :  { %2425 = vmatmul.mubr.f32.vlgmr.msra.gmra.mrb[6].mxu0 %v7457_v28  ;;  %v8448_v28 = vand.u32 4294901760, %v7214_v26  ;;  %v8458_v26 = vld [vmem:[#allocation24_spill] sm:$0xff]  ;;  %v8475_v6 = vand.u32 4294901760, %v8474_v60 }
 0x3a3   :  { %5872 = vmatpush3.bf16.msra.mxu0 %v8422_v19  ;;  %2529 = vmatprep.mubr.f32.mxu0 %v2046_v44  ;;  %v8459_v27 = vand.u32 4294901760, %v8458_v26 }
 0x3a4   :  { %5874 = vmatprep.subr.bf16.mxu0 %v8423_v29  ;;  %v5911_v21 = vpack.c.bf16 %v8448_v28, %v8447_v41  ;;  %v8481_v41 = vand.u32 4294901760, %v7261_v37  ;;  %v8482_v28 = vld [vmem:[#allocation28_spill] sm:$0xff] }
 0x3a5   :  { %v5919_v40 = vpack.c.bf16 %v8461_v50, %v8459_v27  ;;  %v7583_v37 = vld [vmem:[%s7792_s2 + $0x8] sm:$0xff] }
 0x3a7   :  { %5876 = vmatpush3.bf16.msra.mxu0 %v8424_v30 }
 0x3a8   :  { %5878 = vmatprep.subr.bf16.mxu0 %v8425_v35 }
 0x3ab   :  { %5880 = vmatpush3.bf16.msra.mxu0 %v8426_v46 }
 0x3ac   :  { %5882 = vmatprep.subr.bf16.mxu0 %v8427_v53 }
 0x3af   :  { %5884 = vmatpush3.bf16.msra.mxu0 %v8428_v12 }
 0x3b0   :  { %5886 = vmatprep.subr.bf16.mxu0 %v8429_v59 }
 0x3b3   :  { %5888 = vmatpush3.bf16.msra.mxu0 %v8430_v38 }
 0x3b4   :  { %5890 = vmatprep.subr.bf16.mxu0 %v8431_v1 }
 0x3b7   :  { %5892 = vmatpush3.bf16.msra.mxu0 %v8432_v13 }
 0x3b8   :  { %5894 = vmatprep.subr.bf16.mxu0 %v8433_v61 }
 0x3bb   :  { %5896 = vmatpush3.bf16.msra.mxu0 %v8434_v0 }
 0x3bc   :  { %5898 = vmatprep.subr.bf16.mxu0 %v8435_v33 }
 0x3bf   :  { %5900 = vmatpush3.bf16.msra.mxu0 %v8438_v2 }
 0x3c0   :  { %5902 = vmatprep.subr.bf16.mxu0 %v5901_v54  ;;  %v8471_v54 = vand.u32 4294901760, %v8470_v25 }
 0x3c2   :  { %2533 = vmatmul.mubr.f32.vlgmr.msra.gmra.mrb[8].mxu0 %v2052_v5  ;;  %v8464_v5 = vld [vmem:[#allocation38_spill] sm:$0xff] }
 0x3c3   :  { %5904 = vmatpush3.bf16.msra.mxu0 %v5903_v10  ;;  %2699 = vmatprep.mubr.f32.mxu0 %v7454_v42  ;;  %v8465_v55 = vand.u32 4294901760, %v8464_v5  ;;  %v5925_v10 = vpack.c.bf16 %v8473_v52, %v8471_v54  ;;  %v1947_v5 = vld [vmem:[#allocation2 + $0x440] ss:$0 sm:$0xff]  ;;  %v3425_v52 = vld [vmem:[%s7795_s5 + $0x10] sm:$0xff] }
 0x3c4   :  { %5906 = vmatprep.subr.bf16.mxu0 %v5905_v24  ;;  %v8476_v24 = vld [vmem:[#allocation48_spill] sm:$0xff]  ;;  %v3450_v60 = vand.u32 4294901760, %v3425_v52 }
 0x3c5   :  { %v5921_v44 = vpack.c.bf16 %v8465_v55, %v8463_v14  ;;  %v8477_v57 = vand.u32 4294901760, %v8476_v24  ;;  %v3426_v24 = vld [vmem:[%s7795_s5 + $0x18] sm:$0xff] }
 0x3c6   :  { %v3453_v7 = vand.u32 4294901760, %v3426_v24 }
 0x3c7   :  { %5908 = vmatpush3.bf16.msra.mxu0 %v5907_v62  ;;  %v5927_v58 = vpack.c.bf16 %v8477_v57, %v8475_v6  ;;  %v8478_v62 = vand.u32 4294901760, %v7257_v20  ;;  %v7571_v20 = vld [vmem:[%s7792_s2] sm:$0xff] }
 0x3c8   :  { %5910 = vmatprep.subr.bf16.mxu0 %v5909_v45  ;;  %v3427_v57 = vld [vmem:[%s7795_s5 + $0x20] sm:$0xff] }
 0x3c9   :  { %v5929_v45 = vpack.c.bf16 %v8480_v43, %v8478_v62  ;;  %v3564_v62 = vsub.f32 %v3425_v52, %v3450_v60  ;;  %v3456_v43 = vand.u32 4294901760, %v3427_v57 }
 0x3cb   :  { %5912 = vmatpush3.bf16.msra.mxu0 %v5911_v21  ;;  %v8483_v21 = vand.u32 4294901760, %v8482_v28 }
 0x3cc   :  { %5914 = vmatprep.subr.bf16.mxu0 %v5913_v4 }
 0x3cd   :  { %v5931_v34 = vpack.c.bf16 %v8483_v21, %v8481_v41  ;;  %v3565_v41 = vand.u32 4294901760, %v3564_v62  ;;  %v7648_v21 = vpack.c.bf16 %v3456_v43, %v3453_v7 }
 0x3cf   :  { %5916 = vmatpush3.bf16.msra.mxu0 %v5915_v36 }
 0x3d0   :  { %5918 = vmatprep.subr.bf16.mxu0 %v5917_v23 }
 0x3d3   :  { %5920 = vmatpush3.bf16.msra.mxu0 %v5919_v40 }
 0x3d4   :  { %5922 = vmatprep.subr.bf16.mxu0 %v5921_v44 }
 0x3d7   :  { %5924 = vmatpush3.bf16.msra.mxu0 %v5923_v8 }
 0x3d8   :  { %5926 = vmatprep.subr.bf16.mxu0 %v5925_v10  ;;  %v3447_v10 = vand.u32 4294901760, %v3424_v47 }
 0x3da   :  { %v7638_v6 = vpack.c.bf16 %v3450_v60, %v3447_v10 }
 0x3db   :  { %5928 = vmatpush3.bf16.msra.mxu0 %v5927_v58  ;;  %v3557_v58 = vsub.f32 %v3424_v47, %v3447_v10 }
 0x3dc   :  { %5930 = vmatprep.subr.bf16.mxu0 %v5929_v45 }
 0x3dd   :  { %v3558_v45 = vand.u32 4294901760, %v3557_v58 }
 0x3df   :  { %5932 = vmatpush3.bf16.msra.mxu0 %v5931_v34 }
 0x3e0   :  { %5934 = vmatprep.subr.bf16.mxu0 %v7011_v22  ;;  %v2822_v22 = vld [vmem:[%s7795_s5] sm:$0xf] }
 0x3e2   :  { %2701 = vmatmul.mubr.f32.vlgmr.msra.gmra.mrb[10].mxu0 %v7452_v9 }
 0x3e3   :  { %5936 = vmatpush3.bf16.msra.mxu0 %v8422_v19  ;;  %2803 = vmatprep.mubr.f32.mxu0 %v7454_v42  ;;  %v2830_v42 = vsel %vm2828_vm1, %v7571_v20, 0  ;;  %v2843_v19 = vsel %vm2841_vm2, %v2822_v22, 0  ;;  %v3559_v22 = vsub.f32 %v3557_v58, %v3558_v45 }
 0x3e4   :  { %5938 = vmatprep.subr.bf16.mxu0 %v8423_v29  ;;  %v7588_v29 = vld [vmem:[%s7792_s2 + $0x10] sm:$0xff] }
 0x3e7   :  { %5940 = vmatpush3.bf16.msra.mxu0 %v8424_v30  ;;  %v7591_v30 = vand.u32 4294901760, %v2830_v42 }
 0x3e8   :  { %5942 = vmatprep.subr.bf16.mxu0 %v8425_v35  ;;  %v2833_v35 = vsel %vm2828_vm1, %v7583_v37, 0 }
 0x3e9   :  { %v7605_v4 = vand.u32 4294901760, %v2833_v35 }
 0x3eb   :  { %5944 = vmatpush3.bf16.msra.mxu0 %v8426_v46  ;;  %v7596_v46 = vand.u32 4294901760, %v2843_v19  ;;  %v2922_v39 = vsub.f32 %v2833_v35, %v7605_v4 }
 0x3ec   :  { %5946 = vmatprep.subr.bf16.mxu0 %v8427_v53  ;;  %v2836_v53 = vsel %vm2828_vm1, %v7588_v29, 0 }
 0x3ed   :  { %v2931_v18 = vand.u32 4294901760, %v2836_v53  ;;  %v2953_v17 = vsub.f32 %v2843_v19, %v7596_v46  ;;  %v2923_v32 = vand.u32 4294901760, %v2922_v39  ;;  %v3571_v19 = vsub.f32 %v3426_v24, %v3453_v7 }
 0x3ef   :  { %5948 = vmatpush3.bf16.msra.mxu0 %v8428_v12  ;;  %v2912_v12 = vsub.f32 %v2830_v42, %v7591_v30  ;;  %v2932_v11 = vsub.f32 %v2836_v53, %v2931_v18  ;;  %v2924_v27 = vsub.f32 %v2922_v39, %v2923_v32  ;;  %v3566_v42 = vsub.f32 %v3564_v62, %v3565_v41 }
 0x3f0   :  { %5950 = vmatprep.subr.bf16.mxu0 %v8429_v59  ;;  %v2839_v59 = vsel %vm2828_vm1, %v7603_v15, 0 }
 0x3f1   :  { %v2941_v36 = vand.u32 4294901760, %v2839_v59  ;;  %v2913_v49 = vand.u32 4294901760, %v2912_v12  ;;  %v2933_v26 = vand.u32 4294901760, %v2932_v11  ;;  %v3567_v53 = vand.u32 4294901760, %v3566_v42 }
 0x3f3   :  { %5952 = vmatpush3.bf16.msra.mxu0 %v8430_v38  ;;  %v2954_v38 = vand.u32 4294901760, %v2953_v17  ;;  %v2942_v56 = vsub.f32 %v2839_v59, %v2941_v36  ;;  %v2914_v23 = vsub.f32 %v2912_v12, %v2913_v49 }
 0x3f4   :  { %5954 = vmatprep.subr.bf16.mxu0 %v8431_v1 }
 0x3f5   :  { %v2955_v1 = vsub.f32 %v2953_v17, %v2954_v38  ;;  %v2943_v16 = vand.u32 4294901760, %v2942_v56  ;;  %v2915_v50 = vand.u32 4294901760, %v2914_v23 }
 0x3f7   :  { %5956 = vmatpush3.bf16.msra.mxu0 %v8432_v13  ;;  %v2934_v13 = vsub.f32 %v2932_v11, %v2933_v26  ;;  %v2956_v40 = vand.u32 4294901760, %v2955_v1  ;;  %v2944_v31 = vsub.f32 %v2942_v56, %v2943_v16 }
 0x3f8   :  { %5958 = vmatprep.subr.bf16.mxu0 %v8433_v61  ;;  %v2925_v61 = vand.u32 4294901760, %v2924_v27 }
 0x3fb   :  { %5960 = vmatpush3.bf16.msra.mxu0 %v8434_v0  ;;  %v2935_v0 = vand.u32 4294901760, %v2934_v13 }
 0x3fc   :  { %5962 = vmatprep.subr.bf16.mxu0 %v8435_v33  ;;  %v2945_v33 = vand.u32 4294901760, %v2944_v31  ;;  %v4810_v31 = vld [vmem:[%s7795_s5 + $0x48] ss:$0 sm:$0xff] }
 0x3ff   :  { %5964 = vmatpush3.bf16.msra.mxu0 %v8438_v2 }
 0x400   :  { %5149 = vmatprep.subr.mxu0 %v7596_v46 }
 0x402   :  { %2805 = vmatmul.mubr.f32.vlgmr.msra.gmra.mrb[12].mxu0 %v7452_v9 }
 0x403   :  { %5150 = vmatpush3.msra.mxu0 %v7596_v46  ;;  %5151 = vmatprep.mubr.f32.mxu0 %v2915_v50 }
 0x404   :  { %5157 = vmatprep.subr.mxu0 %v2956_v40 }
 0x406   :  { %5152 = vmatmul.mubr.f32.vlgmr.msra.gmra.mrb[14].mxu0 %v2925_v61 }
 0x407   :  { %5158 = vmatpush3.msra.mxu0 %v2956_v40  ;;  %5154 = vmatprep.mubr.f32.mxu0 %v2935_v0 }
 0x408   :  { %5165 = vmatprep.subr.mxu0 %v2953_v17 }
 0x40a   :  { %5155 = vmatmul.mubr.f32.gmra.mrb[16].mxu0 %v2945_v33 }
 0x40b   :  { %5159 = vmatprep.mubr.f32.mxu0 %v7591_v30 }
 0x40e   :  { %5160 = vmatmul.mubr.f32.vlgmr.msra.gmra.mrb[14].mxu0 %v7605_v4 }
 0x40f   :  { %5166 = vmatpush3.msra.mxu0 %v2953_v17  ;;  %5162 = vmatprep.mubr.f32.mxu0 %v2931_v18 }
 0x410   :  { %5173 = vmatprep.subr.mxu0 %v7596_v46 }
 0x412   :  { %5163 = vmatmul.mubr.f32.gmra.mrb[16].mxu0 %v2941_v36 }
 0x413   :  { %5167 = vmatprep.mubr.f32.mxu0 %v2912_v12 }
 0x416   :  { %5168 = vmatmul.mubr.f32.vlgmr.msra.gmra.mrb[14].mxu0 %v2922_v39 }
 0x417   :  { %5174 = vmatpush3.msra.mxu0 %v7596_v46  ;;  %5170 = vmatprep.mubr.f32.mxu0 %v2932_v11 }
 0x418   :  { %5181 = vmatprep.subr.mxu0 %v2954_v38 }
 0x41a   :  { %5171 = vmatmul.mubr.f32.gmra.mrb[16].mxu0 %v2942_v56  ;;  %v7656_v56 = vpack.c.bf16 %v3565_v41, %v3558_v45 }
 0x41b   :  { %5175 = vmatprep.mubr.f32.mxu0 %v2913_v49 }
 0x41e   :  { %5176 = vmatmul.mubr.f32.vlgmr.msra.gmra.mrb[14].mxu0 %v2923_v32 }
 0x41f   :  { %5182 = vmatpush3.msra.mxu0 %v2954_v38  ;;  %5178 = vmatprep.mubr.f32.mxu0 %v2933_v26  ;;  %v7652_v38 = vpack.c.bf16 %v3564_v62, %v3557_v58 }
 0x420   :  { %5189 = vmatprep.subr.mxu0 %v7596_v46 }
 0x422   :  { %5179 = vmatmul.mubr.f32.gmra.mrb[16].mxu0 %v2943_v16 }
 0x423   :  { %5183 = vmatprep.mubr.f32.mxu0 %v7591_v30 }
 0x426   :  { %5184 = vmatmul.mubr.f32.vlgmr.msra.gmra.mrb[14].mxu0 %v7605_v4 }
 0x427   :  { %5190 = vmatpush3.msra.mxu0 %v7596_v46  ;;  %5186 = vmatprep.mubr.f32.mxu0 %v2931_v18  ;;  %v3560_v46 = vand.u32 4294901760, %v3559_v22 }
 0x428   :  { %5966 = vmatprep.subr.bf16.mxu0 %v7638_v6 }
 0x429   :  { %v5973_v59 = vpack.c.bf16 %v3567_v53, %v3560_v46 }
 0x42a   :  { %5187 = vmatmul.mubr.f32.gmra.mrb[16].mxu0 %v2941_v36 }
 0x42b   :  { %5191 = vmatprep.mubr.f32.mxu0 %v7591_v30  ;;  %v3578_v30 = vsub.f32 %v3427_v57, %v3456_v43 }
 0x42d   :  { %v3579_v12 = vand.u32 4294901760, %v3578_v30  ;;  %v7654_v32 = vpack.c.bf16 %v3578_v30, %v3571_v19 }
 0x42e   :  { %5192 = vmatmul.mubr.f32.vlgmr.msra.gmra.mrb[14].mxu0 %v7605_v4  ;;  %v3572_v4 = vand.u32 4294901760, %v3571_v19 }
 0x42f   :  { %5194 = vmatprep.mubr.f32.mxu0 %v2931_v18  ;;  %5968 = vmatpush3.bf16.msra.mxu0 %v7638_v6  ;;  %v3580_v39 = vsub.f32 %v3578_v30, %v3579_v12 }
 0x430   :  { %5970 = vmatprep.subr.bf16.mxu0 %v7648_v21  ;;  %v3573_v17 = vsub.f32 %v3571_v19, %v3572_v4  ;;  %v7658_v1 = vpack.c.bf16 %v3579_v12, %v3572_v4  ;;  %v4064_v4 = vld [vmem:[%s7795_s5 + $0x28] sm:$0xff]  ;;  %v4065_v12 = vld [vmem:[%s7795_s5 + $0x30] sm:$0xff] }
 0x431   :  { %v3581_v49 = vand.u32 4294901760, %v3580_v39 }
 0x432   :  { %5195 = vmatmul.mubr.f32.gmra.mrb[16].mxu0 %v2941_v36  ;;  %v3574_v36 = vand.u32 4294901760, %v3573_v17  ;;  %v4067_v17 = vld [vmem:[%s7795_s5 + $0x40] sm:$0xff] }
 0x433   :  { %5972 = vmatpush3.bf16.msra.mxu0 %v7648_v21 }
 0x434   :  { %5974 = vmatprep.subr.bf16.mxu0 %v5973_v59  ;;  %v5977_v11 = vpack.c.bf16 %v3581_v49, %v3574_v36 }
 0x435   :  { %v4845_v9 = vpop.f32.mrb[2].mxu0 }
 0x436   :  { %v4846_v2 = vpop.f32.mrb[3].mxu0 }
 0x437   :  { %v4847_v14 = vadd.f32 %v4846_v2, %v4845_v9 }
 0x439   :  { %v2057_v3 = vadd.f32 %v4847_v14, %v1947_v5 }
 0x455   :  { %v4880_v55 = vpop.f32.mrb[4].mxu0 }
 0x456   :  { %v4881_v44 = vpop.f32.mrb[5].mxu0 }
 0x457   :  { %v4882_v48 = vadd.f32 %v4881_v44, %v4880_v55 }
 0x459   :  { %v2289_v63 = vadd.f32 %v4882_v48, %v2057_v3 }
 0x475   :  { %v4915_v51 = vpop.f32.mrb[6].mxu0 }
 0x476   :  { %v4916_v8 = vpop.f32.mrb[7].mxu0 }
 0x477   :  { %v4917_v25 = vadd.f32 %v4916_v8, %v4915_v51 }
 0x479   :  { %v2427_v54 = vadd.f32 %v4917_v25, %v2289_v63 }
 0x495   :  { %v4950_v28 = vpop.f32.mrb[8].mxu0 }
 0x496   :  { %v4951_v34 = vpop.f32.mrb[9].mxu0 }
 0x497   :  { %v4952_v35 = vadd.f32 %v4951_v34, %v4950_v28 }
 0x499   :  { %v2535_v18 = vadd.f32 %v4952_v35, %v2427_v54 }
 0x4b5   :  { %v4985_v23 = vpop.f32.mrb[10].mxu0 }
 0x4b6   :  { %v4986_v26 = vpop.f32.mrb[11].mxu0 }
 0x4b7   :  { %v4987_v27 = vadd.f32 %v4986_v26, %v4985_v23 }
 0x4b9   :  { %v2703_v16 = vadd.f32 %v4987_v27, %v2535_v18  ;;  %v4086_v18 = vand.u32 4294901760, %v4064_v4 }
 0x4bb   :  { %v4196_v39 = vsub.f32 %v4064_v4, %v4086_v18 }
 0x4d5   :  { %v5020_v50 = vpop.f32.mrb[12].mxu0 }
 0x4d6   :  { %v5021_v13 = vpop.f32.mrb[13].mxu0 }
 0x4d7   :  { %v5022_v40 = vadd.f32 %v5021_v13, %v5020_v50 }
 0x4d9   :  { %v7660_v61 = vadd.f32 %v5022_v40, %v2703_v16 }
 0x501   :  { %v5193_v0 = vpop.f32.mrb[14].mxu0 }
 0x502   :  { %v6065_v33 = vadd.f32 %v5193_v0, %v4810_v31  ;;  %v3398_v9 = vpop.f32.mrb[15].mxu0 }
 0x503   :  { %v6066_v2 = vadd.f32 %v4810_v31, %v3398_v9 }
 0x504   :  { %6175 = vtanh.f32 %v6065_v33 }
 0x505   :  { %6177 = vtanh.f32 %v6066_v2  ;;  %v5196_v14 = vpop.f32.mrb[16].mxu0 }
 0x506   :  { %v6067_v5 = vadd.f32 %v5196_v14, %v4810_v31  ;;  %v3410_v55 = vpop.f32.mrb[17].mxu0 }
 0x507   :  { %v6068_v44 = vadd.f32 %v4810_v31, %v3410_v55 }
 0x508   :  { %6179 = vtanh.f32 %v6067_v5 }
 0x509   :  { %6181 = vtanh.f32 %v6068_v44 }
 0x50e   :  { %v6176_v3 = vpop.eup %6175 }
 0x50f   :  { %v6178_v48 = vpop.eup %6177  ;;  %v3438_v63 = vsel %vm3433_vm3, %v6176_v3, 0 }
 0x510   :  { %v7666_v51 = vand.u32 4294901760, %v3438_v63  ;;  %v3435_v8 = vsel %vm3433_vm3, %v6178_v48, 0  ;;  %v4699_v48 = vmul.f32 %v7571_v20, %v7571_v20  ;;  %v4811_v20 = vld [vmem:[%s7795_s5 + $0x50] ss:$0 sm:$0xff] }
 0x511   :  { %v3515_v25 = vand.u32 4294901760, %v3435_v8 }
 0x512   :  { %v6180_v54 = vpop.eup %6179  ;;  %v3526_v47 = vsub.f32 %v3438_v63, %v7666_v51  ;;  %v4700_v63 = vmul.f32 %v7583_v37, %v7583_v37 }
 0x513   :  { %v6182_v52 = vpop.eup %6181  ;;  %v3516_v10 = vsub.f32 %v3435_v8, %v3515_v25  ;;  %v3444_v60 = vsel %vm3433_vm3, %v6180_v54, 0  ;;  %v4702_v8 = vmul.f32 %v7603_v15, %v7603_v15 }
 0x514   :  { %v3527_v24 = vand.u32 4294901760, %v3526_v47  ;;  %v3441_v57 = vsel %vm3433_vm3, %v6182_v52, 0  ;;  %v3545_v58 = vand.u32 4294901760, %v3444_v60 }
 0x515   :  { %v3517_v62 = vand.u32 4294901760, %v3516_v10  ;;  %v3535_v7 = vand.u32 4294901760, %v3441_v57  ;;  %v4712_v52 = vsel %vm2828_vm1, %v4702_v8, 0.0 }
 0x516   :  { %v3528_v43 = vsub.f32 %v3526_v47, %v3527_v24  ;;  %v3546_v45 = vsub.f32 %v3444_v60, %v3545_v58 }
 0x517   :  { %v3518_v41 = vsub.f32 %v3516_v10, %v3517_v62  ;;  %v3536_v28 = vsub.f32 %v3441_v57, %v3535_v7 }
 0x518   :  { %v3547_v34 = vand.u32 4294901760, %v3546_v45  ;;  %v3529_v19 = vand.u32 4294901760, %v3528_v43 }
 0x519   :  { %v3519_v22 = vand.u32 4294901760, %v3518_v41  ;;  %v3537_v42 = vand.u32 4294901760, %v3536_v28 }
 0x51a   :  { %v3548_v30 = vsub.f32 %v3546_v45, %v3547_v34 }
 0x51b   :  { %5205 = vmatprep.mubr.f32.mxu0 %v3519_v22  ;;  %v3538_v35 = vsub.f32 %v3536_v28, %v3537_v42 }
 0x51c   :  { %5206 = vmatmul.mubr.f32.vlgmr.msra.gmra.mrb[18].mxu0 %v3529_v19  ;;  %v3549_v53 = vand.u32 4294901760, %v3548_v30 }
 0x51d   :  { %5976 = vmatpush3.bf16.msra.mxu0 %v5973_v59  ;;  %v3539_v46 = vand.u32 4294901760, %v3538_v35 }
 0x51e   :  { %5978 = vmatprep.subr.bf16.mxu0 %v5977_v11 }
 0x51f   :  { %5208 = vmatprep.mubr.f32.mxu0 %v3539_v46 }
 0x520   :  { %5209 = vmatmul.mubr.f32.gmra.mrb[20].mxu0 %v3549_v53 }
 0x521   :  { %5980 = vmatpush3.bf16.msra.mxu0 %v5977_v11  ;;  %5219 = vmatprep.mubr.f32.mxu0 %v3515_v25  ;;  %v4095_v11 = vand.u32 4294901760, %v4067_v17 }
 0x522   :  { %5982 = vmatprep.subr.bf16.mxu0 %v7652_v38 }
 0x523   :  { %v4217_v27 = vsub.f32 %v4067_v17, %v4095_v11 }
 0x524   :  { %5220 = vmatmul.mubr.f32.vlgmr.msra.gmra.mrb[18].mxu0 %v7666_v51 }
 0x525   :  { %5222 = vmatprep.mubr.f32.mxu0 %v3535_v7  ;;  %5984 = vmatpush3.bf16.msra.mxu0 %v7652_v38  ;;  %v4197_v38 = vand.u32 4294901760, %v4196_v39  ;;  %v4218_v40 = vand.u32 4294901760, %v4217_v27 }
 0x526   :  { %5986 = vmatprep.subr.bf16.mxu0 %v7654_v32 }
 0x527   :  { %v4198_v23 = vsub.f32 %v4196_v39, %v4197_v38  ;;  %v4219_v33 = vsub.f32 %v4217_v27, %v4218_v40 }
 0x528   :  { %5223 = vmatmul.mubr.f32.gmra.mrb[20].mxu0 %v3545_v58 }
 0x529   :  { %5988 = vmatpush3.bf16.msra.mxu0 %v7654_v32  ;;  %5233 = vmatprep.mubr.f32.mxu0 %v3516_v10  ;;  %v4199_v16 = vand.u32 4294901760, %v4198_v23  ;;  %v4220_v2 = vand.u32 4294901760, %v4219_v33 }
 0x52a   :  { %5990 = vmatprep.subr.bf16.mxu0 %v7638_v6 }
 0x52c   :  { %5234 = vmatmul.mubr.f32.vlgmr.msra.gmra.mrb[18].mxu0 %v3526_v47  ;;  %v4706_v47 = vsel %vm2828_vm1, %v4700_v63, 0.0 }
 0x52d   :  { %5236 = vmatprep.mubr.f32.mxu0 %v3536_v28  ;;  %5992 = vmatpush3.bf16.msra.mxu0 %v7638_v6 }
 0x52e   :  { %5994 = vmatprep.subr.bf16.mxu0 %v7648_v21 }
 0x530   :  { %5237 = vmatmul.mubr.f32.gmra.mrb[20].mxu0 %v3546_v45 }
 0x531   :  { %5996 = vmatpush3.bf16.msra.mxu0 %v7648_v21  ;;  %5247 = vmatprep.mubr.f32.mxu0 %v3517_v62 }
 0x532   :  { %5998 = vmatprep.subr.bf16.mxu0 %v7656_v56 }
 0x534   :  { %5248 = vmatmul.mubr.f32.vlgmr.msra.gmra.mrb[18].mxu0 %v3527_v24 }
 0x535   :  { %5250 = vmatprep.mubr.f32.mxu0 %v3537_v42  ;;  %6000 = vmatpush3.bf16.msra.mxu0 %v7656_v56 }
 0x536   :  { %6002 = vmatprep.subr.bf16.mxu0 %v7658_v1 }
 0x538   :  { %5251 = vmatmul.mubr.f32.gmra.mrb[20].mxu0 %v3547_v34 }
 0x539   :  { %6004 = vmatpush3.bf16.msra.mxu0 %v7658_v1  ;;  %5261 = vmatprep.mubr.f32.mxu0 %v3515_v25 }
 0x53a   :  { %6006 = vmatprep.subr.bf16.mxu0 %v7638_v6 }
 0x53c   :  { %5262 = vmatmul.mubr.f32.vlgmr.msra.gmra.mrb[18].mxu0 %v7666_v51 }
 0x53d   :  { %5264 = vmatprep.mubr.f32.mxu0 %v3535_v7  ;;  %6008 = vmatpush3.bf16.msra.mxu0 %v7638_v6  ;;  %v4089_v6 = vand.u32 4294901760, %v4065_v12 }
 0x53e   :  { %6010 = vmatprep.subr.bf16.mxu0 %v7648_v21 }
 0x53f   :  { %v7697_v59 = vpack.c.bf16 %v4089_v6, %v4086_v18  ;;  %v4203_v36 = vsub.f32 %v4065_v12, %v4089_v6 }
 0x540   :  { %5265 = vmatmul.mubr.f32.gmra.mrb[20].mxu0 %v3545_v58 }
 0x541   :  { %6012 = vmatpush3.bf16.msra.mxu0 %v7648_v21  ;;  %5275 = vmatprep.mubr.f32.mxu0 %v3515_v25  ;;  %v4066_v21 = vld [vmem:[%s7795_s5 + $0x38] sm:$0xff]  ;;  %v4204_v32 = vand.u32 4294901760, %v4203_v36  ;;  %v7716_v5 = vpack.c.bf16 %v4203_v36, %v4196_v39  ;;  %v4703_v25 = vsel %vm2828_vm1, %v4699_v48, 0.0 }
 0x542   :  { %v4092_v49 = vand.u32 4294901760, %v4066_v21  ;;  %6014 = vmatprep.subr.bf16.mxu0 %v7697_v59  ;;  %4704 = vadd.xlane.f32.xlu0 %v4703_v25 }
 0x543   :  { %v4205_v26 = vsub.f32 %v4203_v36, %v4204_v32  ;;  %v7720_v44 = vpack.c.bf16 %v4204_v32, %v4197_v38 }
 0x544   :  { %5276 = vmatmul.mubr.f32.vlgmr.msra.gmra.mrb[18].mxu0 %v7666_v51  ;;  %v7707_v56 = vpack.c.bf16 %v4095_v11, %v4092_v49  ;;  %v4210_v1 = vsub.f32 %v4066_v21, %v4092_v49  ;;  %v4701_v51 = vmul.f32 %v7588_v29, %v7588_v29 }
 0x545   :  { %5278 = vmatprep.mubr.f32.mxu0 %v3535_v7  ;;  %6016 = vmatpush3.bf16.msra.mxu0 %v7697_v59  ;;  %v4206_v50 = vand.u32 4294901760, %v4205_v26 }
 0x546   :  { %6018 = vmatprep.subr.bf16.mxu0 %v7707_v56  ;;  %v4211_v13 = vand.u32 4294901760, %v4210_v1  ;;  %v7718_v55 = vpack.c.bf16 %v4217_v27, %v4210_v1  ;;  %v4709_v54 = vsel %vm2828_vm1, %v4701_v51, 0.0  ;;  %4707 = vadd.xlane.f32.xlu0 %v4706_v47 }
 0x547   :  { %v7711_v31 = vpack.c.bf16 %v4206_v50, %v4199_v16  ;;  %4710 = vadd.xlane.f32.xlu1 %v4709_v54  ;;  %v4812_v54 = vld [vmem:[%s7795_s5 + $0x58] ss:$0 sm:$0xff]  ;;  %s6236_s5 = smov 48  }
 0x548   :  { %5279 = vmatmul.mubr.f32.gmra.mrb[20].mxu0 %v3545_v58  ;;  %v4212_v0 = vsub.f32 %v4210_v1, %v4211_v13  ;;  %v7722_v3 = vpack.c.bf16 %v4218_v40, %v4211_v13 }
 0x549   :  { %6020 = vmatpush3.bf16.msra.mxu0 %v7707_v56 }
 0x54a   :  { %6022 = vmatprep.subr.bf16.mxu0 %v7711_v31  ;;  %v4213_v9 = vand.u32 4294901760, %v4212_v0 }
 0x54b   :  { %4713 = vadd.xlane.f32.xlu1 %v4712_v52 }
 0x54c   :  { %v7714_v14 = vpack.c.bf16 %v4220_v2, %v4213_v9 }
 0x5cf   :  { %v4705_v1 = vpop.xlane.xlu0 %4704 }
 0x5d0   :  { %vm4717_vm5 = vcmp.eq.f32.partialorder %v4705_v1, inf  ;;  %v4720_v33 = vand.u32 2147483648, %v4705_v1  ;;  %vm4719_vm7 = vcmp.eq.f32.partialorder %v4705_v1, 0.0 }
 0x5d3   :  { %v4708_v27 = vpop.xlane.xlu0 %4707 }
 0x5d4   :  { %v4711_v16 = vpop.xlane.xlu1 %4710  ;;  %vm4724_vm4 = vcmp.eq.f32.partialorder %v4708_v27, inf  ;;  %vm4726_vm6 = vcmp.eq.f32.partialorder %v4708_v27, 0.0 }
 0x5d5   :  { %vm4731_vm8 = vcmp.eq.f32.partialorder %v4711_v16, inf  ;;  %vm4733_vm9 = vcmp.eq.f32.partialorder %v4711_v16, 0.0 }
 0x5d8   :  { %v4714_v50 = vpop.xlane.xlu1 %4713 }
 0x5d9   :  { %vm4738_vm10 = vcmp.eq.f32.partialorder %v4714_v50, inf  ;;  %v4741_v51 = vand.u32 2147483648, %v4714_v50  ;;  %vm4740_vm11 = vcmp.eq.f32.partialorder %v4714_v50, 0.0 }
 0x617   :  { %v5277_v37 = vpop.f32.mrb[18].mxu0 }
 0x618   :  { %v6069_v29 = vadd.f32 %v5277_v37, %v4811_v20  ;;  %v4038_v10 = vpop.f32.mrb[19].mxu0 }
 0x619   :  { %v6070_v15 = vadd.f32 %v4811_v20, %v4038_v10 }
 0x61a   :  { %6183 = vtanh.f32 %v6069_v29 }
 0x61b   :  { %6185 = vtanh.f32 %v6070_v15  ;;  %v5280_v60 = vpop.f32.mrb[20].mxu0 }
 0x61c   :  { %v6071_v24 = vadd.f32 %v5280_v60, %v4811_v20  ;;  %v4050_v57 = vpop.f32.mrb[21].mxu0 }
 0x61d   :  { %v6072_v58 = vadd.f32 %v4811_v20, %v4050_v57 }
 0x61e   :  { %6187 = vtanh.f32 %v6071_v24 }
 0x61f   :  { %6189 = vtanh.f32 %v6072_v58 }
 0x620   :  { %6191 = vrsqrt.f32 %v4708_v27 }
 0x621   :  { %6193 = vrsqrt.f32 %v4705_v1 }
 0x622   :  { %6195 = vrsqrt.f32 %v4711_v16 }
 0x623   :  { %6197 = vrsqrt.f32 %v4714_v50 }
 0x624   :  { %v6184_v62 = vpop.eup %6183 }
 0x625   :  { %v6186_v7 = vpop.eup %6185  ;;  %v4077_v43 = vsel %vm3433_vm3, %v6184_v62, 0 }
 0x626   :  { %v7740_v45 = vand.u32 4294901760, %v4077_v43  ;;  %v4074_v41 = vsel %vm3433_vm3, %v6186_v7, 0 }
 0x627   :  { %v4154_v28 = vand.u32 4294901760, %v4074_v41 }
 0x628   :  { %v6188_v34 = vpop.eup %6187  ;;  %v4165_v22 = vsub.f32 %v4077_v43, %v7740_v45 }
 0x629   :  { %v6190_v42 = vpop.eup %6189  ;;  %v4155_v19 = vsub.f32 %v4074_v41, %v4154_v28  ;;  %v4083_v30 = vsel %vm3433_vm3, %v6188_v34, 0 }
 0x62a   :  { %v4166_v35 = vand.u32 4294901760, %v4165_v22  ;;  %v4080_v46 = vsel %vm3433_vm3, %v6190_v42, 0  ;;  %v4184_v53 = vand.u32 4294901760, %v4083_v30  ;;  %v6192_v13 = vpop.eup %6191 }
 0x62b   :  { %v4156_v4 = vand.u32 4294901760, %v4155_v19  ;;  %v4174_v12 = vand.u32 4294901760, %v4080_v46  ;;  %v4723_v40 = vmul.f32 %v6192_v13, %v4708_v27 }
 0x62c   :  { %v4167_v18 = vsub.f32 %v4165_v22, %v4166_v35  ;;  %v4185_v6 = vsub.f32 %v4083_v30, %v4184_v53 }
 0x62d   :  { %v4157_v21 = vsub.f32 %v4155_v19, %v4156_v4  ;;  %v4175_v17 = vsub.f32 %v4080_v46, %v4174_v12  ;;  %v4725_v9 = vsel %vm4724_vm4, %v4708_v27, %v4723_v40 }
 0x62e   :  { %v4186_v39 = vand.u32 4294901760, %v4185_v6  ;;  %v4168_v11 = vand.u32 4294901760, %v4167_v18 }
 0x62f   :  { %v4158_v36 = vand.u32 4294901760, %v4157_v21  ;;  %v4176_v49 = vand.u32 4294901760, %v4175_v17 }
 0x630   :  { %v4187_v38 = vsub.f32 %v4185_v6, %v4186_v39 }
 0x631   :  { %5289 = vmatprep.mubr.f32.mxu0 %v4158_v36  ;;  %v4177_v32 = vsub.f32 %v4175_v17, %v4176_v49 }
 0x632   :  { %5290 = vmatmul.mubr.f32.vlgmr.msra.gmra.mrb[22].mxu0 %v4168_v11  ;;  %v4188_v26 = vand.u32 4294901760, %v4187_v38 }
 0x633   :  { %6024 = vmatpush3.bf16.msra.mxu0 %v7711_v31  ;;  %v4178_v23 = vand.u32 4294901760, %v4177_v32  ;;  %v2810_v32 = vld [vmem:[%s7793_s3] sm:$0xff] }
 0x634   :  { %6026 = vmatprep.subr.bf16.mxu0 %v7714_v14 }
 0x635   :  { %5292 = vmatprep.mubr.f32.mxu0 %v4178_v23 }
 0x636   :  { %5293 = vmatmul.mubr.f32.gmra.mrb[24].mxu0 %v4188_v26 }
 0x637   :  { %6028 = vmatpush3.bf16.msra.mxu0 %v7714_v14  ;;  %5303 = vmatprep.mubr.f32.mxu0 %v4154_v28 }
 0x638   :  { %6030 = vmatprep.subr.bf16.mxu0 %v7716_v5 }
 0x63a   :  { %5304 = vmatmul.mubr.f32.vlgmr.msra.gmra.mrb[22].mxu0 %v7740_v45 }
 0x63b   :  { %5306 = vmatprep.mubr.f32.mxu0 %v4174_v12  ;;  %6032 = vmatpush3.bf16.msra.mxu0 %v7716_v5 }
 0x63c   :  { %6034 = vmatprep.subr.bf16.mxu0 %v7718_v55 }
 0x63e   :  { %5307 = vmatmul.mubr.f32.gmra.mrb[24].mxu0 %v4184_v53 }
 0x63f   :  { %6036 = vmatpush3.bf16.msra.mxu0 %v7718_v55  ;;  %5317 = vmatprep.mubr.f32.mxu0 %v4155_v19 }
 0x640   :  { %6038 = vmatprep.subr.bf16.mxu0 %v7697_v59 }
 0x642   :  { %5318 = vmatmul.mubr.f32.vlgmr.msra.gmra.mrb[22].mxu0 %v4165_v22 }
 0x643   :  { %5320 = vmatprep.mubr.f32.mxu0 %v4175_v17  ;;  %6040 = vmatpush3.bf16.msra.mxu0 %v7697_v59 }
 0x644   :  { %6042 = vmatprep.subr.bf16.mxu0 %v7707_v56 }
 0x646   :  { %5321 = vmatmul.mubr.f32.gmra.mrb[24].mxu0 %v4185_v6 }
 0x647   :  { %6044 = vmatpush3.bf16.msra.mxu0 %v7707_v56  ;;  %5331 = vmatprep.mubr.f32.mxu0 %v4156_v4  ;;  %v2811_v4 = vld [vmem:[%s7791_s1] sm:$0xff] }
 0x648   :  { %6046 = vmatprep.subr.bf16.mxu0 %v7720_v44 }
 0x64a   :  { %5332 = vmatmul.mubr.f32.vlgmr.msra.gmra.mrb[22].mxu0 %v4166_v35 }
 0x64b   :  { %5334 = vmatprep.mubr.f32.mxu0 %v4176_v49  ;;  %6048 = vmatpush3.bf16.msra.mxu0 %v7720_v44  ;;  %v4734_v44 = vand.u32 2147483648, %v4711_v16 }
 0x64c   :  { %6050 = vmatprep.subr.bf16.mxu0 %v7722_v3 }
 0x64e   :  { %5335 = vmatmul.mubr.f32.gmra.mrb[24].mxu0 %v4186_v39 }
 0x64f   :  { %6052 = vmatpush3.bf16.msra.mxu0 %v7722_v3  ;;  %5345 = vmatprep.mubr.f32.mxu0 %v4154_v28 }
 0x650   :  { %6054 = vmatprep.subr.bf16.mxu0 %v7697_v59 }
 0x652   :  { %5346 = vmatmul.mubr.f32.vlgmr.msra.gmra.mrb[22].mxu0 %v7740_v45 }
 0x653   :  { %5348 = vmatprep.mubr.f32.mxu0 %v4174_v12  ;;  %6056 = vmatpush3.bf16.msra.mxu0 %v7697_v59  ;;  %v6194_v59 = vpop.eup %6193 }
 0x654   :  { %6058 = vmatprep.subr.bf16.mxu0 %v7707_v56  ;;  %v4716_v31 = vmul.f32 %v6194_v59, %v4705_v1  ;;  %v6196_v0 = vpop.eup %6195 }
 0x655   :  { %v4730_v14 = vmul.f32 %v6196_v0, %v4711_v16  ;;  %v6198_v5 = vpop.eup %6197 }
 0x656   :  { %5349 = vmatmul.mubr.f32.gmra.mrb[24].mxu0 %v4184_v53  ;;  %v4718_v2 = vsel %vm4717_vm5, %v4705_v1, %v4716_v31  ;;  %v4737_v63 = vmul.f32 %v6198_v5, %v4714_v50 }
 0x657   :  { %6060 = vmatpush3.bf16.msra.mxu0 %v7707_v56  ;;  %5359 = vmatprep.mubr.f32.mxu0 %v4154_v28  ;;  %v4727_v56 = vand.u32 2147483648, %v4708_v27  ;;  %v4721_v3 = vsel %vm4719_vm7, %v4720_v33, %v4718_v2  ;;  %v4732_v48 = vsel %vm4731_vm8, %v4711_v16, %v4730_v14 }
 0x658   :  { %v4735_v8 = vsel %vm4733_vm9, %v4734_v44, %v4732_v48  ;;  %v4739_v25 = vsel %vm4738_vm10, %v4714_v50, %v4737_v63 }
 0x659   :  { %v4728_v55 = vsel %vm4726_vm6, %v4727_v56, %v4725_v9  ;;  %v4742_v47 = vsel %vm4740_vm11, %v4741_v51, %v4739_v25 }
 0x65a   :  { %5360 = vmatmul.mubr.f32.vlgmr.msra.gmra.mrb[22].mxu0 %v7740_v45  ;;  %6199 = vtanh.f32 %v4728_v55 }
 0x65b   :  { %5362 = vmatprep.mubr.f32.mxu0 %v4174_v12  ;;  %6201 = vtanh.f32 %v4721_v3  ;;  %v2812_v12 = vmul.f32 %v2811_v4, %v7660_v61 }
 0x65c   :  { %6203 = vtanh.f32 %v4735_v8 }
 0x65d   :  { %6205 = vtanh.f32 %v4742_v47  ;;  %v2814_v18 = vsel %vm2813_vm12, %v2812_v12, 0.0 }
 0x65e   :  { %5363 = vmatmul.mubr.f32.gmra.mrb[24].mxu0 %v4184_v53 }
 0x664   :  { %v6200_v29 = vpop.eup %6199 }
 0x665   :  { %v6202_v15 = vpop.eup %6201 }
 0x666   :  { %v6204_v7 = vpop.eup %6203 }
 0x667   :  { %v6206_v41 = vpop.eup %6205 }
 0x72d   :  { %v5361_v52 = vpop.f32.mrb[22].mxu0 }
 0x72e   :  { %v6073_v20 = vadd.f32 %v5361_v52, %v4812_v54  ;;  %v4677_v37 = vpop.f32.mrb[23].mxu0 }
 0x72f   :  { %v6074_v10 = vadd.f32 %v4812_v54, %v4677_v37 }
 0x730   :  { %v4748_v60 = vmul.f32 %v6200_v29, %v6073_v20 }
 0x731   :  { %v5364_v24 = vpop.f32.mrb[24].mxu0  ;;  %v4747_v57 = vmul.f32 %v6202_v15, %v6074_v10 }
 0x732   :  { %4765 = vrot.lane.b32.xlu1 %v4748_v60, %s6235_s17  ;;  %v4689_v58 = vpop.f32.mrb[25].mxu0  ;;  %v6075_v43 = vadd.f32 %v5364_v24, %v4812_v54 }
 0x733   :  { %v6076_v62 = vadd.f32 %v4812_v54, %v4689_v58  ;;  %4752 = vrot.lane.b32.xlu0 %v4747_v57, %s6233_s8  ;;  %s6240_s8 = smov 80  }
 0x734   :  { %v4750_v28 = vmul.f32 %v6206_v41, %v6075_v43 }
 0x735   :  { %v4749_v45 = vmul.f32 %v6204_v7, %v6076_v62 }
 0x737   :  { %4778 = vrot.lane.b32.xlu1 %v4749_v45, %s6236_s5 }
 0x73b   :  { %4791 = vrot.lane.b32.xlu1 %v4750_v28, %s6237_s18 }
 0x7a4   :  { %v4766_v34 = vpop.permute.xlu1 %4765 }
 0x7a5   :  { %v4768_v22 = vmul.f32 %v4766_v34, %v7660_v61  ;;  %v4753_v42 = vpop.permute.xlu0 %4752 }
 0x7a6   :  { %v4755_v19 = vmul.f32 %v4753_v42, %v7660_v61 }
 0x7a7   :  { %4770 = vrot.lane.b32.xlu1 %v4768_v22, %s6238_s19 }
 0x7a8   :  { %4757 = vrot.lane.b32.xlu0 %v4755_v19, %s6239_s20 }
 0x7a9   :  { %v4779_v30 = vpop.permute.xlu1 %4778 }
 0x7aa   :  { %v4781_v35 = vmul.f32 %v4779_v30, %v7660_v61 }
 0x7ac   :  { %4783 = vrot.lane.b32.xlu0 %v4781_v35, %s6240_s8 }
 0x7ad   :  { %v4792_v46 = vpop.permute.xlu1 %4791 }
 0x7ae   :  { %v4794_v53 = vmul.f32 %v4792_v46, %v7660_v61 }
 0x7b0   :  { %4796 = vrot.lane.b32.xlu1 %v4794_v53, %s6237_s18 }
 0x7cb   :  { %2815 = vadd.xlane.f32.xlu0 %v2814_v18 }
 0x819   :  { %v4771_v6 = vpop.permute.xlu1 %4770 }
 0x81a   :  { %v4758_v21 = vpop.permute.xlu0 %4757  ;;  %v4773_v17 = vsel %vm55_vm0, %v4771_v6, 0.0 }
 0x81b   :  { %4774 = vadd.xlane.f32.xlu0 %v4773_v17  ;;  %v4760_v39 = vsel %vm55_vm0, %v4758_v21, 0.0 }
 0x81c   :  { %4761 = vadd.xlane.f32.xlu1 %v4760_v39 }
 0x81e   :  { %v4784_v36 = vpop.permute.xlu0 %4783 }
 0x81f   :  { %v4786_v49 = vsel %vm55_vm0, %v4784_v36, 0.0 }
 0x820   :  { %4787 = vadd.xlane.f32.xlu0 %v4786_v49 }
 0x822   :  { %v4797_v11 = vpop.permute.xlu1 %4796 }
 0x823   :  { %v4799_v38 = vsel %vm55_vm0, %v4797_v11, 0.0 }
 0x824   :  { %4800 = vadd.xlane.f32.xlu0 %v4799_v38 }
 0x858   :  { %v2816_v61 = vpop.xlane.xlu0 %2815 }
 0x859   :  { %v2817_v23 = vadd.f32 %v2816_v61, %v2810_v32 }
 0x8a8   :  { %v4775_v26 = vpop.xlane.xlu0 %4774 }
 0x8a9   :  { %v4762_v1 = vpop.xlane.xlu1 %4761 }
 0x8aa   :  { %v4763_v27 = vadd.f32 %v4762_v1, %v2817_v23 }
 0x8ac   :  { %v4776_v16 = vadd.f32 %v4775_v26, %v4763_v27 }
 0x8ad   :  { %v4788_v50 = vpop.xlane.xlu0 %4787 }
 0x8ae   :  { %v4789_v13 = vadd.f32 %v4788_v50, %v4776_v16 }
 0x8b1   :  { %v4801_v59 = vpop.xlane.xlu0 %4800 }
 0x8b2   :  { %v4802_v40 = vadd.f32 %v4801_v59, %v4789_v13 }
 0x8b4   :  { %4804 = vst.msk [vmem:[%s7796_s6] sm:$0xff] %vm4803_vm13, %v4802_v40 }
 0x8b5   :  { %4809 = vsyncpa [#allocation3], 1 }

</bundles_post_ra>
